<compile_context>
chip_gen: v7x
topology: tpu7x:2x2x1
jax: 0.10.0
libtpu: 0.0.40
codegen_flags: <defaults>
</compile_context>

<pallas_src>
import functools

import jax
import jax.numpy as jnp
from jax.experimental import pallas as pl
from jax.experimental.pallas import tpu as pltpu


# Optional perf knob: jnp.bfloat16 halves weight HBM traffic (~2x wall clock on
# this bandwidth-bound net); kept f32 so numerics match the PyTorch module.
WEIGHT_DTYPE = jnp.float32


def _tile_and_vmem():
    """Per-TPU-generation (target output-column tile, scoped-VMEM limit bytes)."""
    kind = ""
    try:
        kind = jax.devices()[0].device_kind.lower()
    except Exception:
        pass
    if "v6" in kind:
        # 128 MiB physical VMEM, 1 TC: 2560x1280 f32 tile double-buffered = 26 MB.
        return 1280, 48 * 1024 * 1024
    if "v7" in kind or "7x" in kind:
        # 64 MiB physical VMEM, 2 TCs: 640 keeps grid counts even (2560->4, 1280->2).
        return 640, 32 * 1024 * 1024
    if "v5" in kind:
        # v5e: ~0.82 TB/s HBM; 512-wide tiles already reach ~85% of roofline.
        return 512, 32 * 1024 * 1024
    return 512, 32 * 1024 * 1024  # conservative default


def _pick_tile(n, k, target, vmem_limit):
    """Multiple-of-128 divisor of `n` nearest `target` whose double-buffered
    (k, tile) f32 weight block fits ~75% of the scoped-VMEM limit."""
    if n <= target:
        return n
    budget = int(vmem_limit * 0.75)
    cands = [c for c in range(128, n + 1, 128) if n % c == 0]
    if not cands:
        return n
    feasible = [c for c in cands if 2 * k * c * 4 <= budget]
    if not feasible:
        feasible = [min(cands)]
    return min(feasible, key=lambda c: (abs(c - target), -c))


def _linear_kernel(x_ref, w_ref, b_ref, o_ref, *, apply_relu):
    """One output-column tile of y = x @ W + b (optionally ReLU)."""
    w = w_ref[...].astype(jnp.float32)
    acc = jnp.dot(x_ref[...], w, preferred_element_type=jnp.float32)
    acc = acc + b_ref[...]                     # (1, tn) broadcasts over rows
    if apply_relu:
        acc = jnp.maximum(acc, 0.0)
    o_ref[...] = acc.astype(o_ref.dtype)


def _fused_fc1_fc2_kernel(x_ref, w0_ref, b0_ref, w1_ref, b1_ref, o_ref):
    """Fused fc1 (+ReLU) and one column tile of fc2 (+ReLU).

    fc1 is tiny (K=32, 320 KB of weights, held untiled in VMEM); its (M, 2560)
    hidden activation is recomputed every grid step so the grid axis stays
    embarrassingly parallel (megacore-safe) with no cross-step scratch state.
    """
    w0 = w0_ref[...].astype(jnp.float32)
    h = jnp.dot(x_ref[...], w0, preferred_element_type=jnp.float32)
    h = jnp.maximum(h + b0_ref[...], 0.0)

    w1 = w1_ref[...].astype(jnp.float32)
    acc = jnp.dot(h, w1, preferred_element_type=jnp.float32)
    acc = jnp.maximum(acc + b1_ref[...], 0.0)
    o_ref[...] = acc.astype(o_ref.dtype)


def pallas_linear(x, w, b, *, apply_relu, target_tn, vmem_limit):
    """Fused linear(+ReLU): x(M,K) @ w(K,N) + b(N,). Tiles only N; K-slab of x
    stays resident (constant block index)."""
    M, K = x.shape
    Kw, N = w.shape
    assert K == Kw and b.shape == (N,)

    tile_n = _pick_tile(N, K, target_tn, vmem_limit)
    grid = (N // tile_n,)
    b2 = b.reshape(1, N)
    kernel = functools.partial(_linear_kernel, apply_relu=apply_relu)

    return pl.pallas_call(
        kernel,
        out_shape=jax.ShapeDtypeStruct((M, N), x.dtype),
        grid_spec=pltpu.PrefetchScalarGridSpec(
            num_scalar_prefetch=0,
            grid=grid,
            in_specs=[
                pl.BlockSpec((M, K), lambda j: (0, 0)),        # x: full slab, resident
                pl.BlockSpec((K, tile_n), lambda j: (0, j)),   # W: fat column tile
                pl.BlockSpec((1, tile_n), lambda j: (0, j)),   # b: column tile
            ],
            out_specs=pl.BlockSpec((M, tile_n), lambda j: (0, j)),
        ),
        compiler_params=pltpu.CompilerParams(
            dimension_semantics=("parallel",),
            vmem_limit_bytes=vmem_limit,
        ),
    )(x, w, b2)


def pallas_fused_fc1_fc2(x, w0, b0, w1, b1, *, target_tn, vmem_limit):
    """Single pallas_call computing relu(fc2(relu(fc1(x))))."""
    M, K0 = x.shape
    K0w, H = w0.shape
    Hw, N = w1.shape
    assert K0 == K0w and H == Hw and b0.shape == (H,) and b1.shape == (N,)

    tile_n = _pick_tile(N, H, target_tn, vmem_limit)
    grid = (N // tile_n,)
    b0_2 = b0.reshape(1, H)
    b1_2 = b1.reshape(1, N)

    return pl.pallas_call(
        _fused_fc1_fc2_kernel,
        out_shape=jax.ShapeDtypeStruct((M, N), x.dtype),
        grid_spec=pltpu.PrefetchScalarGridSpec(
            num_scalar_prefetch=0,
            grid=grid,
            in_specs=[
                pl.BlockSpec((M, K0), lambda j: (0, 0)),       # x: resident
                pl.BlockSpec((K0, H), lambda j: (0, 0)),       # W0: untiled, resident
                pl.BlockSpec((1, H), lambda j: (0, 0)),        # b0: resident
                pl.BlockSpec((H, tile_n), lambda j: (0, j)),   # W1: fat column tile
                pl.BlockSpec((1, tile_n), lambda j: (0, j)),   # b1: column tile
            ],
            out_specs=pl.BlockSpec((M, tile_n), lambda j: (0, j)),
        ),
        compiler_params=pltpu.CompilerParams(
            dimension_semantics=("parallel",),
            vmem_limit_bytes=vmem_limit,
        ),
    )(x, w0, b0_2, w1, b1_2)


def init_energy_net_params(key, dim_input, dim_output):
    """Deterministic synthetic parameters matching EnergyNet.__init__ shapes.

    fc1: dim_input->2560, fc2: 2560->2560, fc2b: 2560->2560,
    fc3: 2560->1280, fc4: 1280->dim_output.
    """
    factor = 80 * 2 * 2 * 2 * 2  # 1280
    dims = [dim_input, factor * 2, factor * 2, factor * 2, factor, dim_output]
    params = []
    for i in range(5):
        key, kw, kb = jax.random.split(key, 3)
        fan_in = dims[i]
        bound = 1.0 / jnp.sqrt(jnp.float32(fan_in))
        # Stored as (in, out) == PyTorch W.T
        w = jax.random.uniform(kw, (dims[i], dims[i + 1]), jnp.float32,
                               minval=-bound, maxval=bound).astype(WEIGHT_DTYPE)
        b = jax.random.uniform(kb, (dims[i + 1],), jnp.float32,
                               minval=-bound, maxval=bound)
        params.append((w, b))
    return params


def energy_net_forward(params, x):
    """Forward pass: relu after fc1, fc2, fc2b, fc3; fc4 linear output.

    Note: a fully fused single-pallas_call version (all weights streamed with
    emit_pipeline while the tiny activations stay in VMEM) would shave a few
    more kernel-launch/ramp boundaries; the fc1-into-fc2 fold plus fat tiles
    below captures the bulk of the win at much lower complexity.
    """
    target_tn, vmem_limit = _tile_and_vmem()
    (w0, b0), (w1, b1), (w2, b2), (w3, b3), (w4, b4) = params

    # fc1 + fc2 fused in one kernel (both with ReLU).
    h = pallas_fused_fc1_fc2(x, w0, b0, w1, b1,
                             target_tn=target_tn, vmem_limit=vmem_limit)
    # fc2b (+ ReLU)
    h = pallas_linear(h, w2, b2, apply_relu=True,
                      target_tn=target_tn, vmem_limit=vmem_limit)
    # fc3 (+ ReLU)
    h = pallas_linear(h, w3, b3, apply_relu=True,
                      target_tn=target_tn, vmem_limit=vmem_limit)
    # fc4 (no ReLU)
    out = pallas_linear(h, w4, b4, apply_relu=False,
                        target_tn=target_tn, vmem_limit=vmem_limit)
    return out


def energy_net_ref(params, x):
    h = x
    for i, (w, b) in enumerate(params):
        h = h @ w.astype(jnp.float32) + b
        if i < 4:  # ReLU after fc1, fc2, fc2b, fc3 — matches the PyTorch forward
            h = jnp.maximum(h, 0.0)
    return h


if __name__ == "__main__":
    key = jax.random.PRNGKey(0)
    batch, dim_input, dim_output = 8, 32, 8

    kparams, kx = jax.random.split(key)
    params = init_energy_net_params(kparams, dim_input, dim_output)
    x = jax.random.normal(kx, (batch, dim_input), jnp.float32)

    out = energy_net_forward(params, x)
    out = jax.block_until_ready(out)

    ref = energy_net_ref(params, x)
    assert out.shape == (batch, dim_output), out.shape
    assert jnp.allclose(out, ref, atol=1e-3, rtol=1e-3), \
        float(jnp.max(jnp.abs(out - ref)))

    print("KERNEL_OK")
</pallas_src>

<mosaic_0001>
module attributes {stable_mosaic.version = 11 : i64} {
  func.func @_fused_fc1_fc2_kernel(%arg0: i32, %arg1: memref<8x32xf32, #tpu.memory_space<vmem>>, %arg2: memref<32x2560xf32, #tpu.memory_space<vmem>>, %arg3: memref<1x2560xf32, #tpu.memory_space<vmem>>, %arg4: memref<2560x512xf32, #tpu.memory_space<vmem>>, %arg5: memref<1x512xf32, #tpu.memory_space<vmem>>, %arg6: memref<8x512xf32, #tpu.memory_space<vmem>>) attributes {dimension_semantics = [#tpu.dimension_semantics<parallel>], iteration_bounds = array<i64: 5>, scalar_prefetch = 0 : i64, scratch_operands = 0 : i64, tpu.core_type = #tpu.core_type<tc>, window_params = [{pipeline_mode = #tpu.pipeline_mode<synchronous>, transform_indices = @transform_0, window_bounds = array<i64: 8, 32>}, {pipeline_mode = #tpu.pipeline_mode<synchronous>, transform_indices = @transform_1, window_bounds = array<i64: 32, 2560>}, {pipeline_mode = #tpu.pipeline_mode<synchronous>, transform_indices = @transform_2, window_bounds = array<i64: 1, 2560>}, {transform_indices = @transform_3, window_bounds = array<i64: 2560, 512>}, {transform_indices = @transform_4, window_bounds = array<i64: 1, 512>}, {transform_indices = @transform_5, window_bounds = array<i64: 8, 512>}]} {
    %c0 = arith.constant 0 : index
    %c0_0 = arith.constant 0 : index
    %0 = vector.load %arg2[%c0, %c0_0] : memref<32x2560xf32, #tpu.memory_space<vmem>>, vector<32x2560xf32>
    %c0_1 = arith.constant 0 : index
    %c0_2 = arith.constant 0 : index
    %1 = vector.load %arg1[%c0_1, %c0_2] : memref<8x32xf32, #tpu.memory_space<vmem>>, vector<8x32xf32>
    %cst = arith.constant dense<0.000000e+00> : vector<8x2560xf32>
    %2 = tpu.matmul %1, %0, %cst {dimension_numbers = #tpu.dot_dimension_numbers<[1], [0], [0], [1], [0, 0, 1, 1], [], []>} : vector<8x32xf32>, vector<32x2560xf32>, vector<8x2560xf32> -> vector<8x2560xf32>
    %c0_3 = arith.constant 0 : index
    %c0_4 = arith.constant 0 : index
    %3 = vector.load %arg3[%c0_3, %c0_4] : memref<1x2560xf32, #tpu.memory_space<vmem>>, vector<1x2560xf32>
    %4 = vector.broadcast %3 : vector<1x2560xf32> to vector<8x2560xf32>
    %5 = arith.addf %2, %4 : vector<8x2560xf32>
    %cst_5 = arith.constant 0.000000e+00 : f32
    %6 = vector.broadcast %cst_5 : f32 to vector<8x2560xf32>
    %7 = arith.maximumf %5, %6 : vector<8x2560xf32>
    %c0_6 = arith.constant 0 : index
    %c0_7 = arith.constant 0 : index
    %8 = vector.load %arg4[%c0_6, %c0_7] : memref<2560x512xf32, #tpu.memory_space<vmem>>, vector<2560x512xf32>
    %cst_8 = arith.constant dense<0.000000e+00> : vector<8x512xf32>
    %9 = tpu.matmul %7, %8, %cst_8 {dimension_numbers = #tpu.dot_dimension_numbers<[1], [0], [0], [1], [0, 0, 1, 1], [], []>} : vector<8x2560xf32>, vector<2560x512xf32>, vector<8x512xf32> -> vector<8x512xf32>
    %c0_9 = arith.constant 0 : index
    %c0_10 = arith.constant 0 : index
    %10 = vector.load %arg5[%c0_9, %c0_10] : memref<1x512xf32, #tpu.memory_space<vmem>>, vector<1x512xf32>
    %11 = vector.broadcast %10 : vector<1x512xf32> to vector<8x512xf32>
    %12 = arith.addf %9, %11 : vector<8x512xf32>
    %cst_11 = arith.constant 0.000000e+00 : f32
    %13 = vector.broadcast %cst_11 : f32 to vector<8x512xf32>
    %14 = arith.maximumf %12, %13 : vector<8x512xf32>
    %c0_12 = arith.constant 0 : index
    %c0_13 = arith.constant 0 : index
    %15 = vector.load %arg6[%c0_12, %c0_13] : memref<8x512xf32, #tpu.memory_space<vmem>>, vector<8x512xf32>
    tpu.vector_store %arg6[%c0_12, %c0_13], %14 {strides = array<i32>} : memref<8x512xf32, #tpu.memory_space<vmem>>, vector<8x512xf32>,
    return
  }
  func.func @transform_0(%arg0: i32) -> (i32, i32) {
    %c0_i32 = arith.constant 0 : i32
    %c0_i32_0 = arith.constant 0 : i32
    %c0_i32_1 = arith.constant 0 : i32
    return %c0_i32, %c0_i32_0 : i32, i32
  }
  func.func @transform_1(%arg0: i32) -> (i32, i32) {
    %c0_i32 = arith.constant 0 : i32
    %c0_i32_0 = arith.constant 0 : i32
    %c0_i32_1 = arith.constant 0 : i32
    return %c0_i32, %c0_i32_0 : i32, i32
  }
  func.func @transform_2(%arg0: i32) -> (i32, i32) {
    %c0_i32 = arith.constant 0 : i32
    %c0_i32_0 = arith.constant 0 : i32
    %c0_i32_1 = arith.constant 0 : i32
    return %c0_i32, %c0_i32_0 : i32, i32
  }
  func.func @transform_3(%arg0: i32) -> (i32, i32) {
    %c0_i32 = arith.constant 0 : i32
    %c0_i32_0 = arith.constant 0 : i32
    return %c0_i32, %arg0 : i32, i32
  }
  func.func @transform_4(%arg0: i32) -> (i32, i32) {
    %c0_i32 = arith.constant 0 : i32
    %c0_i32_0 = arith.constant 0 : i32
    return %c0_i32, %arg0 : i32, i32
  }
  func.func @transform_5(%arg0: i32) -> (i32, i32) {
    %c0_i32 = arith.constant 0 : i32
    %c0_i32_0 = arith.constant 0 : i32
    return %c0_i32, %arg0 : i32, i32
  }
}

</mosaic_0001>

<bundles_post_ra>
// kernel: tpu_custom_call.1
= control target key start
LH: loop header
LB: loop body
LE: loop exit
PB: predicated region body
PF: predicated region fallthrough
CT: control target
= control target key end

     0   :  { %s7611_s0 = inlined_call_operand.hbm [shape: f32[8,32], index: 0, kind: input, shape index: {}]   ;;  %s7612_s1 = inlined_call_operand.hbm [shape: f32[32,2560], index: 1, kind: input, shape index: {}]   ;;  %s7613_s2 = inlined_call_operand.hbm [shape: f32[1,2560], index: 2, kind: input, shape index: {}]   ;;  %s7614_s3 = inlined_call_operand.hbm [shape: f32[2560,2560], index: 3, kind: input, shape index: {}]   ;;  %s7615_s4 = inlined_call_operand.hbm [shape: f32[1,2560], index: 4, kind: input, shape index: {}]   ;;  %s7616_s5 = inlined_call_operand.hbm [shape: f32[8,2560], index: 5, kind: output, shape index: {}]  }
   0x1   :  { %7631 = sst [smem:[#allocation20_spill]] %s7612_s1 }
   0x2   :  { %7632 = sst [smem:[#allocation21_spill]] %s7614_s3 }
   0x3   :  { %10 = vsyncpa [#allocation3], 0 }
   0x4   :  { %11 = vsyncpa [#allocation6], 0 }
   0x5   :  { %12 = vsyncpa [#allocation9], 0 }
   0x6   :  { %14 = vsyncpa [#allocation9 + $0x1], 0 }
   0x7   :  { %15 = vsyncpa [#allocation4], 0 }
   0x8   :  { %17 = vsyncpa [#allocation4 + $0x1], 0  ;;  %s5896_s18 = smov 0   ;;  %s5898_s19 = smov 0  }
   0x9   :  { %s5900_s20 = smov 0   ;;  %s5902_s21 = smov 0  }
   0xa LB: > { %7633 = sst [smem:[#allocation16_spill]] %s5841_s18  ;;  %s5917_s22 = sadd.s32 4294967295, %s5853_s21   ;;  %s5853_s21 = sphi %s5902_s21, %s7664_s21   ;;  %s5849_s20 = sphi %s5900_s20, %s7668_s20   ;;  %s5845_s19 = sphi %s5898_s19, %s7667_s19   ;;  %s5841_s18 = sphi %s5896_s18, %s7666_s18  }
   0xb   : > { %s4108_s23 = sadd.s32 4294967294, %s5853_s21   ;;  %s5921_s24 = sadd.s32 1, %s5853_s21  }
   0xc   : > { %7634 = sst [smem:[#allocation17_spill]] %s5921_s24  ;;  %s93_s25 = sadd.s32 1, %s5849_s20 }
   0xd   : > { %s90_s26 = ssub.s32 %s5853_s21, %s5921_s24  ;;  %p100_p0 = scmp.ne.s32.totalorder %s5849_s20, %s5845_s19 }
   0xe   : > { %p91_p1 = scmp.eq.s32.totalorder %s90_s26, 0  ;;  %p101_p2 = scmp.eq.s32.totalorder %s5853_s21, 0 }
   0xf   : > { %p106_p3 = scmp.ne.s32.totalorder %s5845_s19, %s5841_s18  ;;  %p7617_p4 = scmp.eq.s32.totalorder %s5917_s22, 0 }
  0x10   : > { %s5933_s27 = scalar_select %p91_p1, %s5849_s20, %s93_s25  }
  0x11   : > { %p5935_p5 = por %p101_p2, %p100_p0  ;;  %p5941_p6 = por %p7617_p4, %p106_p3 }
  0x12   : > { %7635 = sst [smem:[#allocation18_spill]] %s5933_s27  ;;  %p156_p7 = scmp.eq.s32.totalorder %s5917_s22, 4 }
  0x13   : > { %s7636_s28 = scalar_select %p5935_p5, 1, 0 }
  0x14   : > { %s7637_s29 = scalar_select %p5941_p6, 1, 0 }
  0x15   : > { %p162_p8 = scmp.eq.s32.totalorder %s4108_s23, 4  ;;  %p4109_p9 = scmp.ge.s32.totalorder %s5853_s21, 1 }
  0x16   : > { %p169_p10 = scmp.lt.s32.totalorder %s5853_s21, 6  ;;  %p5948_p11 = por %p156_p7, %p100_p0 }
  0x17   : > { %p5952_p12 = por %p162_p8, %p106_p3  ;;  %s5855_s8 = smov [#allocation5]  }
  0x18   : > { %s7638_s30 = scalar_select %p5948_p11, 1, 0 }
  0x19   : > { %s7639_s6 = scalar_select %p5952_p12, 1, 0 }
  0x1a   : > { %p5956_p13 = pnand %p4109_p9, %p169_p10  ;;  %s192_s9 = sshll.u32 %s5855_s8, 4  ;;  %s193_s9 = int_to_ptr.vmem [resolvable:$true] %s192_s9 }
  0x1b   : > { %7640 = sst [smem:[#allocation19_spill]] %s7639_s6  ;;  %s217_s11 = sand.u32 1, %s5853_s21  }
  0x1c   : > { %s7641_s7 = scalar_select %p5956_p13, 1, 0 }
  0x1d   : > { %p5563_p1 = pneg %p5956_p13  ;;  %s7643_s1 = sld [smem:[#allocation20_spill]] }
  0x1f   : > { %p5964_p2 = pnand %p5563_p1, %p7617_p4 }
  0x21   : > { %s7642_s10 = scalar_select %p5964_p2, 1, 0 }
  0x22   : > { %p5978_p7 = pneg %p5964_p2 }
  0x23   : > { %s5635_s14 = scalar_lea.hbm %s7643_s1, 10240 }
  0x24   : > { %p5636_p3 = scmp.ne.s32.totalorder %s7643_s1, %s5635_s14  ;;  %p5642_p10 = scmp.lt.u32.totalorder %s5635_s14, %s7643_s1 }
  0x26   : > { %p5638_p8 = pnand %p5978_p7, %p5636_p3 }
  0x28   : > { %p5639_p9 = pneg %p5638_p8 }
  0x2a   : > { %p5644_p1 = pnand %p5642_p10, %p5639_p9 }
  0x2c   : > { %5647 = shalt.err (!%p5644_p1)
}
  0x2d   : > { %s5648_s26 = scalar_lea.vmem %s193_s9, 10240  ;;  %p5656_p11 = scmp.lt.s32.totalorder %s193_s9, %s193_s9 }
  0x2e   : > { %p5649_p4 = scmp.ne.s32.totalorder %s193_s9, %s5648_s26  ;;  %p5657_p6 = scmp.lt.s32.totalorder %s5648_s26, %s5648_s26 }
  0x30   : > { %p5651_p0 = pnand %p5649_p4, %p5978_p7  ;;  %p5658_p13 = por %p5657_p6, %p5656_p11 }
  0x32   : > { %p5652_p12 = pneg %p5651_p0 }
  0x34   : > { %p5659_p5 = pnand %p5658_p13, %p5652_p12 }
  0x36   : > { %5662 = shalt.err (!%p5659_p5)
}
  0x37   : > { %s5856_s8 = smov 2560   ;;  %s5857_s12 = smov 160  }
  0x38   : > { %5569 = dma.hbm_to_vmem [thread:$0]  (!%p5964_p2), %s7643_s1, 10240, %s193_s9, [#allocation6], %s5856_s8, %s5856_s8, %s5857_s12  }
  0x39   : > { %p7645_p4 = scmp.ne.s32.totalorder %s7636_s28, 0  ;;  %p7646_p0 = scmp.lt.s32.totalorder %s5853_s21, 5 }
  0x3a   : > { %s7623_s16 = sand.u32 1, %s5849_s20   ;;  %s4140_s25 = sshll.u32 %s5853_s21, 9 }
  0x3b   : > { %p6000_p6 = pnand %p7646_p0, %p7645_p4  ;;  %s5543_s23 = smul.u32 10240, %s7623_s16 }
  0x3c   : > { %s7648_s3 = sld [smem:[#allocation21_spill]]  ;;  %s6015_s12 = scalar_lea.sflag [#allocation9], %s217_s11 }
  0x3d   : > { %s7647_s15 = scalar_select %p6000_p6, 1, 0 }
  0x3e   : > { %s221_s28 = scalar_lea.vmem [#allocation8], %s5543_s23  ;;  %p7628_p11 = pneg %p6000_p6 }
  0x3f   : > { %s228_s9 = sshll.u32 %s221_s28, 4  ;;  %s6013_s9 = int_to_ptr.vmem [resolvable:$true] %s228_s9 }
  0x42   : > { %s6011_s24 = scalar_lea.hbm %s7648_s3, %s4140_s25  ;;  %s5668_s25 = scalar_lea.hbm %s7648_s3, 819200 }
  0x43   : > { %s5663_s13 = scalar_lea.hbm %s6011_s24, 163840  ;;  %p5669_p3 = scmp.lt.u32.totalorder %s6011_s24, %s7648_s3 }
  0x44   : > { %p5664_p5 = scmp.ne.s32.totalorder %s6011_s24, %s5663_s13  ;;  %p5670_p8 = scmp.lt.u32.totalorder %s5668_s25, %s5663_s13 }
  0x45   : > { %p5672_p10 = scmp.lt.u32.totalorder %s5663_s13, %s6011_s24 }
  0x46   : > { %p5666_p12 = pnand %p7628_p11, %p5664_p5  ;;  %p5671_p9 = por %p5670_p8, %p5669_p3 }
  0x48   : > { %p5667_p13 = pneg %p5666_p12  ;;  %p5673_p1 = por %p5672_p10, %p5671_p9 }
  0x4a   : > { %p5674_p4 = pnand %p5673_p1, %p5667_p13 }
  0x4c   : > { %5677 = shalt.err (!%p5674_p4)
}
  0x4d   : > { %s5678_s11 = scalar_lea.vmem %s6013_s9, 163840  ;;  %s5858_s23 = smov [#allocation8]  }
  0x4e   : > { %p5679_p0 = scmp.ne.s32.totalorder %s6013_s9, %s5678_s11  ;;  %s5683_s28 = sshll.u32 %s5858_s23, 4  ;;  %s5684_s28 = int_to_ptr.vmem [resolvable:$false] %s5683_s28 }
  0x4f   : > { %s5685_s16 = scalar_lea.vmem %s5684_s28, 327680  ;;  %p5686_p2 = scmp.lt.s32.totalorder %s6013_s9, %s5684_s28 }
  0x50   : > { %p5681_p5 = pnand %p5679_p0, %p7628_p11  ;;  %p5687_p3 = scmp.lt.s32.totalorder %s5685_s16, %s5678_s11 }
  0x52   : > { %p5682_p12 = pneg %p5681_p5  ;;  %p5688_p8 = por %p5687_p3, %p5686_p2 }
  0x54   : > { %p5689_p9 = pnand %p5688_p8, %p5682_p12 }
  0x56   : > { %5692 = shalt.err (!%p5689_p9)
}
  0x57   : > { %s5859_s13 = smov 512   ;;  %s5860_s27 = smov 32  }
  0x58   : > { %5576 = dma.hbm_to_vmem [thread:$0]  (!%p6000_p6), %s6011_s24, 163840, %s6013_s9, %s6015_s12, %s5856_s8, %s5859_s13, %s5860_s27  }
  0x59   : > { %s5861_s14 = smov [#allocation2]   ;;  %s5862_s26 = smov [#allocation7]  }
  0x5a   : > { %s182_s25 = sshll.u32 %s5861_s14, 4  ;;  %s206_s23 = sshll.u32 %s5862_s26, 4  ;;  %s183_s25 = int_to_ptr.vmem [resolvable:$true] %s182_s25  ;;  %s207_s23 = int_to_ptr.vmem [resolvable:$true] %s206_s23 }
  0x5b   : > { %s5693_s16 = scalar_lea.hbm %s7611_s0, 128 }
  0x5c   : > { %p5694_p2 = scmp.ne.s32.totalorder %s7611_s0, %s5693_s16  ;;  %p5700_p1 = scmp.lt.u32.totalorder %s5693_s16, %s7611_s0 }
  0x5e   : > { %p5696_p13 = pnand %p5694_p2, %p5978_p7 }
  0x60   : > { %p5697_p10 = pneg %p5696_p13 }
  0x62   : > { %p5702_p4 = pnand %p5700_p1, %p5697_p10 }
  0x64   : > { %5705 = shalt.err (!%p5702_p4)
}
  0x65   : > { %s5706_s24 = scalar_lea.vmem %s183_s25, 128  ;;  %p5714_p3 = scmp.lt.s32.totalorder %s183_s25, %s183_s25 }
  0x66   : > { %p5707_p0 = scmp.ne.s32.totalorder %s183_s25, %s5706_s24  ;;  %p5715_p8 = scmp.lt.s32.totalorder %s5706_s24, %s5706_s24 }
  0x68   : > { %p5709_p5 = pnand %p5707_p0, %p5978_p7  ;;  %p5716_p9 = por %p5715_p8, %p5714_p3 }
  0x6a   : > { %p5710_p12 = pneg %p5709_p5 }
  0x6c   : > { %p5717_p11 = pnand %p5716_p9, %p5710_p12 }
  0x6e   : > { %5720 = shalt.err (!%p5717_p11)
}
  0x6f   : > { %p7649_p2 = scmp.ne.s32.totalorder %s7642_s10, 0  ;;  %s7650_s18 = sand.u32 1, %s5849_s20  }
  0x70   : > { %s4116_s6 = sshll.u32 %s7650_s18, 2  ;;  %s5721_s13 = scalar_lea.hbm %s7613_s2, 320 }
  0x71   : > { %5566 = dma.hbm_to_vmem [thread:$0]  (!%p7649_p2), %s7611_s0, 128, %s183_s25, [#allocation3]  }
  0x72   : > { %p5722_p13 = scmp.ne.s32.totalorder %s7613_s2, %s5721_s13  ;;  %p5728_p1 = scmp.lt.u32.totalorder %s5721_s13, %s7613_s2 }
  0x74   : > { %p5724_p11 = pnand %p5722_p13, %p5978_p7 }
  0x76   : > { %p5725_p10 = pneg %p5724_p11 }
  0x78   : > { %p5730_p4 = pnand %p5728_p1, %p5725_p10 }
  0x7a   : > { %5733 = shalt.err (!%p5730_p4)
}
  0x7b   : > { %s5734_s25 = scalar_lea.vmem %s207_s23, 320  ;;  %p5742_p3 = scmp.lt.s32.totalorder %s207_s23, %s207_s23 }
  0x7c   : > { %p5735_p0 = scmp.ne.s32.totalorder %s207_s23, %s5734_s25  ;;  %p5743_p8 = scmp.lt.s32.totalorder %s5734_s25, %s5734_s25 }
  0x7e   : > { %p5737_p5 = pnand %p5735_p0, %p5978_p7  ;;  %p5744_p9 = por %p5743_p8, %p5742_p3 }
  0x80   : > { %p5738_p12 = pneg %p5737_p5 }
  0x82   : > { %p5745_p6 = pnand %p5744_p9, %p5738_p12 }
  0x84   : > { %5748 = shalt.err (!%p5745_p6)
}
  0x85   : > { %5572 = dma.hbm_to_vmem [thread:$0]  (!%p7649_p2), %s7613_s2, 320, %s207_s23, [#allocation6]  }
  0x86   : > { %s4141_s24 = sshll.u32 %s5853_s21, 6  ;;  %s242_s18 = scalar_lea.vmem [#allocation10], %s4116_s6 }
  0x87   : > { %s6086_s17 = scalar_lea.hbm %s7615_s4, %s4141_s24  ;;  %s250_s8 = sshll.u32 %s242_s18, 4  ;;  %s251_s8 = int_to_ptr.vmem [resolvable:$true] %s250_s8 }
  0x88   : > { %s5749_s10 = scalar_lea.hbm %s6086_s17, 64  ;;  %p7651_p6 = scmp.ne.s32.totalorder %s7647_s15, 0 }
  0x89   : > { %p5750_p7 = scmp.ne.s32.totalorder %s6086_s17, %s5749_s10  ;;  %s5754_s13 = scalar_lea.hbm %s7615_s4, 320 }
  0x8a   : > { %p7652_p13 = pneg %p7651_p6  ;;  %p5755_p2 = scmp.lt.u32.totalorder %s6086_s17, %s7615_s4 }
  0x8b   : > { %p5756_p1 = scmp.lt.u32.totalorder %s5754_s13, %s5749_s10  ;;  %p5758_p0 = scmp.lt.u32.totalorder %s5749_s10, %s6086_s17 }
  0x8c   : > { %p5752_p11 = pnand %p5750_p7, %p7652_p13 }
  0x8d   : > { %p5757_p4 = por %p5756_p1, %p5755_p2 }
  0x8e   : > { %p5753_p10 = pneg %p5752_p11 }
  0x8f   : > { %p5759_p5 = por %p5758_p0, %p5757_p4 }
  0x91   : > { %p5760_p12 = pnand %p5759_p5, %p5753_p10 }
  0x93   : > { %5763 = shalt.err (!%p5760_p12)
}
  0x94   : > { %s5764_s6 = scalar_lea.vmem %s251_s8, 64  ;;  %p7653_p8 = pmov %p7652_p13 }
  0x95   : > { %p5765_p3 = scmp.ne.s32.totalorder %s251_s8, %s5764_s6  ;;  %s5863_s26 = smov [#allocation10]  }
  0x96   : > { %s5769_s28 = sshll.u32 %s5863_s26, 4  ;;  %s5770_s28 = int_to_ptr.vmem [resolvable:$false] %s5769_s28 }
  0x97   : > { %p5767_p9 = pnand %p5765_p3, %p7653_p8  ;;  %s5771_s25 = scalar_lea.vmem %s5770_s28, 128 }
  0x98   : > { %p5772_p13 = scmp.lt.s32.totalorder %s251_s8, %s5770_s28  ;;  %p5773_p11 = scmp.lt.s32.totalorder %s5771_s25, %s5764_s6 }
  0x99   : > { %p5768_p7 = pneg %p5767_p9 }
  0x9a   : > { %p5774_p1 = por %p5773_p11, %p5772_p13 }
  0x9c   : > { %p5775_p2 = pnand %p5774_p1, %p5768_p7 }
  0x9e   : > { %5778 = shalt.err (!%p5775_p2)
}
  0x9f   : > { %5579 = dma.hbm_to_vmem [thread:$0]  (!%p7651_p6), %s6086_s17, 64, %s251_s8, %s6015_s12  }
  0xa0   : > { %p7654_p10 = scmp.ne.s32.totalorder %s7641_s7, 0 }
  0xa1   : > { %p7655_p4 = scmp.eq.s32.totalorder (!%p7654_p10), %s5917_s22, 0 }
  0xa2   : > { %259 = sbr.rel (%p7654_p10) target bundleno = 1217 (0x4c1), region = 40 }
  0xa9   : > { %5824 = dma.done.wait (%p7655_p4), [#allocation3], 128   ;;  %p7656_p0 = pmov %p7655_p4 }
  0xab   : > { %5826 = vsyncadd (%p7656_p0), [#allocation3], 4294967168  ;;  %p7657_p5 = pmov %p7656_p0 }
  0xac   : > { %p7658_p12 = pmov %p7656_p0 }
  0xad   : > { %5828 = dma.done.wait (%p7657_p5), [#allocation6], 10560  }
  0xae   : > { %5830 = vsyncadd (%p7658_p12), [#allocation6], 4294956736  ;;  %s273_s15 = sand.u32 1, %s5917_s22   ;;  %s6120_s12 = sand.u32 1, %s5845_s19  }
  0xaf   : > { %s5544_s7 = smul.u32 10240, %s6120_s12  ;;  %s274_s11 = scalar_lea.sflag [#allocation9], %s273_s15 }
  0xb0   : > { %p7659_p6 = scmp.ne.s32.totalorder %s7637_s29, 0 }
  0xb1   : > { %s6123_s16 = scalar_lea.vmem [#allocation8], %s5544_s7 }
  0xb2   : > { %5832 = dma.done.wait (%p7659_p6), %s274_s11, 163904  }
  0xb3   : > { %5834 = vsyncadd (%p7659_p6), %s274_s11, 4294803392  ;;  %v5864_v0 = vmov 0.0   ;;  %v322_v1 = vld [vmem:[#allocation5 + $0x8] sm:$0xff]  ;;  %v321_v3 = vld [vmem:[#allocation5] sm:$0xff]  ;;  %vm508_vm0 = vcmask 261120   ;;  %s4123_s29 = sshll.u32 %s6120_s12, 2 }
  0xb4   : > { %576 = vmatprep.mubr.f32.mxu0 %v5864_v0  ;;  %647 = vmatprep.mubr.f32.mxu1 %v5864_v0  ;;  %v342_v2 = vld [vmem:[#allocation5 + $0xa8] sm:$0xff]  ;;  %v341_v5 = vld [vmem:[#allocation5 + $0xa0] sm:$0xff]  ;;  %v324_v12 = vld [vmem:[#allocation5 + $0x18] sm:$0xff]  ;;  %s286_s24 = scalar_lea.vmem [#allocation10], %s4123_s29  ;;  %s4124_s1 = sshll.u32 %s6120_s12, 5 }
  0xb5   : > { %v4143_v4 = vpack.c.bf16 %v342_v2, %v322_v1  ;;  %v362_v6 = vld [vmem:[#allocation5 + $0x148] sm:$0xff]  ;;  %v4145_v8 = vpack.c.bf16 %v341_v5, %v321_v3  ;;  %v361_v10 = vld [vmem:[#allocation5 + $0x140] sm:$0xff]  ;;  %v344_v13 = vld [vmem:[#allocation5 + $0xb8] sm:$0xff]  ;;  %s4142_s3 = sshll.u32 %s5917_s22, 9  ;;  %s317_s17 = scalar_lea.vmem [#allocation11], %s4124_s1 }
  0xb6   : > { %v382_v7 = vld [vmem:[#allocation5 + $0x1e8] sm:$0xff]  ;;  %v381_v11 = vld [vmem:[#allocation5 + $0x1e0] sm:$0xff]  ;;  %v323_v14 = vld [vmem:[#allocation5 + $0x10] sm:$0xff]  ;;  %v4151_v16 = vpack.c.bf16 %v344_v13, %v324_v12  ;;  %s3987_s18 = sshll.u32 %s317_s17, 4  ;;  %s7568_s23 = scalar_lea.hbm %s7616_s5, %s4142_s3  ;;  %s7570_s18 = int_to_ptr.vmem [resolvable:$true] %s3987_s18 }
  0xb7   : > { %v4147_v9 = vpack.c.bf16 %v382_v7, %v362_v6  ;;  %4144 = vmatprep.subr.bf16.mxu0 %v4143_v4  ;;  %v4149_v15 = vpack.c.bf16 %v381_v11, %v361_v10  ;;  %v343_v17 = vld [vmem:[#allocation5 + $0xb0] sm:$0xff]  ;;  %v364_v18 = vld [vmem:[#allocation5 + $0x158] sm:$0xff]  ;;  %v326_v24 = vld [vmem:[#allocation5 + $0x28] sm:$0xff]  ;;  %s3973_s22 = scalar_lea.sflag [#allocation4], %s6120_s12  ;;  %s5779_s9 = scalar_lea.vmem %s7570_s18, 512 }
  0xb8   : > { %4146 = vmatpush1.bf16.msra.mxu0 %v4145_v8  ;;  %v384_v19 = vld [vmem:[#allocation5 + $0x1f8] sm:$0xff]  ;;  %v4153_v20 = vpack.c.bf16 %v343_v17, %v323_v14  ;;  %v363_v22 = vld [vmem:[#allocation5 + $0x150] sm:$0xff]  ;;  %4152 = vmatprep.subr.bf16.mxu1 %v4151_v16  ;;  %v346_v26 = vld [vmem:[#allocation5 + $0xc8] sm:$0xff]  ;;  %p5780_p3 = scmp.ne.s32.totalorder %s7570_s18, %s5779_s9  ;;  %p7660_p8 = scmp.ne.s32.totalorder %s7638_s30, 0 }
  0xb9   : > { %4148 = vmatprep.subr.bf16.mxu0 %v4147_v9  ;;  %v4155_v21 = vpack.c.bf16 %v384_v19, %v364_v18  ;;  %v383_v23 = vld [vmem:[#allocation5 + $0x1f0] sm:$0xff]  ;;  %v6131_v25 = vld [vmem:[#allocation2] sm:$0xff]  ;;  %v325_v27 = vld [vmem:[#allocation5 + $0x20] sm:$0xff]  ;;  %v4159_v30 = vpack.c.bf16 %v346_v26, %v326_v24  ;;  %s5865_s13 = smov [#allocation11]  }
  0xba   : > { %v345_v28 = vld [vmem:[#allocation5 + $0xc0] sm:$0xff]  ;;  %4154 = vmatpush1.bf16.msra.mxu1 %v4153_v20  ;;  %v4157_v29 = vpack.c.bf16 %v383_v23, %v363_v22  ;;  %v328_v31 = vld [vmem:[#allocation5 + $0x38] sm:$0xff]  ;;  %v327_v33 = vld [vmem:[#allocation5 + $0x30] sm:$0xff]  ;;  %p5781_p9 = pnand %p5780_p3, %p7660_p8  ;;  %s5783_s27 = sshll.u32 %s5865_s13, 4  ;;  %s5784_s27 = int_to_ptr.vmem [resolvable:$false] %s5783_s27 }
  0xbb   : > { %v348_v32 = vld [vmem:[#allocation5 + $0xd8] sm:$0xff]  ;;  %4156 = vmatprep.subr.bf16.mxu1 %v4155_v21  ;;  %v4161_v34 = vpack.c.bf16 %v345_v28, %v325_v27  ;;  %v347_v36 = vld [vmem:[#allocation5 + $0xd0] sm:$0xff]  ;;  %v366_v37 = vld [vmem:[#allocation5 + $0x168] sm:$0xff]  ;;  %s5785_s14 = scalar_lea.vmem %s5784_s27, 1024  ;;  %p5786_p13 = scmp.lt.s32.totalorder %s7570_s18, %s5784_s27 }
  0xbc   : > { %4150 = vmatpush1.bf16.msra.mxu0 %v4149_v15  ;;  %v4167_v35 = vpack.c.bf16 %v348_v32, %v328_v31  ;;  %v386_v38 = vld [vmem:[#allocation5 + $0x208] sm:$0xff]  ;;  %v365_v40 = vld [vmem:[#allocation5 + $0x160] sm:$0xff]  ;;  %v368_v42 = vld [vmem:[#allocation5 + $0x178] sm:$0xff]  ;;  %v4169_v44 = vpack.c.bf16 %v347_v36, %v327_v33  ;;  %p5782_p7 = pneg %p5781_p9  ;;  %p5787_p11 = scmp.lt.s32.totalorder %s5785_s14, %s5779_s9 }
  0xbd   : > { %4160 = vmatprep.subr.bf16.mxu0 %v4159_v30  ;;  %v4163_v39 = vpack.c.bf16 %v386_v38, %v366_v37  ;;  %v385_v41 = vld [vmem:[#allocation5 + $0x200] sm:$0xff]  ;;  %v388_v43 = vld [vmem:[#allocation5 + $0x218] sm:$0xff]  ;;  %v330_v45 = vld [vmem:[#allocation5 + $0x48] sm:$0xff] }
  0xbe   : > { %4158 = vmatpush1.bf16.msra.mxu1 %v4157_v29  ;;  %v350_v46 = vld [vmem:[#allocation5 + $0xe8] sm:$0xff]  ;;  %v4165_v47 = vpack.c.bf16 %v385_v41, %v365_v40  ;;  %v4171_v48 = vpack.c.bf16 %v388_v43, %v368_v42  ;;  %v367_v49 = vld [vmem:[#allocation5 + $0x170] sm:$0xff]  ;;  %v332_v51 = vld [vmem:[#allocation5 + $0x58] sm:$0xff]  ;;  %p5788_p1 = por %p5787_p11, %p5786_p13 }
  0xbf   : > { %4125 = vmatmul.mubr.msk.f32.vlgmr.msra.gmra.mrb[0].mxu0 %vm508_vm0, %v6131_v25  ;;  %4168 = vmatprep.subr.bf16.mxu1 %v4167_v35  ;;  %v387_v50 = vld [vmem:[#allocation5 + $0x210] sm:$0xff]  ;;  %v4175_v52 = vpack.c.bf16 %v350_v46, %v330_v45  ;;  %v352_v53 = vld [vmem:[#allocation5 + $0xf8] sm:$0xff]  ;;  %v329_v54 = vld [vmem:[#allocation5 + $0x40] sm:$0xff] }
  0xc0   : > { %4162 = vmatpush1.bf16.msra.mxu0 %v4161_v34  ;;  %718 = vmatprep.mubr.f32.mxu0 %v5864_v0  ;;  %v349_v55 = vld [vmem:[#allocation5 + $0xe0] sm:$0xff]  ;;  %v370_v56 = vld [vmem:[#allocation5 + $0x188] sm:$0xff]  ;;  %v4173_v58 = vpack.c.bf16 %v387_v50, %v367_v49  ;;  %v4183_v59 = vpack.c.bf16 %v352_v53, %v332_v51  ;;  %v331_v61 = vld [vmem:[#allocation5 + $0x50] sm:$0xff]  ;;  %p5789_p2 = pnand %p5788_p1, %p5782_p7 }
  0xc1   : > { %4164 = vmatprep.subr.bf16.mxu0 %v4163_v39  ;;  %4126 = vmatmul.mubr.msk.f32.vlgmr.msra.gmra.mrb[0].mxu1 %vm508_vm0, %v6131_v25  ;;  %v390_v57 = vld [vmem:[#allocation5 + $0x228] sm:$0xff]  ;;  %v4177_v60 = vpack.c.bf16 %v349_v55, %v329_v54  ;;  %v351_v62 = vld [vmem:[#allocation5 + $0xf0] sm:$0xff]  ;;  %v372_v63 = vld [vmem:[#allocation5 + $0x198] sm:$0xff] }
  0xc2   : > { %4170 = vmatpush1.bf16.msra.mxu1 %v4169_v44  ;;  %789 = vmatprep.mubr.f32.mxu1 %v5864_v0  ;;  %v4179_v1 = vpack.c.bf16 %v390_v57, %v370_v56  ;;  %v392_v2 = vld [vmem:[#allocation5 + $0x238] sm:$0xff]  ;;  %v369_v3 = vld [vmem:[#allocation5 + $0x180] sm:$0xff]  ;;  %v334_v5 = vld [vmem:[#allocation5 + $0x68] sm:$0xff]  ;;  %v4185_v7 = vpack.c.bf16 %v351_v62, %v331_v61 }
  0xc3   : > { %4172 = vmatprep.subr.bf16.mxu1 %v4171_v48  ;;  %v389_v4 = vld [vmem:[#allocation5 + $0x220] sm:$0xff]  ;;  %v354_v6 = vld [vmem:[#allocation5 + $0x108] sm:$0xff]  ;;  %v4187_v8 = vpack.c.bf16 %v392_v2, %v372_v63  ;;  %v371_v10 = vld [vmem:[#allocation5 + $0x190] sm:$0xff] }
  0xc4   : > { %4166 = vmatpush1.bf16.msra.mxu0 %v4165_v47  ;;  %v4181_v9 = vpack.c.bf16 %v389_v4, %v369_v3  ;;  %v391_v11 = vld [vmem:[#allocation5 + $0x230] sm:$0xff]  ;;  %v336_v12 = vld [vmem:[#allocation5 + $0x78] sm:$0xff]  ;;  %v4191_v13 = vpack.c.bf16 %v354_v6, %v334_v5  ;;  %v333_v15 = vld [vmem:[#allocation5 + $0x60] sm:$0xff] }
  0xc5   : > { %4176 = vmatprep.subr.bf16.mxu0 %v4175_v52  ;;  %v356_v14 = vld [vmem:[#allocation5 + $0x118] sm:$0xff]  ;;  %v353_v16 = vld [vmem:[#allocation5 + $0x100] sm:$0xff]  ;;  %v374_v17 = vld [vmem:[#allocation5 + $0x1a8] sm:$0xff]  ;;  %v4189_v19 = vpack.c.bf16 %v391_v11, %v371_v10 }
  0xc6   : > { %4174 = vmatpush1.bf16.msra.mxu1 %v4173_v58  ;;  %v394_v18 = vld [vmem:[#allocation5 + $0x248] sm:$0xff]  ;;  %v4199_v20 = vpack.c.bf16 %v356_v14, %v336_v12  ;;  %v4193_v21 = vpack.c.bf16 %v353_v16, %v333_v15  ;;  %v335_v22 = vld [vmem:[#allocation5 + $0x70] sm:$0xff]  ;;  %v376_v24 = vld [vmem:[#allocation5 + $0x1b8] sm:$0xff] }
  0xc7   : > { %4127 = vmatmul.mubr.msk.f32.vlgmr.msra.gmra.mrb[2].mxu0 %vm508_vm0, %v6131_v25  ;;  %4184 = vmatprep.subr.bf16.mxu1 %v4183_v59  ;;  %v355_v23 = vld [vmem:[#allocation5 + $0x110] sm:$0xff]  ;;  %v4195_v26 = vpack.c.bf16 %v394_v18, %v374_v17  ;;  %v396_v27 = vld [vmem:[#allocation5 + $0x258] sm:$0xff]  ;;  %v373_v28 = vld [vmem:[#allocation5 + $0x1a0] sm:$0xff] }
  0xc8   : > { %4178 = vmatpush1.bf16.msra.mxu0 %v4177_v60  ;;  %860 = vmatprep.mubr.f32.mxu0 %v5864_v0  ;;  %v393_v29 = vld [vmem:[#allocation5 + $0x240] sm:$0xff]  ;;  %v338_v30 = vld [vmem:[#allocation5 + $0x88] sm:$0xff]  ;;  %v4201_v32 = vpack.c.bf16 %v355_v23, %v335_v22  ;;  %v4203_v33 = vpack.c.bf16 %v396_v27, %v376_v24  ;;  %v375_v35 = vld [vmem:[#allocation5 + $0x1b0] sm:$0xff] }
  0xc9   : > { %4180 = vmatprep.subr.bf16.mxu0 %v4179_v1  ;;  %4128 = vmatmul.mubr.msk.f32.vlgmr.msra.gmra.mrb[2].mxu1 %vm508_vm0, %v6131_v25  ;;  %v358_v31 = vld [vmem:[#allocation5 + $0x128] sm:$0xff]  ;;  %v4197_v34 = vpack.c.bf16 %v393_v29, %v373_v28  ;;  %v395_v36 = vld [vmem:[#allocation5 + $0x250] sm:$0xff]  ;;  %v340_v37 = vld [vmem:[#allocation5 + $0x98] sm:$0xff] }
  0xca   : > { %4186 = vmatpush1.bf16.msra.mxu1 %v4185_v7  ;;  %931 = vmatprep.mubr.f32.mxu1 %v5864_v0  ;;  %v4207_v38 = vpack.c.bf16 %v358_v31, %v338_v30  ;;  %v360_v39 = vld [vmem:[#allocation5 + $0x138] sm:$0xff]  ;;  %v337_v40 = vld [vmem:[#allocation5 + $0x80] sm:$0xff]  ;;  %v378_v42 = vld [vmem:[#allocation5 + $0x1c8] sm:$0xff]  ;;  %v4205_v44 = vpack.c.bf16 %v395_v36, %v375_v35 }
  0xcb   : > { %4188 = vmatprep.subr.bf16.mxu1 %v4187_v8  ;;  %v357_v41 = vld [vmem:[#allocation5 + $0x120] sm:$0xff]  ;;  %v398_v43 = vld [vmem:[#allocation5 + $0x268] sm:$0xff]  ;;  %v4215_v45 = vpack.c.bf16 %v360_v39, %v340_v37  ;;  %v339_v47 = vld [vmem:[#allocation5 + $0x90] sm:$0xff] }
  0xcc   : > { %4182 = vmatpush1.bf16.msra.mxu0 %v4181_v9  ;;  %v4209_v46 = vpack.c.bf16 %v357_v41, %v337_v40  ;;  %v359_v48 = vld [vmem:[#allocation5 + $0x130] sm:$0xff]  ;;  %v380_v49 = vld [vmem:[#allocation5 + $0x1d8] sm:$0xff]  ;;  %v4211_v50 = vpack.c.bf16 %v398_v43, %v378_v42  ;;  %v377_v52 = vld [vmem:[#allocation5 + $0x1c0] sm:$0xff] }
  0xcd   : > { %4192 = vmatprep.subr.bf16.mxu0 %v4191_v13  ;;  %v400_v51 = vld [vmem:[#allocation5 + $0x278] sm:$0xff]  ;;  %v397_v53 = vld [vmem:[#allocation5 + $0x260] sm:$0xff]  ;;  %v4217_v56 = vpack.c.bf16 %v359_v48, %v339_v47  ;;  %v379_v59 = vld [vmem:[#allocation5 + $0x1d0] sm:$0xff] }
  0xce   : > { %4190 = vmatpush1.bf16.msra.mxu1 %v4189_v19  ;;  %v1243_v54 = vld [vmem:[%s6123_s16 + $0x8] sm:$0xff]  ;;  %v4219_v57 = vpack.c.bf16 %v400_v51, %v380_v49  ;;  %v4213_v58 = vpack.c.bf16 %v397_v53, %v377_v52  ;;  %v399_v60 = vld [vmem:[#allocation5 + $0x270] sm:$0xff]  ;;  %v1244_v8 = vld [vmem:[%s6123_s16 + $0x10] sm:$0xff] }
  0xcf   : > { %4129 = vmatmul.mubr.msk.f32.vlgmr.msra.gmra.mrb[4].mxu0 %vm508_vm0, %v6131_v25  ;;  %4200 = vmatprep.subr.bf16.mxu1 %v4199_v20  ;;  %v1247_v55 = vld [vmem:[%s6123_s16 + $0x28] sm:$0xff]  ;;  %v1245_v61 = vld [vmem:[%s6123_s16 + $0x18] sm:$0xff]  ;;  %v1242_v1 = vld [vmem:[%s6123_s16] sm:$0xff]  ;;  %v4221_v5 = vpack.c.bf16 %v399_v60, %v379_v59 }
  0xd0   : > { %4194 = vmatpush1.bf16.msra.mxu0 %v4193_v21  ;;  %1002 = vmatprep.mubr.f32.mxu0 %v5864_v0  ;;  %v4223_v62 = vpack.c.bf16 %v1247_v55, %v1243_v54  ;;  %v1249_v63 = vld [vmem:[%s6123_s16 + $0x38] sm:$0xff]  ;;  %v1246_v2 = vld [vmem:[%s6123_s16 + $0x20] sm:$0xff]  ;;  %v1251_v3 = vld [vmem:[%s6123_s16 + $0x48] sm:$0xff] }
  0xd1   : > { %4196 = vmatprep.subr.bf16.mxu0 %v4195_v26  ;;  %4130 = vmatmul.mubr.msk.f32.vlgmr.msra.gmra.mrb[4].mxu1 %vm508_vm0, %v6131_v25  ;;  %v1255_v4 = vld [vmem:[%s6123_s16 + $0x68] sm:$0xff]  ;;  %v4863_v6 = vpack.c.bf16 %v1249_v63, %v1245_v61  ;;  %v4225_v7 = vpack.c.bf16 %v1246_v2, %v1242_v1  ;;  %v1248_v9 = vld [vmem:[%s6123_s16 + $0x30] sm:$0xff]  ;;  %v1253_v10 = vld [vmem:[%s6123_s16 + $0x58] sm:$0xff] }
  0xd2   : > { %4202 = vmatpush1.bf16.msra.mxu1 %v4201_v32  ;;  %1073 = vmatprep.mubr.f32.mxu1 %v5864_v0  ;;  %v4227_v11 = vpack.c.bf16 %v1255_v4, %v1251_v3  ;;  %v1257_v12 = vld [vmem:[%s6123_s16 + $0x78] sm:$0xff]  ;;  %v1250_v13 = vld [vmem:[%s6123_s16 + $0x40] sm:$0xff]  ;;  %v1259_v15 = vld [vmem:[%s6123_s16 + $0x88] sm:$0xff]  ;;  %v4865_v16 = vpack.c.bf16 %v1248_v9, %v1244_v8 }
  0xd3   : > { %4204 = vmatprep.subr.bf16.mxu1 %v4203_v33  ;;  %v1254_v14 = vld [vmem:[%s6123_s16 + $0x60] sm:$0xff]  ;;  %v4867_v17 = vpack.c.bf16 %v1257_v12, %v1253_v10  ;;  %v1252_v19 = vld [vmem:[%s6123_s16 + $0x50] sm:$0xff]  ;;  %v1261_v21 = vld [vmem:[%s6123_s16 + $0x98] sm:$0xff] }
  0xd4   : > { %4198 = vmatpush1.bf16.msra.mxu0 %v4197_v34  ;;  %v4229_v18 = vpack.c.bf16 %v1254_v14, %v1250_v13  ;;  %v1256_v20 = vld [vmem:[%s6123_s16 + $0x70] sm:$0xff]  ;;  %v1265_v23 = vld [vmem:[%s6123_s16 + $0xb8] sm:$0xff]  ;;  %v1258_v24 = vld [vmem:[%s6123_s16 + $0x80] sm:$0xff] }
  0xd5   : > { %4208 = vmatprep.subr.bf16.mxu0 %v4207_v38  ;;  %v1262_v26 = vld [vmem:[%s6123_s16 + $0xa0] sm:$0xff]  ;;  %v1267_v27 = vld [vmem:[%s6123_s16 + $0xc8] sm:$0xff]  ;;  %v4869_v29 = vpack.c.bf16 %v1256_v20, %v1252_v19  ;;  %v4871_v30 = vpack.c.bf16 %v1265_v23, %v1261_v21  ;;  %v1260_v32 = vld [vmem:[%s6123_s16 + $0x90] sm:$0xff] }
  0xd6   : > { %4206 = vmatpush1.bf16.msra.mxu1 %v4205_v44  ;;  %v1271_v28 = vld [vmem:[%s6123_s16 + $0xe8] sm:$0xff]  ;;  %v4233_v31 = vpack.c.bf16 %v1262_v26, %v1258_v24  ;;  %v1264_v33 = vld [vmem:[%s6123_s16 + $0xb0] sm:$0xff]  ;;  %v1269_v34 = vld [vmem:[%s6123_s16 + $0xd8] sm:$0xff] }
  0xd7   : > { %4131 = vmatmul.mubr.msk.f32.vlgmr.msra.gmra.mrb[6].mxu0 %vm508_vm0, %v6131_v25  ;;  %4216 = vmatprep.subr.bf16.mxu1 %v4215_v45  ;;  %v4235_v35 = vpack.c.bf16 %v1271_v28, %v1267_v27  ;;  %v1266_v36 = vld [vmem:[%s6123_s16 + $0xc0] sm:$0xff]  ;;  %v1275_v38 = vld [vmem:[%s6123_s16 + $0x108] sm:$0xff]  ;;  %v4873_v40 = vpack.c.bf16 %v1264_v33, %v1260_v32  ;;  %v1268_v43 = vld [vmem:[%s6123_s16 + $0xd0] sm:$0xff] }
  0xd8   : > { %4210 = vmatpush1.bf16.msra.mxu0 %v4209_v46  ;;  %1144 = vmatprep.mubr.f32.mxu0 %v5864_v0  ;;  %v1270_v37 = vld [vmem:[%s6123_s16 + $0xe0] sm:$0xff]  ;;  %v1279_v39 = vld [vmem:[%s6123_s16 + $0x128] sm:$0xff]  ;;  %v1272_v44 = vld [vmem:[%s6123_s16 + $0xf0] sm:$0xff] }
  0xd9   : > { %4212 = vmatprep.subr.bf16.mxu0 %v4211_v50  ;;  %4132 = vmatmul.mubr.msk.f32.vlgmr.msra.gmra.mrb[6].mxu1 %vm508_vm0, %v6131_v25  ;;  %v4237_v42 = vpack.c.bf16 %v1270_v37, %v1266_v36  ;;  %v1277_v45 = vld [vmem:[%s6123_s16 + $0x118] sm:$0xff]  ;;  %v4239_v46 = vpack.c.bf16 %v1279_v39, %v1275_v38  ;;  %v1274_v48 = vld [vmem:[%s6123_s16 + $0x100] sm:$0xff]  ;;  %v1283_v50 = vld [vmem:[%s6123_s16 + $0x148] sm:$0xff]  ;;  %v4877_v52 = vpack.c.bf16 %v1272_v44, %v1268_v43 }
  0xda   : > { %4218 = vmatpush1.bf16.msra.mxu1 %v4217_v56  ;;  %1215 = vmatprep.mubr.f32.mxu1 %v5864_v0  ;;  %v1263_v0 = vld [vmem:[%s6123_s16 + $0xa8] sm:$0xff]  ;;  %v1281_v47 = vld [vmem:[%s6123_s16 + $0x138] sm:$0xff]  ;;  %v1278_v49 = vld [vmem:[%s6123_s16 + $0x120] sm:$0xff] }
  0xdb   : > { %4220 = vmatprep.subr.bf16.mxu1 %v4219_v57  ;;  %v4231_v22 = vpack.c.bf16 %v1263_v0, %v1259_v15  ;;  %v1287_v51 = vld [vmem:[%s6123_s16 + $0x168] sm:$0xff]  ;;  %v4879_v53 = vpack.c.bf16 %v1281_v47, %v1277_v45  ;;  %v4241_v54 = vpack.c.bf16 %v1278_v49, %v1274_v48  ;;  %v1276_v55 = vld [vmem:[%s6123_s16 + $0x110] sm:$0xff]  ;;  %v1285_v57 = vld [vmem:[%s6123_s16 + $0x158] sm:$0xff] }
  0xdc   : > { %4214 = vmatpush1.bf16.msra.mxu0 %v4213_v58  ;;  %v1280_v56 = vld [vmem:[%s6123_s16 + $0x130] sm:$0xff]  ;;  %v4243_v58 = vpack.c.bf16 %v1287_v51, %v1283_v50  ;;  %v1289_v59 = vld [vmem:[%s6123_s16 + $0x178] sm:$0xff]  ;;  %v1282_v60 = vld [vmem:[%s6123_s16 + $0x140] sm:$0xff] }
  0xdd   : > { %4224 = vmatprep.subr.bf16.mxu0 %v4223_v62  ;;  %v1286_v61 = vld [vmem:[%s6123_s16 + $0x160] sm:$0xff]  ;;  %v1291_v62 = vld [vmem:[%s6123_s16 + $0x188] sm:$0xff]  ;;  %v4881_v1 = vpack.c.bf16 %v1280_v56, %v1276_v55  ;;  %v4883_v2 = vpack.c.bf16 %v1289_v59, %v1285_v57  ;;  %v1284_v4 = vld [vmem:[%s6123_s16 + $0x150] sm:$0xff] }
  0xde   : > { %4222 = vmatpush1.bf16.msra.mxu1 %v4221_v5  ;;  %v1295_v63 = vld [vmem:[%s6123_s16 + $0x1a8] sm:$0xff]  ;;  %v4245_v3 = vpack.c.bf16 %v1286_v61, %v1282_v60  ;;  %v1288_v5 = vld [vmem:[%s6123_s16 + $0x170] sm:$0xff]  ;;  %v1297_v8 = vld [vmem:[%s6123_s16 + $0x1b8] sm:$0xff] }
  0xdf   : > { %4133 = vmatmul.mubr.msk.f32.vlgmr.msra.gmra.mrb[8].mxu0 %vm508_vm0, %v6131_v25  ;;  %4864 = vmatprep.subr.bf16.mxu1 %v4863_v6  ;;  %v1293_v6 = vld [vmem:[%s6123_s16 + $0x198] sm:$0xff]  ;;  %v1290_v9 = vld [vmem:[%s6123_s16 + $0x180] sm:$0xff]  ;;  %v1303_v12 = vld [vmem:[%s6123_s16 + $0x1e8] sm:$0xff]  ;;  %v4885_v13 = vpack.c.bf16 %v1288_v5, %v1284_v4 }
  0xe0   : > { %4226 = vmatpush1.bf16.msra.mxu0 %v4225_v7  ;;  %v4247_v7 = vpack.c.bf16 %v1295_v63, %v1291_v62  ;;  %v1294_v10 = vld [vmem:[%s6123_s16 + $0x1a0] sm:$0xff]  ;;  %v4887_v14 = vpack.c.bf16 %v1297_v8, %v1293_v6  ;;  %v1292_v0 = vld [vmem:[%s6123_s16 + $0x190] sm:$0xff]  ;;  %v1305_v19 = vld [vmem:[%s6123_s16 + $0x1f8] sm:$0xff] }
  0xe1   : > { %4228 = vmatprep.subr.bf16.mxu0 %v4227_v11  ;;  %4134 = vmatmul.mubr.msk.f32.vlgmr.msra.gmra.mrb[8].mxu1 %vm508_vm0, %v6131_v25  ;;  %v1273_v25 = vld [vmem:[%s6123_s16 + $0xf8] sm:$0xff]  ;;  %v1299_v11 = vld [vmem:[%s6123_s16 + $0x1c8] sm:$0xff]  ;;  %v4249_v15 = vpack.c.bf16 %v1294_v10, %v1290_v9  ;;  %v1298_v20 = vld [vmem:[%s6123_s16 + $0x1c0] sm:$0xff] }
  0xe2   : > { %4866 = vmatpush1.bf16.msra.mxu1 %v4865_v16  ;;  %v4875_v41 = vpack.c.bf16 %v1273_v25, %v1269_v34  ;;  %v1296_v16 = vld [vmem:[%s6123_s16 + $0x1b0] sm:$0xff]  ;;  %v1302_v21 = vld [vmem:[%s6123_s16 + $0x1e0] sm:$0xff]  ;;  %v1311_v23 = vld [vmem:[%s6123_s16 + $0x228] sm:$0xff] }
  0xe3   : > { %4868 = vmatprep.subr.bf16.mxu1 %v4867_v17  ;;  %v1301_v17 = vld [vmem:[%s6123_s16 + $0x1d8] sm:$0xff]  ;;  %v4889_v24 = vpack.c.bf16 %v1296_v16, %v1292_v0  ;;  %v4253_v27 = vpack.c.bf16 %v1302_v21, %v1298_v20  ;;  %v1300_v28 = vld [vmem:[%s6123_s16 + $0x1d0] sm:$0xff]  ;;  %v1306_v33 = vld [vmem:[%s6123_s16 + $0x200] sm:$0xff] }
  0xe4   : > { %4230 = vmatpush1.bf16.msra.mxu0 %v4229_v18  ;;  %v4251_v18 = vpack.c.bf16 %v1303_v12, %v1299_v11  ;;  %v4891_v26 = vpack.c.bf16 %v1305_v19, %v1301_v17  ;;  %v1313_v32 = vld [vmem:[%s6123_s16 + $0x238] sm:$0xff]  ;;  %v1310_v34 = vld [vmem:[%s6123_s16 + $0x220] sm:$0xff]  ;;  %v1319_v25 = vld [vmem:[%s6123_s16 + $0x268] sm:$0xff] }
  0xe5   : > { %4232 = vmatprep.subr.bf16.mxu0 %v4231_v22  ;;  %v1307_v22 = vld [vmem:[%s6123_s16 + $0x208] sm:$0xff]  ;;  %v4257_v38 = vpack.c.bf16 %v1310_v34, %v1306_v33  ;;  %v1308_v39 = vld [vmem:[%s6123_s16 + $0x210] sm:$0xff]  ;;  %v1321_v43 = vld [vmem:[%s6123_s16 + $0x278] sm:$0xff] }
  0xe6   : > { %4870 = vmatpush1.bf16.msra.mxu1 %v4869_v29  ;;  %v1304_v29 = vld [vmem:[%s6123_s16 + $0x1f0] sm:$0xff]  ;;  %v1314_v44 = vld [vmem:[%s6123_s16 + $0x240] sm:$0xff]  ;;  %v1327_v47 = vld [vmem:[%s6123_s16 + $0x2a8] sm:$0xff] }
  0xe7   : > { %4872 = vmatprep.subr.bf16.mxu1 %v4871_v30  ;;  %v1309_v30 = vld [vmem:[%s6123_s16 + $0x218] sm:$0xff]  ;;  %v4893_v36 = vpack.c.bf16 %v1304_v29, %v1300_v28  ;;  %v1318_v45 = vld [vmem:[%s6123_s16 + $0x260] sm:$0xff]  ;;  %v1316_v51 = vld [vmem:[%s6123_s16 + $0x250] sm:$0xff] }
  0xe8   : > { %4234 = vmatpush1.bf16.msra.mxu0 %v4233_v31  ;;  %v4255_v31 = vpack.c.bf16 %v1311_v23, %v1307_v22  ;;  %v4895_v37 = vpack.c.bf16 %v1313_v32, %v1309_v30  ;;  %v4261_v50 = vpack.c.bf16 %v1318_v45, %v1314_v44  ;;  %v1329_v55 = vld [vmem:[%s6123_s16 + $0x2b8] sm:$0xff]  ;;  %v1322_v56 = vld [vmem:[%s6123_s16 + $0x280] sm:$0xff]  ;;  %v1335_v59 = vld [vmem:[%s6123_s16 + $0x2e8] sm:$0xff] }
  0xe9   : > { %4236 = vmatprep.subr.bf16.mxu0 %v4235_v35  ;;  %v1315_v35 = vld [vmem:[%s6123_s16 + $0x248] sm:$0xff]  ;;  %v1326_v57 = vld [vmem:[%s6123_s16 + $0x2a0] sm:$0xff]  ;;  %v1324_v63 = vld [vmem:[%s6123_s16 + $0x290] sm:$0xff] }
  0xea   : > { %4874 = vmatpush1.bf16.msra.mxu1 %v4873_v40  ;;  %v1312_v40 = vld [vmem:[%s6123_s16 + $0x230] sm:$0xff]  ;;  %v4265_v62 = vpack.c.bf16 %v1326_v57, %v1322_v56  ;;  %v1337_v4 = vld [vmem:[%s6123_s16 + $0x2f8] sm:$0xff]  ;;  %v1330_v5 = vld [vmem:[%s6123_s16 + $0x2c0] sm:$0xff] }
  0xeb   : > { %4876 = vmatprep.subr.bf16.mxu1 %v4875_v41  ;;  %v1317_v41 = vld [vmem:[%s6123_s16 + $0x258] sm:$0xff]  ;;  %v4897_v48 = vpack.c.bf16 %v1312_v40, %v1308_v39  ;;  %v1334_v6 = vld [vmem:[%s6123_s16 + $0x2e0] sm:$0xff]  ;;  %v1343_v8 = vld [vmem:[%s6123_s16 + $0x328] sm:$0xff] }
  0xec   : > { %4238 = vmatpush1.bf16.msra.mxu0 %v4237_v42  ;;  %v4259_v42 = vpack.c.bf16 %v1319_v25, %v1315_v35  ;;  %v4899_v49 = vpack.c.bf16 %v1321_v43, %v1317_v41  ;;  %v4269_v11 = vpack.c.bf16 %v1334_v6, %v1330_v5  ;;  %v1332_v12 = vld [vmem:[%s6123_s16 + $0x2d0] sm:$0xff]  ;;  %v1345_v0 = vld [vmem:[%s6123_s16 + $0x338] sm:$0xff]  ;;  %v1338_v16 = vld [vmem:[%s6123_s16 + $0x300] sm:$0xff] }
  0xed   : > { %4240 = vmatprep.subr.bf16.mxu0 %v4239_v46  ;;  %v1323_v46 = vld [vmem:[%s6123_s16 + $0x288] sm:$0xff]  ;;  %v1342_v17 = vld [vmem:[%s6123_s16 + $0x320] sm:$0xff]  ;;  %v1340_v23 = vld [vmem:[%s6123_s16 + $0x310] sm:$0xff] }
  0xee   : > { %4878 = vmatpush1.bf16.msra.mxu1 %v4877_v52  ;;  %v1320_v52 = vld [vmem:[%s6123_s16 + $0x270] sm:$0xff]  ;;  %v1351_v19 = vld [vmem:[%s6123_s16 + $0x368] sm:$0xff]  ;;  %v4273_v22 = vpack.c.bf16 %v1342_v17, %v1338_v16  ;;  %v1353_v28 = vld [vmem:[%s6123_s16 + $0x378] sm:$0xff] }
  0xef   : > { %4880 = vmatprep.subr.bf16.mxu1 %v4879_v53  ;;  %v1325_v53 = vld [vmem:[%s6123_s16 + $0x298] sm:$0xff]  ;;  %v4901_v60 = vpack.c.bf16 %v1320_v52, %v1316_v51  ;;  %v1346_v29 = vld [vmem:[%s6123_s16 + $0x340] sm:$0xff]  ;;  %v1359_v32 = vld [vmem:[%s6123_s16 + $0x3a8] sm:$0xff] }
  0xf0   : > { %4242 = vmatpush1.bf16.msra.mxu0 %v4241_v54  ;;  %v4263_v54 = vpack.c.bf16 %v1327_v47, %v1323_v46  ;;  %v4903_v61 = vpack.c.bf16 %v1329_v55, %v1325_v53  ;;  %v1350_v30 = vld [vmem:[%s6123_s16 + $0x360] sm:$0xff]  ;;  %v1348_v25 = vld [vmem:[%s6123_s16 + $0x350] sm:$0xff]  ;;  %v1361_v39 = vld [vmem:[%s6123_s16 + $0x3b8] sm:$0xff] }
  0xf1   : > { %4244 = vmatprep.subr.bf16.mxu0 %v4243_v58  ;;  %v1331_v58 = vld [vmem:[%s6123_s16 + $0x2c8] sm:$0xff]  ;;  %v4277_v35 = vpack.c.bf16 %v1350_v30, %v1346_v29  ;;  %v1354_v40 = vld [vmem:[%s6123_s16 + $0x380] sm:$0xff]  ;;  %v1356_v47 = vld [vmem:[%s6123_s16 + $0x390] sm:$0xff] }
  0xf2   : > { %4882 = vmatpush1.bf16.msra.mxu1 %v4881_v1  ;;  %v1328_v1 = vld [vmem:[%s6123_s16 + $0x2b0] sm:$0xff]  ;;  %v1358_v41 = vld [vmem:[%s6123_s16 + $0x3a0] sm:$0xff]  ;;  %v1367_v43 = vld [vmem:[%s6123_s16 + $0x3e8] sm:$0xff] }
  0xf3   : > { %4884 = vmatprep.subr.bf16.mxu1 %v4883_v2  ;;  %v1333_v2 = vld [vmem:[%s6123_s16 + $0x2d8] sm:$0xff]  ;;  %v4905_v9 = vpack.c.bf16 %v1328_v1, %v1324_v63  ;;  %v4281_v46 = vpack.c.bf16 %v1358_v41, %v1354_v40  ;;  %v1362_v52 = vld [vmem:[%s6123_s16 + $0x3c0] sm:$0xff]  ;;  %v1375_v55 = vld [vmem:[%s6123_s16 + $0x428] sm:$0xff] }
  0xf4   : > { %4246 = vmatpush1.bf16.msra.mxu0 %v4245_v3  ;;  %v4267_v3 = vpack.c.bf16 %v1335_v59, %v1331_v58  ;;  %v4907_v10 = vpack.c.bf16 %v1337_v4, %v1333_v2  ;;  %v1369_v51 = vld [vmem:[%s6123_s16 + $0x3f8] sm:$0xff]  ;;  %v1366_v53 = vld [vmem:[%s6123_s16 + $0x3e0] sm:$0xff]  ;;  %v1364_v59 = vld [vmem:[%s6123_s16 + $0x3d0] sm:$0xff] }
  0xf5   : > { %4248 = vmatprep.subr.bf16.mxu0 %v4247_v7  ;;  %v1339_v7 = vld [vmem:[%s6123_s16 + $0x308] sm:$0xff]  ;;  %v4285_v58 = vpack.c.bf16 %v1366_v53, %v1362_v52  ;;  %v1377_v63 = vld [vmem:[%s6123_s16 + $0x438] sm:$0xff]  ;;  %v1376_v16 = vld [vmem:[%s6123_s16 + $0x430] sm:$0xff] }
  0xf6   : > { %4886 = vmatpush1.bf16.msra.mxu1 %v4885_v13  ;;  %v1336_v13 = vld [vmem:[%s6123_s16 + $0x2f0] sm:$0xff]  ;;  %v1379_v17 = vld [vmem:[%s6123_s16 + $0x448] sm:$0xff]  ;;  %v1382_v29 = vld [vmem:[%s6123_s16 + $0x460] sm:$0xff] }
  0xf7   : > { %4888 = vmatprep.subr.bf16.mxu1 %v4887_v14  ;;  %v1341_v14 = vld [vmem:[%s6123_s16 + $0x318] sm:$0xff]  ;;  %v4909_v20 = vpack.c.bf16 %v1336_v13, %v1332_v12  ;;  %v6298_v6 = vld [vmem:[#allocation7] sm:$0xff]  ;;  %v1370_v12 = vld [vmem:[%s6123_s16 + $0x400] sm:$0xff] }
  0xf8   : > { %4250 = vmatpush1.bf16.msra.mxu0 %v4249_v15  ;;  %v4271_v15 = vpack.c.bf16 %v1343_v8, %v1339_v7  ;;  %v4911_v21 = vpack.c.bf16 %v1345_v0, %v1341_v14  ;;  %v1374_v13 = vld [vmem:[%s6123_s16 + $0x420] sm:$0xff]  ;;  %v1372_v0 = vld [vmem:[%s6123_s16 + $0x410] sm:$0xff]  ;;  %v1399_v52 = vld [vmem:[%s6123_s16 + $0x4e8] sm:$0xff] }
  0xf9   : > { %4252 = vmatprep.subr.bf16.mxu0 %v4251_v18  ;;  %v1347_v18 = vld [vmem:[%s6123_s16 + $0x348] sm:$0xff]  ;;  %v1397_v53 = vld [vmem:[%s6123_s16 + $0x4d8] sm:$0xff] }
  0xfa   : > { %4890 = vmatpush1.bf16.msra.mxu1 %v4889_v24  ;;  %v1344_v24 = vld [vmem:[%s6123_s16 + $0x330] sm:$0xff] }
  0xfb   : > { %4892 = vmatprep.subr.bf16.mxu1 %v4891_v26  ;;  %v1349_v26 = vld [vmem:[%s6123_s16 + $0x358] sm:$0xff]  ;;  %v4913_v33 = vpack.c.bf16 %v1344_v24, %v1340_v23 }
  0xfc   : > { %4254 = vmatpush1.bf16.msra.mxu0 %v4253_v27  ;;  %v4275_v27 = vpack.c.bf16 %v1351_v19, %v1347_v18  ;;  %v4915_v34 = vpack.c.bf16 %v1353_v28, %v1349_v26  ;;  %v4289_v26 = vpack.c.bf16 %v1374_v13, %v1370_v12  ;;  %v1378_v28 = vld [vmem:[%s6123_s16 + $0x440] sm:$0xff] }
  0xfd   : > { %4256 = vmatprep.subr.bf16.mxu0 %v4255_v31  ;;  %v1355_v31 = vld [vmem:[%s6123_s16 + $0x388] sm:$0xff]  ;;  %v4293_v41 = vpack.c.bf16 %v1382_v29, %v1378_v28 }
  0xfe   : > { %4894 = vmatpush1.bf16.msra.mxu1 %v4893_v36  ;;  %v1352_v36 = vld [vmem:[%s6123_s16 + $0x370] sm:$0xff]  ;;  %v1411_v28 = vld [vmem:[%s6123_s16 + $0x548] sm:$0xff] }
  0xff   : > { %4896 = vmatprep.subr.bf16.mxu1 %v4895_v37  ;;  %v1357_v37 = vld [vmem:[%s6123_s16 + $0x398] sm:$0xff]  ;;  %v4917_v44 = vpack.c.bf16 %v1352_v36, %v1348_v25  ;;  %v1387_v25 = vld [vmem:[%s6123_s16 + $0x488] sm:$0xff] }
 0x100   : > { %4258 = vmatpush1.bf16.msra.mxu0 %v4257_v38  ;;  %v4279_v38 = vpack.c.bf16 %v1359_v32, %v1355_v31  ;;  %v4919_v45 = vpack.c.bf16 %v1361_v39, %v1357_v37  ;;  %v1391_v37 = vld [vmem:[%s6123_s16 + $0x4a8] sm:$0xff]  ;;  %v1393_v39 = vld [vmem:[%s6123_s16 + $0x4b8] sm:$0xff] }
 0x101   : > { %4260 = vmatprep.subr.bf16.mxu0 %v4259_v42  ;;  %v1363_v42 = vld [vmem:[%s6123_s16 + $0x3c8] sm:$0xff] }
 0x102   : > { %4898 = vmatpush1.bf16.msra.mxu1 %v4897_v48  ;;  %v1360_v48 = vld [vmem:[%s6123_s16 + $0x3b0] sm:$0xff] }
 0x103   : > { %4900 = vmatprep.subr.bf16.mxu1 %v4899_v49  ;;  %v1365_v49 = vld [vmem:[%s6123_s16 + $0x3d8] sm:$0xff]  ;;  %v4921_v56 = vpack.c.bf16 %v1360_v48, %v1356_v47  ;;  %v1388_v48 = vld [vmem:[%s6123_s16 + $0x490] sm:$0xff] }
 0x104   : > { %4262 = vmatpush1.bf16.msra.mxu0 %v4261_v50  ;;  %v4283_v50 = vpack.c.bf16 %v1367_v43, %v1363_v42  ;;  %v4923_v57 = vpack.c.bf16 %v1369_v51, %v1365_v49  ;;  %v1386_v43 = vld [vmem:[%s6123_s16 + $0x480] sm:$0xff]  ;;  %v1392_v49 = vld [vmem:[%s6123_s16 + $0x4b0] sm:$0xff] }
 0x105   : > { %4264 = vmatprep.subr.bf16.mxu0 %v4263_v54  ;;  %v1371_v54 = vld [vmem:[%s6123_s16 + $0x408] sm:$0xff] }
 0x106   : > { %4902 = vmatpush1.bf16.msra.mxu1 %v4901_v60  ;;  %v1368_v60 = vld [vmem:[%s6123_s16 + $0x3f0] sm:$0xff] }
 0x107   : > { %4904 = vmatprep.subr.bf16.mxu1 %v4903_v61  ;;  %v4287_v61 = vpack.c.bf16 %v1375_v55, %v1371_v54  ;;  %v4925_v1 = vpack.c.bf16 %v1368_v60, %v1364_v59  ;;  %v1401_v54 = vld [vmem:[%s6123_s16 + $0x4f8] sm:$0xff]  ;;  %v1394_v55 = vld [vmem:[%s6123_s16 + $0x4c0] sm:$0xff]  ;;  %v4937_v60 = vpack.c.bf16 %v1392_v49, %v1388_v48  ;;  %v1416_v48 = vld [vmem:[%s6123_s16 + $0x570] sm:$0xff] }
 0x108   : > { %4266 = vmatpush1.bf16.msra.mxu0 %v4265_v62  ;;  %v1373_v62 = vld [vmem:[%s6123_s16 + $0x418] sm:$0xff]  ;;  %v1419_v49 = vld [vmem:[%s6123_s16 + $0x588] sm:$0xff] }
 0x109   : > { %4268 = vmatprep.subr.bf16.mxu0 %v4267_v3  ;;  %v4927_v2 = vpack.c.bf16 %v1377_v63, %v1373_v62  ;;  %v408_v3 = vlaneseq  ;;  %v1403_v62 = vld [vmem:[%s6123_s16 + $0x508] sm:$0xff] }
 0x10a   : > { %4906 = vmatpush1.bf16.msra.mxu1 %v4905_v9  ;;  %v1407_v63 = vld [vmem:[%s6123_s16 + $0x528] sm:$0xff] }
 0x10b   : > { %4908 = vmatprep.subr.bf16.mxu1 %v4907_v10  ;;  %v6293_v4 = vshrl.u32 %v408_v3, 7  ;;  %v4939_v3 = vpack.c.bf16 %v1401_v54, %v1397_v53  ;;  %v1421_v53 = vld [vmem:[%s6123_s16 + $0x598] sm:$0xff] }
 0x10c   : > { %4270 = vmatpush1.bf16.msra.mxu0 %v4269_v11  ;;  %v1425_v54 = vld [vmem:[%s6123_s16 + $0x5b8] sm:$0xff] }
 0x10d   : > { %4272 = vmatprep.subr.bf16.mxu0 %v4271_v15  ;;  %v6296_v5 = vsub.s32 0, %v6293_v4  ;;  %v6301_v7 = vsub.s32 1, %v6293_v4  ;;  %v6306_v9 = vsub.s32 3, %v6293_v4  ;;  %v6355_v13 = vsub.s32 2, %v6293_v4 }
 0x10e   : > { %4910 = vmatpush1.bf16.msra.mxu1 %v4909_v20  ;;  %v1383_v20 = vld [vmem:[%s6123_s16 + $0x468] sm:$0xff] }
 0x10f   : > { %4912 = vmatprep.subr.bf16.mxu1 %v4911_v21  ;;  %v411_v8 = vrot.slane %v6298_v6, %v6296_v5  ;;  %v415_v10 = vrot.slane %v6298_v6, %v6301_v7  ;;  %v423_v18 = vrot.slane %v6298_v6, %v6306_v9  ;;  %v1381_v21 = vld [vmem:[%s6123_s16 + $0x458] sm:$0xff]  ;;  %v4291_v32 = vpack.c.bf16 %v1383_v20, %v1379_v17 }
 0x110   : > { %4274 = vmatpush1.bf16.msra.mxu0 %v4273_v22  ;;  %v1385_v22 = vld [vmem:[%s6123_s16 + $0x478] sm:$0xff]  ;;  %v430_v20 = vsub.s32 5, %v6293_v4 }
 0x111   : > { %4276 = vmatprep.subr.bf16.mxu0 %v4275_v27  ;;  %v4929_v27 = vpack.c.bf16 %v1376_v16, %v1372_v0  ;;  %v426_v0 = vsub.s32 4, %v6293_v4  ;;  %v434_v16 = vsub.s32 6, %v6293_v4 }
 0x112   : > { %4914 = vmatpush1.bf16.msra.mxu1 %v4913_v33  ;;  %v4931_v33 = vpack.c.bf16 %v1385_v22, %v1381_v21  ;;  %v438_v21 = vsub.s32 7, %v6293_v4  ;;  %v6767_v4 = vld [vmem:[#allocation7 + $0x8] sm:$0xff] }
 0x113   : > { %4916 = vmatprep.subr.bf16.mxu1 %v4915_v34  ;;  %v1380_v34 = vld [vmem:[%s6123_s16 + $0x450] sm:$0xff] }
 0x114   : > { %4278 = vmatpush1.bf16.msra.mxu0 %v4277_v35  ;;  %v1384_v35 = vld [vmem:[%s6123_s16 + $0x470] sm:$0xff] }
 0x115   : > { %4280 = vmatprep.subr.bf16.mxu0 %v4279_v38  ;;  %v1389_v38 = vld [vmem:[%s6123_s16 + $0x498] sm:$0xff]  ;;  %v4933_v42 = vpack.c.bf16 %v1384_v35, %v1380_v34 }
 0x116   : > { %4918 = vmatpush1.bf16.msra.mxu1 %v4917_v44  ;;  %v1390_v44 = vld [vmem:[%s6123_s16 + $0x4a0] sm:$0xff]  ;;  %v4935_v47 = vpack.c.bf16 %v1393_v39, %v1389_v38  ;;  %v1413_v34 = vld [vmem:[%s6123_s16 + $0x558] sm:$0xff] }
 0x117   : > { %4920 = vmatprep.subr.bf16.mxu1 %v4919_v45  ;;  %v4297_v59 = vpack.c.bf16 %v1390_v44, %v1386_v43  ;;  %v1417_v35 = vld [vmem:[%s6123_s16 + $0x578] sm:$0xff] }
 0x118   : > { %4282 = vmatpush1.bf16.msra.mxu0 %v4281_v46  ;;  %v4295_v46 = vpack.c.bf16 %v1391_v37, %v1387_v25 }
 0x119   : > { %4284 = vmatprep.subr.bf16.mxu0 %v4283_v50  ;;  %v1395_v50 = vld [vmem:[%s6123_s16 + $0x4c8] sm:$0xff] }
 0x11a   : > { %4922 = vmatpush1.bf16.msra.mxu1 %v4921_v56  ;;  %v1398_v56 = vld [vmem:[%s6123_s16 + $0x4e0] sm:$0xff] }
 0x11b   : > { %4924 = vmatprep.subr.bf16.mxu1 %v4923_v57  ;;  %v1396_v57 = vld [vmem:[%s6123_s16 + $0x4d0] sm:$0xff]  ;;  %v4301_v12 = vpack.c.bf16 %v1398_v56, %v1394_v55 }
 0x11c   : > { %4286 = vmatpush1.bf16.msra.mxu0 %v4285_v58 }
 0x11d   : > { %4288 = vmatprep.subr.bf16.mxu0 %v4287_v61  ;;  %v1400_v61 = vld [vmem:[%s6123_s16 + $0x4f0] sm:$0xff] }
 0x11e   : > { %4926 = vmatpush1.bf16.msra.mxu1 %v4925_v1 }
 0x11f   : > { %4928 = vmatprep.subr.bf16.mxu1 %v4927_v2  ;;  %v4299_v2 = vpack.c.bf16 %v1399_v52, %v1395_v50  ;;  %v1423_v52 = vld [vmem:[%s6123_s16 + $0x5a8] sm:$0xff] }
 0x192   : > { %v578_v11 = vpop.f32.mrb[0].mxu0 }
 0x193   : > { %v579_v14 = vadd.f32 %v578_v11, %v411_v8  ;;  %v580_v15 = vpop.f32.mrb[1].mxu0  ;;  %v1405_v8 = vld [vmem:[%s6123_s16 + $0x518] sm:$0xff] }
 0x194   : > { %v581_v19 = vadd.f32 %v580_v15, %v415_v10  ;;  %v6320_v23 = vpop.f32.mrb[0].mxu1  ;;  %v1409_v10 = vld [vmem:[%s6123_s16 + $0x538] sm:$0xff]  ;;  %v4303_v15 = vpack.c.bf16 %v1407_v63, %v1403_v62  ;;  %v4951_v62 = vpack.c.bf16 %v1425_v54, %v1421_v53  ;;  %v1420_v63 = vld [vmem:[%s6123_s16 + $0x590] sm:$0xff]  ;;  %v1443_v53 = vld [vmem:[%s6123_s16 + $0x648] sm:$0xff] }
 0x195   : > { %v651_v30 = vpop.f32.mrb[1].mxu1  ;;  %v1222_v31 = vmax.f32 %v579_v14, 0.0  ;;  %v403_v11 = vld [vmem:[#allocation7 + $0x8] sm:$0xff]  ;;  %v4941_v14 = vpack.c.bf16 %v1400_v61, %v1396_v57  ;;  %v4943_v17 = vpack.c.bf16 %v1409_v10, %v1405_v8  ;;  %v1418_v57 = vld [vmem:[%s6123_s16 + $0x580] sm:$0xff]  ;;  %v4311_v61 = vpack.c.bf16 %v1423_v52, %v1419_v49 }
 0x196   : > { %v1223_v24 = vmax.f32 %v581_v19, 0.0  ;;  %v652_v36 = vadd.f32 %v651_v30, %v423_v18  ;;  %v1402_v18 = vld [vmem:[%s6123_s16 + $0x500] sm:$0xff]  ;;  %v455_v30 = vrot.slane %v403_v11, %v6306_v9  ;;  %v463_v25 = vrot.slane %v403_v11, %v430_v20  ;;  %v1436_v49 = vld [vmem:[%s6123_s16 + $0x610] sm:$0xff] }
 0x197   : > { %v1406_v19 = vld [vmem:[%s6123_s16 + $0x520] sm:$0xff]  ;;  %v1440_v52 = vld [vmem:[%s6123_s16 + $0x630] sm:$0xff] }
 0x198   : > { %2608 = vmatprep.mubr.f32.mxu0 %v1223_v24  ;;  %3318 = vmatprep.mubr.f32.mxu1 %v1223_v24  ;;  %v1225_v40 = vmax.f32 %v652_v36, 0.0  ;;  %v451_v24 = vrot.slane %v403_v11, %v6355_v13  ;;  %v471_v36 = vrot.slane %v403_v11, %v438_v21  ;;  %v4305_v38 = vpack.c.bf16 %v1406_v19, %v1402_v18 }
 0x199   : > { %2609 = vmatmul.mubr.f32.vlgmr.msra.gmra.mrb[10].mxu0 %v1222_v31  ;;  %3319 = vmatmul.mubr.f32.vlgmr.msra.gmra.mrb[10].mxu1 %v1222_v31  ;;  %v459_v31 = vrot.slane %v403_v11, %v426_v0 }
 0x19a   : > { %4290 = vmatpush1.bf16.msra.mxu0 %v4289_v26  ;;  %4930 = vmatpush1.bf16.msra.mxu1 %v4929_v27  ;;  %v6332_v45 = vpop.f32.mrb[2].mxu0  ;;  %v1404_v26 = vld [vmem:[%s6123_s16 + $0x510] sm:$0xff] }
 0x19b   : > { %4292 = vmatprep.subr.bf16.mxu0 %v4291_v32  ;;  %4932 = vmatprep.subr.bf16.mxu1 %v4931_v33  ;;  %v6337_v51 = vpop.f32.mrb[3].mxu0  ;;  %v1408_v27 = vld [vmem:[%s6123_s16 + $0x530] sm:$0xff]  ;;  %v467_v32 = vrot.slane %v403_v11, %v434_v16  ;;  %v1415_v33 = vld [vmem:[%s6123_s16 + $0x568] sm:$0xff] }
 0x19c   : > { %2679 = vmatprep.mubr.f32.mxu0 %v1225_v40  ;;  %3389 = vmatprep.mubr.f32.mxu1 %v1225_v40  ;;  %v6345_v58 = vpop.f32.mrb[2].mxu1  ;;  %v4945_v39 = vpack.c.bf16 %v1408_v27, %v1404_v26  ;;  %v1410_v40 = vld [vmem:[%s6123_s16 + $0x540] sm:$0xff]  ;;  %v4307_v44 = vpack.c.bf16 %v1415_v33, %v1411_v28  ;;  %v1431_v11 = vld [vmem:[%s6123_s16 + $0x5e8] sm:$0xff]  ;;  %v1428_v27 = vld [vmem:[%s6123_s16 + $0x5d0] sm:$0xff] }
 0x19d   : > { %v6350_v1 = vpop.f32.mrb[3].mxu1  ;;  %v1430_v26 = vld [vmem:[%s6123_s16 + $0x5e0] sm:$0xff] }
 0x19e   : > { %4294 = vmatpush1.bf16.msra.mxu0 %v4293_v41  ;;  %4934 = vmatpush1.bf16.msra.mxu1 %v4933_v42  ;;  %v1414_v41 = vld [vmem:[%s6123_s16 + $0x560] sm:$0xff] }
 0x19f   : > { %4296 = vmatprep.subr.bf16.mxu0 %v4295_v46  ;;  %4936 = vmatprep.subr.bf16.mxu1 %v4935_v47  ;;  %v4947_v46 = vpack.c.bf16 %v1417_v35, %v1413_v34  ;;  %v1412_v47 = vld [vmem:[%s6123_s16 + $0x550] sm:$0xff]  ;;  %v4309_v55 = vpack.c.bf16 %v1414_v41, %v1410_v40  ;;  %v1435_v35 = vld [vmem:[%s6123_s16 + $0x608] sm:$0xff]  ;;  %v1441_v40 = vld [vmem:[%s6123_s16 + $0x638] sm:$0xff] }
 0x1a0   : > { %v4949_v56 = vpack.c.bf16 %v1416_v48, %v1412_v47  ;;  %v1432_v34 = vld [vmem:[%s6123_s16 + $0x5f0] sm:$0xff] }
 0x1a1   : > { %v4957_v41 = vpack.c.bf16 %v1432_v34, %v1428_v27  ;;  %v1457_v27 = vld [vmem:[%s6123_s16 + $0x6b8] sm:$0xff]  ;;  %v1454_v34 = vld [vmem:[%s6123_s16 + $0x6a0] sm:$0xff] }
 0x1a2   : > { %4298 = vmatpush1.bf16.msra.mxu0 %v4297_v59  ;;  %4938 = vmatpush1.bf16.msra.mxu1 %v4937_v60  ;;  %v6363_v22 = vpop.f32.mrb[4].mxu0  ;;  %v1422_v59 = vld [vmem:[%s6123_s16 + $0x5a0] sm:$0xff] }
 0x1a3   : > { %4300 = vmatprep.subr.bf16.mxu0 %v4299_v2  ;;  %4940 = vmatprep.subr.bf16.mxu1 %v4939_v3  ;;  %v6369_v29 = vpop.f32.mrb[5].mxu0  ;;  %v1424_v2 = vld [vmem:[%s6123_s16 + $0x5b0] sm:$0xff]  ;;  %v1427_v3 = vld [vmem:[%s6123_s16 + $0x5c8] sm:$0xff]  ;;  %v4313_v18 = vpack.c.bf16 %v1422_v59, %v1418_v57  ;;  %v1445_v57 = vld [vmem:[%s6123_s16 + $0x658] sm:$0xff] }
 0x1a4   : > { %v933_v37 = vpop.f32.mrb[4].mxu1  ;;  %v4953_v19 = vpack.c.bf16 %v1424_v2, %v1420_v63  ;;  %v1449_v59 = vld [vmem:[%s6123_s16 + $0x678] sm:$0xff]  ;;  %v1442_v63 = vld [vmem:[%s6123_s16 + $0x640] sm:$0xff] }
 0x1a5   : > { %v6385_v42 = vadd.f32 %v933_v37, %v451_v24  ;;  %v935_v43 = vpop.f32.mrb[5].mxu1  ;;  %v1426_v24 = vld [vmem:[%s6123_s16 + $0x5c0] sm:$0xff]  ;;  %v404_v37 = vld [vmem:[#allocation7 + $0x10] sm:$0xf] }
 0x1a6   : > { %4302 = vmatpush1.bf16.msra.mxu0 %v4301_v12  ;;  %4942 = vmatpush1.bf16.msra.mxu1 %v4941_v14  ;;  %v6390_v50 = vadd.f32 %v935_v43, %v455_v30  ;;  %v1429_v12 = vld [vmem:[%s6123_s16 + $0x5d8] sm:$0xff]  ;;  %v1434_v43 = vld [vmem:[%s6123_s16 + $0x600] sm:$0xff] }
 0x1a7   : > { %4304 = vmatprep.subr.bf16.mxu0 %v4303_v15  ;;  %4944 = vmatprep.subr.bf16.mxu1 %v4943_v17  ;;  %v1433_v14 = vld [vmem:[%s6123_s16 + $0x5f8] sm:$0xff]  ;;  %v1446_v2 = vld [vmem:[%s6123_s16 + $0x660] sm:$0xff] }
 0x1a8   : > { %v4955_v33 = vpack.c.bf16 %v1433_v14, %v1429_v12  ;;  %v4963_v12 = vpack.c.bf16 %v1449_v59, %v1445_v57  ;;  %v1444_v14 = vld [vmem:[%s6123_s16 + $0x650] sm:$0xff]  ;;  %v1471_v57 = vld [vmem:[%s6123_s16 + $0x728] sm:$0xff]  ;;  %v1469_v59 = vld [vmem:[%s6123_s16 + $0x718] sm:$0xff] }
 0x1aa   : > { %4306 = vmatpush1.bf16.msra.mxu0 %v4305_v38  ;;  %4946 = vmatpush1.bf16.msra.mxu1 %v4945_v39  ;;  %v1004_v60 = vpop.f32.mrb[6].mxu0  ;;  %v1439_v38 = vld [vmem:[%s6123_s16 + $0x628] sm:$0xff]  ;;  %v1437_v39 = vld [vmem:[%s6123_s16 + $0x618] sm:$0xff] }
 0x1ab   : > { %4308 = vmatprep.subr.bf16.mxu0 %v4307_v44  ;;  %4948 = vmatprep.subr.bf16.mxu1 %v4947_v46  ;;  %v6400_v8 = vadd.f32 %v1004_v60, %v459_v31  ;;  %v1006_v10 = vpop.f32.mrb[7].mxu0  ;;  %v4315_v31 = vpack.c.bf16 %v1431_v11, %v1427_v3  ;;  %v1438_v44 = vld [vmem:[%s6123_s16 + $0x620] sm:$0xff]  ;;  %v4319_v47 = vpack.c.bf16 %v1439_v38, %v1435_v35  ;;  %v1452_v38 = vld [vmem:[%s6123_s16 + $0x690] sm:$0xff] }
 0x1ac   : > { %v6405_v15 = vadd.f32 %v1006_v10, %v463_v25  ;;  %v1075_v17 = vpop.f32.mrb[6].mxu1  ;;  %v4959_v48 = vpack.c.bf16 %v1441_v40, %v1437_v39  ;;  %v1456_v39 = vld [vmem:[%s6123_s16 + $0x6b0] sm:$0xff]  ;;  %v1459_v40 = vld [vmem:[%s6123_s16 + $0x6c8] sm:$0xff] }
 0x1ad   : > { %v6410_v28 = vadd.f32 %v1075_v17, %v467_v32  ;;  %v1077_v30 = vpop.f32.mrb[7].mxu1  ;;  %v4317_v32 = vpack.c.bf16 %v1430_v26, %v1426_v24  ;;  %v1448_v17 = vld [vmem:[%s6123_s16 + $0x670] sm:$0xff]  ;;  %v1455_v24 = vld [vmem:[%s6123_s16 + $0x6a8] sm:$0xff]  ;;  %v1453_v26 = vld [vmem:[%s6123_s16 + $0x698] sm:$0xff] }
 0x1ae   : > { %4310 = vmatpush1.bf16.msra.mxu0 %v4309_v55  ;;  %4950 = vmatpush1.bf16.msra.mxu1 %v4949_v56  ;;  %v6414_v25 = vadd.f32 %v1077_v30, %v471_v36  ;;  %v483_v36 = vrot.slane %v404_v37, %v6355_v13  ;;  %v487_v55 = vrot.slane %v404_v37, %v6306_v9  ;;  %v1447_v56 = vld [vmem:[%s6123_s16 + $0x668] sm:$0xff] }
 0x1af   : > { %4312 = vmatprep.subr.bf16.mxu0 %v4311_v61  ;;  %4952 = vmatprep.subr.bf16.mxu1 %v4951_v62  ;;  %v4321_v61 = vpack.c.bf16 %v1438_v44, %v1434_v43  ;;  %v4961_v62 = vpack.c.bf16 %v1440_v52, %v1436_v49  ;;  %v4323_v11 = vpack.c.bf16 %v1447_v56, %v1443_v53  ;;  %v1465_v43 = vld [vmem:[%s6123_s16 + $0x6f8] sm:$0xff]  ;;  %v1460_v53 = vld [vmem:[%s6123_s16 + $0x6d0] sm:$0xff]  ;;  %v1467_v56 = vld [vmem:[%s6123_s16 + $0x708] sm:$0xff] }
 0x1b0   : > { %v4325_v30 = vpack.c.bf16 %v1446_v2, %v1442_v63  ;;  %v4967_v37 = vpack.c.bf16 %v1457_v27, %v1453_v26  ;;  %v1466_v63 = vld [vmem:[%s6123_s16 + $0x700] sm:$0xff]  ;;  %v1481_v26 = vld [vmem:[%s6123_s16 + $0x778] sm:$0xff] }
 0x1b1   : > { %v1470_v2 = vld [vmem:[%s6123_s16 + $0x720] sm:$0xff] }
 0x1b2   : > { %4314 = vmatpush1.bf16.msra.mxu0 %v4313_v18  ;;  %4954 = vmatpush1.bf16.msra.mxu1 %v4953_v19  ;;  %v6421_v46 = vpop.f32.mrb[8].mxu0  ;;  %v1451_v18 = vld [vmem:[%s6123_s16 + $0x688] sm:$0xff]  ;;  %v4337_v27 = vpack.c.bf16 %v1470_v2, %v1466_v63  ;;  %v1490_v63 = vld [vmem:[%s6123_s16 + $0x7c0] sm:$0xff] }
 0x1b3   : > { %4316 = vmatprep.subr.bf16.mxu0 %v4315_v31  ;;  %4956 = vmatprep.subr.bf16.mxu1 %v4955_v33  ;;  %v6427_v54 = vpop.f32.mrb[9].mxu0  ;;  %v4965_v31 = vpack.c.bf16 %v1448_v17, %v1444_v14  ;;  %v1450_v33 = vld [vmem:[%s6123_s16 + $0x680] sm:$0xff]  ;;  %v4327_v35 = vpack.c.bf16 %v1455_v24, %v1451_v18  ;;  %v1472_v14 = vld [vmem:[%s6123_s16 + $0x730] sm:$0xff]  ;;  %v1475_v17 = vld [vmem:[%s6123_s16 + $0x748] sm:$0xff] }
 0x1b4   : > { %v1217_v60 = vpop.f32.mrb[8].mxu1  ;;  %v4329_v44 = vpack.c.bf16 %v1454_v34, %v1450_v33  ;;  %v1479_v18 = vld [vmem:[%s6123_s16 + $0x768] sm:$0xff]  ;;  %v1477_v24 = vld [vmem:[%s6123_s16 + $0x758] sm:$0xff]  ;;  %v1478_v33 = vld [vmem:[%s6123_s16 + $0x760] sm:$0xff] }
 0x1b5   : > { %v6435_v3 = vadd.f32 %v1217_v60, %v483_v36  ;;  %v1219_v10 = vpop.f32.mrb[9].mxu1  ;;  %v4969_v36 = vpack.c.bf16 %v1456_v39, %v1452_v38  ;;  %v1473_v60 = vld [vmem:[%s6123_s16 + $0x738] sm:$0xff]  ;;  %v4339_v34 = vpack.c.bf16 %v1479_v18, %v1475_v17  ;;  %v1480_v38 = vld [vmem:[%s6123_s16 + $0x770] sm:$0xff]  ;;  %v1483_v39 = vld [vmem:[%s6123_s16 + $0x788] sm:$0xff] }
 0x1b6   : > { %4318 = vmatpush1.bf16.msra.mxu0 %v4317_v32  ;;  %4958 = vmatpush1.bf16.msra.mxu1 %v4957_v41  ;;  %v6440_v19 = vadd.f32 %v1219_v10, %v487_v55  ;;  %v1463_v32 = vld [vmem:[%s6123_s16 + $0x6e8] sm:$0xff]  ;;  %v1461_v41 = vld [vmem:[%s6123_s16 + $0x6d8] sm:$0xff]  ;;  %v1464_v55 = vld [vmem:[%s6123_s16 + $0x6f0] sm:$0xff]  ;;  %v4335_v10 = vpack.c.bf16 %v1471_v57, %v1467_v56 }
 0x1b7   : > { %4320 = vmatprep.subr.bf16.mxu0 %v4319_v47  ;;  %4960 = vmatprep.subr.bf16.mxu1 %v4959_v48  ;;  %v1458_v47 = vld [vmem:[%s6123_s16 + $0x6c0] sm:$0xff]  ;;  %v4331_v49 = vpack.c.bf16 %v1463_v32, %v1459_v40  ;;  %v4971_v52 = vpack.c.bf16 %v1465_v43, %v1461_v41  ;;  %v1487_v40 = vld [vmem:[%s6123_s16 + $0x7a8] sm:$0xff]  ;;  %v1485_v32 = vld [vmem:[%s6123_s16 + $0x798] sm:$0xff] }
 0x1b8   : > { %v1462_v48 = vld [vmem:[%s6123_s16 + $0x6e0] sm:$0xff]  ;;  %v1489_v41 = vld [vmem:[%s6123_s16 + $0x7b8] sm:$0xff]  ;;  %v1495_v56 = vld [vmem:[%s6123_s16 + $0x7e8] sm:$0xff] }
 0x1b9   : > { %v1493_v57 = vld [vmem:[%s6123_s16 + $0x7d8] sm:$0xff]  ;;  %v1494_v2 = vld [vmem:[%s6123_s16 + $0x7e0] sm:$0xff]  ;;  %v1499_v17 = vld [vmem:[%s6123_s16 + $0x808] sm:$0xff] }
 0x1ba   : > { %4322 = vmatpush1.bf16.msra.mxu0 %v4321_v61  ;;  %4962 = vmatpush1.bf16.msra.mxu1 %v4961_v62  ;;  %v4333_v61 = vpack.c.bf16 %v1462_v48, %v1458_v47  ;;  %v4973_v62 = vpack.c.bf16 %v1464_v55, %v1460_v53  ;;  %v1486_v47 = vld [vmem:[%s6123_s16 + $0x7a0] sm:$0xff]  ;;  %v4343_v48 = vpack.c.bf16 %v1487_v40, %v1483_v39  ;;  %v1488_v53 = vld [vmem:[%s6123_s16 + $0x7b0] sm:$0xff]  ;;  %v1491_v55 = vld [vmem:[%s6123_s16 + $0x7c8] sm:$0xff] }
 0x1bb   : > { %4324 = vmatprep.subr.bf16.mxu0 %v4323_v11  ;;  %4964 = vmatprep.subr.bf16.mxu1 %v4963_v12  ;;  %v4975_v11 = vpack.c.bf16 %v1473_v60, %v1469_v59  ;;  %v1468_v12 = vld [vmem:[%s6123_s16 + $0x710] sm:$0xff]  ;;  %v1497_v59 = vld [vmem:[%s6123_s16 + $0x7f8] sm:$0xff]  ;;  %v419_v60 = vrot.slane %v6298_v6, %v6355_v13  ;;  %v1503_v18 = vld [vmem:[%s6123_s16 + $0x828] sm:$0xff] }
 0x1bc   : > { %v1500_v39 = vld [vmem:[%s6123_s16 + $0x810] sm:$0xff] }
 0x1bd   : > { %v1504_v40 = vld [vmem:[%s6123_s16 + $0x830] sm:$0xff] }
 0x1be   : > { %4326 = vmatpush1.bf16.msra.mxu0 %v4325_v30  ;;  %4966 = vmatpush1.bf16.msra.mxu1 %v4965_v31  ;;  %v4977_v30 = vpack.c.bf16 %v1472_v14, %v1468_v12  ;;  %v1474_v31 = vld [vmem:[%s6123_s16 + $0x740] sm:$0xff]  ;;  %v1492_v12 = vld [vmem:[%s6123_s16 + $0x7d0] sm:$0xff] }
 0x1bf   : > { %4328 = vmatprep.subr.bf16.mxu0 %v4327_v35  ;;  %4968 = vmatprep.subr.bf16.mxu1 %v4967_v37  ;;  %v4979_v35 = vpack.c.bf16 %v1481_v26, %v1477_v24  ;;  %v1476_v37 = vld [vmem:[%s6123_s16 + $0x750] sm:$0xff]  ;;  %v4341_v43 = vpack.c.bf16 %v1478_v33, %v1474_v31  ;;  %v1501_v24 = vld [vmem:[%s6123_s16 + $0x818] sm:$0xff]  ;;  %v4349_v31 = vpack.c.bf16 %v1494_v2, %v1490_v63  ;;  %v1514_v63 = vld [vmem:[%s6123_s16 + $0x880] sm:$0xff] }
 0x1c0   : > { %v1496_v14 = vld [vmem:[%s6123_s16 + $0x7f0] sm:$0xff]  ;;  %v1505_v26 = vld [vmem:[%s6123_s16 + $0x838] sm:$0xff]  ;;  %v1518_v2 = vld [vmem:[%s6123_s16 + $0x8a0] sm:$0xff] }
 0x1c1   : > { %v4989_v33 = vpack.c.bf16 %v1496_v14, %v1492_v12  ;;  %v1516_v12 = vld [vmem:[%s6123_s16 + $0x890] sm:$0xff] }
 0x1c2   : > { %4330 = vmatpush1.bf16.msra.mxu0 %v4329_v44  ;;  %4970 = vmatpush1.bf16.msra.mxu1 %v4969_v36  ;;  %v4981_v44 = vpack.c.bf16 %v1480_v38, %v1476_v37  ;;  %v1482_v36 = vld [vmem:[%s6123_s16 + $0x780] sm:$0xff]  ;;  %v4351_v37 = vpack.c.bf16 %v1503_v18, %v1499_v17  ;;  %v4991_v38 = vpack.c.bf16 %v1505_v26, %v1501_v24  ;;  %v1520_v14 = vld [vmem:[%s6123_s16 + $0x8b0] sm:$0xff]  ;;  %v1523_v17 = vld [vmem:[%s6123_s16 + $0x8c8] sm:$0xff] }
 0x1c3   : > { %4332 = vmatprep.subr.bf16.mxu0 %v4331_v49  ;;  %4972 = vmatprep.subr.bf16.mxu1 %v4971_v52  ;;  %v4983_v49 = vpack.c.bf16 %v1489_v41, %v1485_v32  ;;  %v1484_v52 = vld [vmem:[%s6123_s16 + $0x790] sm:$0xff]  ;;  %v1507_v32 = vld [vmem:[%s6123_s16 + $0x848] sm:$0xff]  ;;  %v1525_v24 = vld [vmem:[%s6123_s16 + $0x8d8] sm:$0xff] }
 0x1c4   : > { %v1527_v18 = vld [vmem:[%s6123_s16 + $0x8e8] sm:$0xff]  ;;  %v1529_v26 = vld [vmem:[%s6123_s16 + $0x8f8] sm:$0xff] }
 0x1c6   : > { %4334 = vmatpush1.bf16.msra.mxu0 %v4333_v61  ;;  %4974 = vmatpush1.bf16.msra.mxu1 %v4973_v62  ;;  %v4345_v61 = vpack.c.bf16 %v1486_v47, %v1482_v36  ;;  %v4985_v62 = vpack.c.bf16 %v1488_v53, %v1484_v52  ;;  %v4993_v36 = vpack.c.bf16 %v1504_v40, %v1500_v39  ;;  %v1506_v47 = vld [vmem:[%s6123_s16 + $0x840] sm:$0xff]  ;;  %v1508_v53 = vld [vmem:[%s6123_s16 + $0x850] sm:$0xff]  ;;  %v1531_v39 = vld [vmem:[%s6123_s16 + $0x908] sm:$0xff] }
 0x1c7   : > { %4336 = vmatprep.subr.bf16.mxu0 %v4335_v10  ;;  %4976 = vmatprep.subr.bf16.mxu1 %v4975_v11  ;;  %v4347_v10 = vpack.c.bf16 %v1495_v56, %v1491_v55  ;;  %v4987_v11 = vpack.c.bf16 %v1497_v59, %v1493_v57  ;;  %v1512_v55 = vld [vmem:[%s6123_s16 + $0x870] sm:$0xff]  ;;  %v1515_v56 = vld [vmem:[%s6123_s16 + $0x888] sm:$0xff]  ;;  %v1521_v59 = vld [vmem:[%s6123_s16 + $0x8b8] sm:$0xff] }
 0x1c8   : > { %v1519_v57 = vld [vmem:[%s6123_s16 + $0x8a8] sm:$0xff] }
 0x1c9   : > { %v1535_v40 = vld [vmem:[%s6123_s16 + $0x928] sm:$0xff] }
 0x1ca   : > { %4338 = vmatpush1.bf16.msra.mxu0 %v4337_v27  ;;  %4978 = vmatpush1.bf16.msra.mxu1 %v4977_v30  ;;  %v431_v27 = vrot.slane %v6298_v6, %v430_v20  ;;  %v650_v30 = vadd.f32 %v6320_v23, %v419_v60  ;;  %v1511_v6 = vld [vmem:[%s6123_s16 + $0x868] sm:$0xff]  ;;  %v1509_v23 = vld [vmem:[%s6123_s16 + $0x858] sm:$0xff] }
 0x1cb   : > { %4340 = vmatprep.subr.bf16.mxu0 %v4339_v34  ;;  %4980 = vmatprep.subr.bf16.mxu1 %v4979_v35  ;;  %v1498_v34 = vld [vmem:[%s6123_s16 + $0x800] sm:$0xff]  ;;  %v1513_v20 = vld [vmem:[%s6123_s16 + $0x878] sm:$0xff] }
 0x1cc   : > { %v1502_v35 = vld [vmem:[%s6123_s16 + $0x820] sm:$0xff]  ;;  %v723_v41 = vadd.f32 %v6337_v51, %v431_v27  ;;  %v4995_v52 = vpack.c.bf16 %v1513_v20, %v1509_v23  ;;  %v1517_v51 = vld [vmem:[%s6123_s16 + $0x898] sm:$0xff]  ;;  %v4361_v27 = vpack.c.bf16 %v1518_v2, %v1514_v63  ;;  %v1544_v63 = vld [vmem:[%s6123_s16 + $0x970] sm:$0xff] }
 0x1cd   : > { %v1547_v2 = vld [vmem:[%s6123_s16 + $0x988] sm:$0xff] }
 0x1ce   : > { %4342 = vmatpush1.bf16.msra.mxu0 %v4341_v43  ;;  %4982 = vmatpush1.bf16.msra.mxu1 %v4981_v44  ;;  %v1224_v43 = vmax.f32 %v650_v30, 0.0  ;;  %v4353_v44 = vpack.c.bf16 %v1502_v35, %v1498_v34  ;;  %v1227_v60 = vmax.f32 %v723_v41, 0.0  ;;  %v5001_v30 = vpack.c.bf16 %v1520_v14, %v1516_v12  ;;  %v1530_v41 = vld [vmem:[%s6123_s16 + $0x900] sm:$0xff]  ;;  %v1553_v12 = vld [vmem:[%s6123_s16 + $0x9b8] sm:$0xff] }
 0x1cf   : > { %4344 = vmatprep.subr.bf16.mxu0 %v4343_v48  ;;  %4984 = vmatprep.subr.bf16.mxu1 %v4983_v49  ;;  %v1510_v48 = vld [vmem:[%s6123_s16 + $0x860] sm:$0xff]  ;;  %v4355_v49 = vpack.c.bf16 %v1511_v6, %v1507_v32  ;;  %v4363_v34 = vpack.c.bf16 %v1527_v18, %v1523_v17  ;;  %v5003_v35 = vpack.c.bf16 %v1529_v26, %v1525_v24  ;;  %v1533_v32 = vld [vmem:[%s6123_s16 + $0x918] sm:$0xff] }
 0x1d0   : > { %v1537_v6 = vld [vmem:[%s6123_s16 + $0x938] sm:$0xff]  ;;  %v1546_v18 = vld [vmem:[%s6123_s16 + $0x980] sm:$0xff] }
 0x1d1   : > { %v1550_v24 = vld [vmem:[%s6123_s16 + $0x9a0] sm:$0xff] }
 0x1d2   : > { %4346 = vmatpush1.bf16.msra.mxu0 %v4345_v61  ;;  %4986 = vmatpush1.bf16.msra.mxu1 %v4985_v62  ;;  %v4357_v61 = vpack.c.bf16 %v1510_v48, %v1506_v47  ;;  %v4997_v62 = vpack.c.bf16 %v1512_v55, %v1508_v53  ;;  %v1532_v47 = vld [vmem:[%s6123_s16 + $0x910] sm:$0xff]  ;;  %v1541_v53 = vld [vmem:[%s6123_s16 + $0x958] sm:$0xff] }
 0x1d3   : > { %4348 = vmatprep.subr.bf16.mxu0 %v4347_v10  ;;  %4988 = vmatprep.subr.bf16.mxu1 %v4987_v11  ;;  %v4359_v10 = vpack.c.bf16 %v1519_v57, %v1515_v56  ;;  %v4999_v11 = vpack.c.bf16 %v1521_v59, %v1517_v51  ;;  %v1536_v48 = vld [vmem:[%s6123_s16 + $0x930] sm:$0xff]  ;;  %v1545_v55 = vld [vmem:[%s6123_s16 + $0x978] sm:$0xff]  ;;  %v1538_v51 = vld [vmem:[%s6123_s16 + $0x940] sm:$0xff] }
 0x1d4   : > { %v5009_v57 = vpack.c.bf16 %v1536_v48, %v1532_v47  ;;  %v1542_v59 = vld [vmem:[%s6123_s16 + $0x960] sm:$0xff]  ;;  %v1569_v47 = vld [vmem:[%s6123_s16 + $0xa38] sm:$0xff] }
 0x1d5   : > { %v4373_v14 = vpack.c.bf16 %v1542_v59, %v1538_v51  ;;  %v1568_v51 = vld [vmem:[%s6123_s16 + $0xa30] sm:$0xff]  ;;  %v1571_v59 = vld [vmem:[%s6123_s16 + $0xa48] sm:$0xff] }
 0x1d6   : > { %4350 = vmatpush1.bf16.msra.mxu0 %v4349_v31  ;;  %4990 = vmatpush1.bf16.msra.mxu1 %v4989_v33  ;;  %v1522_v31 = vld [vmem:[%s6123_s16 + $0x8c0] sm:$0xff] }
 0x1d7   : > { %4352 = vmatprep.subr.bf16.mxu0 %v4351_v37  ;;  %4992 = vmatprep.subr.bf16.mxu1 %v4991_v38  ;;  %v1526_v33 = vld [vmem:[%s6123_s16 + $0x8e0] sm:$0xff]  ;;  %v1524_v37 = vld [vmem:[%s6123_s16 + $0x8d0] sm:$0xff] }
 0x1d8   : > { %v1528_v38 = vld [vmem:[%s6123_s16 + $0x8f0] sm:$0xff]  ;;  %v4365_v23 = vpack.c.bf16 %v1526_v33, %v1522_v31  ;;  %v1555_v33 = vld [vmem:[%s6123_s16 + $0x9c8] sm:$0xff] }
 0x1d9   : > { %2680 = vmatmul.mubr.f32.vlgmr.msra.gmra.mrb[10].mxu0 %v1224_v43  ;;  %3390 = vmatmul.mubr.f32.vlgmr.msra.gmra.mrb[10].mxu1 %v1224_v43  ;;  %v5005_v20 = vpack.c.bf16 %v1528_v38, %v1524_v37  ;;  %v1534_v43 = vld [vmem:[%s6123_s16 + $0x920] sm:$0xff]  ;;  %v1552_v31 = vld [vmem:[%s6123_s16 + $0x9b0] sm:$0xff]  ;;  %v1561_v37 = vld [vmem:[%s6123_s16 + $0x9f8] sm:$0xff]  ;;  %v4377_v38 = vpack.c.bf16 %v1550_v24, %v1546_v18 }
 0x1da   : > { %4354 = vmatpush1.bf16.msra.mxu0 %v4353_v44  ;;  %4994 = vmatpush1.bf16.msra.mxu1 %v4993_v36  ;;  %v4367_v44 = vpack.c.bf16 %v1535_v40, %v1531_v39  ;;  %v5007_v36 = vpack.c.bf16 %v1537_v6, %v1533_v32  ;;  %v4369_v56 = vpack.c.bf16 %v1534_v43, %v1530_v41  ;;  %v1554_v40 = vld [vmem:[%s6123_s16 + $0x9c0] sm:$0xff]  ;;  %v1560_v41 = vld [vmem:[%s6123_s16 + $0x9f0] sm:$0xff]  ;;  %v1563_v43 = vld [vmem:[%s6123_s16 + $0xa08] sm:$0xff] }
 0x1db   : > { %4356 = vmatprep.subr.bf16.mxu0 %v4355_v49  ;;  %4996 = vmatprep.subr.bf16.mxu1 %v4995_v52  ;;  %v1539_v49 = vld [vmem:[%s6123_s16 + $0x948] sm:$0xff]  ;;  %v1558_v32 = vld [vmem:[%s6123_s16 + $0x9e0] sm:$0xff]  ;;  %v1576_v18 = vld [vmem:[%s6123_s16 + $0xa70] sm:$0xff] }
 0x1dc   : > { %2750 = vmatprep.mubr.f32.mxu0 %v1227_v60  ;;  %3460 = vmatprep.mubr.f32.mxu1 %v1227_v60  ;;  %v1543_v52 = vld [vmem:[%s6123_s16 + $0x968] sm:$0xff]  ;;  %v4381_v48 = vpack.c.bf16 %v1558_v32, %v1554_v40  ;;  %v1584_v40 = vld [vmem:[%s6123_s16 + $0xab0] sm:$0xff] }
 0x1dd   : > { %v4371_v60 = vpack.c.bf16 %v1543_v52, %v1539_v49  ;;  %v1562_v52 = vld [vmem:[%s6123_s16 + $0xa00] sm:$0xff]  ;;  %v1579_v24 = vld [vmem:[%s6123_s16 + $0xa88] sm:$0xff] }
 0x1de   : > { %4358 = vmatpush1.bf16.msra.mxu0 %v4357_v61  ;;  %4998 = vmatpush1.bf16.msra.mxu1 %v4997_v62  ;;  %v5011_v61 = vpack.c.bf16 %v1545_v55, %v1541_v53  ;;  %v1540_v62 = vld [vmem:[%s6123_s16 + $0x950] sm:$0xff]  ;;  %v1566_v53 = vld [vmem:[%s6123_s16 + $0xa20] sm:$0xff]  ;;  %v1587_v32 = vld [vmem:[%s6123_s16 + $0xac8] sm:$0xff] }
 0x1df   : > { %4360 = vmatprep.subr.bf16.mxu0 %v4359_v10  ;;  %5000 = vmatprep.subr.bf16.mxu1 %v4999_v11  ;;  %v1551_v10 = vld [vmem:[%s6123_s16 + $0x9a8] sm:$0xff]  ;;  %v1549_v11 = vld [vmem:[%s6123_s16 + $0x998] sm:$0xff]  ;;  %v5013_v17 = vpack.c.bf16 %v1544_v63, %v1540_v62  ;;  %v4385_v63 = vpack.c.bf16 %v1566_v53, %v1562_v52  ;;  %v1592_v52 = vld [vmem:[%s6123_s16 + $0xaf0] sm:$0xff] }
 0x1e0   : > { %v4375_v26 = vpack.c.bf16 %v1551_v10, %v1547_v2  ;;  %v1577_v62 = vld [vmem:[%s6123_s16 + $0xa78] sm:$0xff]  ;;  %v1570_v10 = vld [vmem:[%s6123_s16 + $0xa40] sm:$0xff]  ;;  %v1595_v53 = vld [vmem:[%s6123_s16 + $0xb08] sm:$0xff] }
 0x1e2   : > { %4362 = vmatpush1.bf16.msra.mxu0 %v4361_v27  ;;  %5002 = vmatpush1.bf16.msra.mxu1 %v5001_v30  ;;  %v5015_v27 = vpack.c.bf16 %v1553_v12, %v1549_v11  ;;  %v1548_v30 = vld [vmem:[%s6123_s16 + $0x990] sm:$0xff]  ;;  %v1574_v11 = vld [vmem:[%s6123_s16 + $0xa60] sm:$0xff] }
 0x1e3   : > { %4364 = vmatprep.subr.bf16.mxu0 %v4363_v34  ;;  %5004 = vmatprep.subr.bf16.mxu1 %v5003_v35  ;;  %v1559_v34 = vld [vmem:[%s6123_s16 + $0x9e8] sm:$0xff]  ;;  %v1557_v35 = vld [vmem:[%s6123_s16 + $0x9d8] sm:$0xff]  ;;  %v5017_v39 = vpack.c.bf16 %v1552_v31, %v1548_v30  ;;  %v4389_v31 = vpack.c.bf16 %v1574_v11, %v1570_v10  ;;  %v1600_v10 = vld [vmem:[%s6123_s16 + $0xb30] sm:$0xff] }
 0x1e4   : > { %v4379_v6 = vpack.c.bf16 %v1559_v34, %v1555_v33  ;;  %v1585_v30 = vld [vmem:[%s6123_s16 + $0xab8] sm:$0xff]  ;;  %v1578_v34 = vld [vmem:[%s6123_s16 + $0xa80] sm:$0xff]  ;;  %v1603_v11 = vld [vmem:[%s6123_s16 + $0xb48] sm:$0xff] }
 0x1e6   : > { %4366 = vmatpush1.bf16.msra.mxu0 %v4365_v23  ;;  %5006 = vmatpush1.bf16.msra.mxu1 %v5005_v20  ;;  %v5019_v23 = vpack.c.bf16 %v1561_v37, %v1557_v35  ;;  %v1556_v20 = vld [vmem:[%s6123_s16 + $0x9d0] sm:$0xff]  ;;  %v1582_v35 = vld [vmem:[%s6123_s16 + $0xaa0] sm:$0xff] }
 0x1e7   : > { %4368 = vmatprep.subr.bf16.mxu0 %v4367_v44  ;;  %5008 = vmatprep.subr.bf16.mxu1 %v5007_v36  ;;  %v1567_v44 = vld [vmem:[%s6123_s16 + $0xa28] sm:$0xff]  ;;  %v1565_v36 = vld [vmem:[%s6123_s16 + $0xa18] sm:$0xff]  ;;  %v5021_v49 = vpack.c.bf16 %v1560_v41, %v1556_v20  ;;  %v4393_v41 = vpack.c.bf16 %v1582_v35, %v1578_v34  ;;  %v1608_v34 = vld [vmem:[%s6123_s16 + $0xb70] sm:$0xff] }
 0x1e8   : > { %v4383_v55 = vpack.c.bf16 %v1567_v44, %v1563_v43  ;;  %v1593_v20 = vld [vmem:[%s6123_s16 + $0xaf8] sm:$0xff]  ;;  %v1586_v44 = vld [vmem:[%s6123_s16 + $0xac0] sm:$0xff]  ;;  %v1611_v35 = vld [vmem:[%s6123_s16 + $0xb88] sm:$0xff] }
 0x1ea   : > { %4370 = vmatpush1.bf16.msra.mxu0 %v4369_v56  ;;  %5010 = vmatpush1.bf16.msra.mxu1 %v5009_v57  ;;  %v5023_v56 = vpack.c.bf16 %v1569_v47, %v1565_v36  ;;  %v1564_v57 = vld [vmem:[%s6123_s16 + $0xa10] sm:$0xff]  ;;  %v1590_v36 = vld [vmem:[%s6123_s16 + $0xae0] sm:$0xff] }
 0x1eb   : > { %4372 = vmatprep.subr.bf16.mxu0 %v4371_v60  ;;  %5012 = vmatprep.subr.bf16.mxu1 %v5011_v61  ;;  %v1575_v60 = vld [vmem:[%s6123_s16 + $0xa68] sm:$0xff]  ;;  %v1573_v61 = vld [vmem:[%s6123_s16 + $0xa58] sm:$0xff]  ;;  %v5025_v2 = vpack.c.bf16 %v1568_v51, %v1564_v57  ;;  %v4397_v51 = vpack.c.bf16 %v1590_v36, %v1586_v44  ;;  %v1616_v44 = vld [vmem:[%s6123_s16 + $0xbb0] sm:$0xff] }
 0x1ec   : > { %v4387_v12 = vpack.c.bf16 %v1575_v60, %v1571_v59  ;;  %v1601_v57 = vld [vmem:[%s6123_s16 + $0xb38] sm:$0xff]  ;;  %v1594_v60 = vld [vmem:[%s6123_s16 + $0xb00] sm:$0xff]  ;;  %v1619_v36 = vld [vmem:[%s6123_s16 + $0xbc8] sm:$0xff] }
 0x1ee   : > { %4374 = vmatpush1.bf16.msra.mxu0 %v4373_v14  ;;  %5014 = vmatpush1.bf16.msra.mxu1 %v5013_v17  ;;  %v5027_v14 = vpack.c.bf16 %v1577_v62, %v1573_v61  ;;  %v1572_v17 = vld [vmem:[%s6123_s16 + $0xa50] sm:$0xff]  ;;  %v1598_v61 = vld [vmem:[%s6123_s16 + $0xb20] sm:$0xff] }
 0x1ef   : > { %4376 = vmatprep.subr.bf16.mxu0 %v4375_v26  ;;  %5016 = vmatprep.subr.bf16.mxu1 %v5015_v27  ;;  %v1583_v26 = vld [vmem:[%s6123_s16 + $0xaa8] sm:$0xff]  ;;  %v1581_v27 = vld [vmem:[%s6123_s16 + $0xa98] sm:$0xff]  ;;  %v5029_v33 = vpack.c.bf16 %v1576_v18, %v1572_v17  ;;  %v4401_v18 = vpack.c.bf16 %v1598_v61, %v1594_v60 }
 0x1f0   : > { %v4391_v37 = vpack.c.bf16 %v1583_v26, %v1579_v24  ;;  %v1609_v17 = vld [vmem:[%s6123_s16 + $0xb78] sm:$0xff]  ;;  %v1602_v26 = vld [vmem:[%s6123_s16 + $0xb40] sm:$0xff] }
 0x1f2   : > { %4378 = vmatpush1.bf16.msra.mxu0 %v4377_v38  ;;  %5018 = vmatpush1.bf16.msra.mxu1 %v5017_v39  ;;  %v5031_v38 = vpack.c.bf16 %v1585_v30, %v1581_v27  ;;  %v1580_v39 = vld [vmem:[%s6123_s16 + $0xa90] sm:$0xff]  ;;  %v1606_v27 = vld [vmem:[%s6123_s16 + $0xb60] sm:$0xff] }
 0x1f3   : > { %4380 = vmatprep.subr.bf16.mxu0 %v4379_v6  ;;  %5020 = vmatprep.subr.bf16.mxu1 %v5019_v23  ;;  %v1591_v6 = vld [vmem:[%s6123_s16 + $0xae8] sm:$0xff]  ;;  %v1589_v23 = vld [vmem:[%s6123_s16 + $0xad8] sm:$0xff]  ;;  %v5033_v43 = vpack.c.bf16 %v1584_v40, %v1580_v39  ;;  %v4405_v40 = vpack.c.bf16 %v1606_v27, %v1602_v26  ;;  %v1626_v26 = vld [vmem:[%s6123_s16 + $0xc00] sm:$0xff] }
 0x1f4   : > { %v4395_v47 = vpack.c.bf16 %v1591_v6, %v1587_v32  ;;  %v1617_v39 = vld [vmem:[%s6123_s16 + $0xbb8] sm:$0xff]  ;;  %v1610_v6 = vld [vmem:[%s6123_s16 + $0xb80] sm:$0xff] }
 0x1f5   : > { %v1630_v27 = vld [vmem:[%s6123_s16 + $0xc20] sm:$0xff] }
 0x1f6   : > { %4382 = vmatpush1.bf16.msra.mxu0 %v4381_v48  ;;  %5022 = vmatpush1.bf16.msra.mxu1 %v5021_v49  ;;  %v5035_v48 = vpack.c.bf16 %v1593_v20, %v1589_v23  ;;  %v1588_v49 = vld [vmem:[%s6123_s16 + $0xad0] sm:$0xff]  ;;  %v1614_v23 = vld [vmem:[%s6123_s16 + $0xba0] sm:$0xff] }
 0x1f7   : > { %4384 = vmatprep.subr.bf16.mxu0 %v4383_v55  ;;  %5024 = vmatprep.subr.bf16.mxu1 %v5023_v56  ;;  %v1599_v55 = vld [vmem:[%s6123_s16 + $0xb28] sm:$0xff]  ;;  %v1597_v56 = vld [vmem:[%s6123_s16 + $0xb18] sm:$0xff]  ;;  %v5037_v59 = vpack.c.bf16 %v1592_v52, %v1588_v49 }
 0x1f8   : > { %v4399_v62 = vpack.c.bf16 %v1599_v55, %v1595_v53  ;;  %v1625_v49 = vld [vmem:[%s6123_s16 + $0xbf8] sm:$0xff]  ;;  %v6620_v52 = vld [vmem:[#allocation7] sm:$0xff]  ;;  %v4409_v55 = vpack.c.bf16 %v1614_v23, %v1610_v6 }
 0x1f9   : > { %v427_v53 = vrot.slane %v6620_v52, %v426_v0  ;;  %v1627_v0 = vld [vmem:[%s6123_s16 + $0xc08] sm:$0xff]  ;;  %v1636_v6 = vld [vmem:[%s6123_s16 + $0xc50] sm:$0xff] }
 0x1fa   : > { %4386 = vmatpush1.bf16.msra.mxu0 %v4385_v63  ;;  %5026 = vmatpush1.bf16.msra.mxu1 %v5025_v2  ;;  %v5039_v63 = vpack.c.bf16 %v1601_v57, %v1597_v56  ;;  %v1596_v2 = vld [vmem:[%s6123_s16 + $0xb10] sm:$0xff]  ;;  %v439_v57 = vrot.slane %v6620_v52, %v438_v21 }
 0x1fb   : > { %4388 = vmatprep.subr.bf16.mxu0 %v4387_v12  ;;  %5028 = vmatprep.subr.bf16.mxu1 %v5027_v14  ;;  %v1607_v12 = vld [vmem:[%s6123_s16 + $0xb68] sm:$0xff]  ;;  %v1605_v14 = vld [vmem:[%s6123_s16 + $0xb58] sm:$0xff]  ;;  %v5041_v24 = vpack.c.bf16 %v1600_v10, %v1596_v2 }
 0x1fc   : > { %v4403_v30 = vpack.c.bf16 %v1607_v12, %v1603_v11  ;;  %v1631_v2 = vld [vmem:[%s6123_s16 + $0xc28] sm:$0xff]  ;;  %v1629_v10 = vld [vmem:[%s6123_s16 + $0xc18] sm:$0xff]  ;;  %v721_v12 = vadd.f32 %v6332_v45, %v427_v53  ;;  %v794_v21 = vadd.f32 %v6350_v1, %v439_v57  ;;  %v1632_v45 = vld [vmem:[%s6123_s16 + $0xc30] sm:$0xff] }
 0x1fd   : > { %v1633_v11 = vld [vmem:[%s6123_s16 + $0xc38] sm:$0xff]  ;;  %v1644_v57 = vld [vmem:[%s6123_s16 + $0xc90] sm:$0xff] }
 0x1fe   : > { %4390 = vmatpush1.bf16.msra.mxu0 %v4389_v31  ;;  %5030 = vmatpush1.bf16.msra.mxu1 %v5029_v33  ;;  %v5043_v31 = vpack.c.bf16 %v1609_v17, %v1605_v14  ;;  %v1604_v33 = vld [vmem:[%s6123_s16 + $0xb50] sm:$0xff]  ;;  %v1641_v1 = vld [vmem:[%s6123_s16 + $0xc78] sm:$0xff] }
 0x1ff   : > { %4392 = vmatprep.subr.bf16.mxu0 %v4391_v37  ;;  %5032 = vmatprep.subr.bf16.mxu1 %v5031_v38  ;;  %v1615_v37 = vld [vmem:[%s6123_s16 + $0xba8] sm:$0xff]  ;;  %v1613_v38 = vld [vmem:[%s6123_s16 + $0xb98] sm:$0xff]  ;;  %v5045_v32 = vpack.c.bf16 %v1608_v34, %v1604_v33  ;;  %v1226_v33 = vmax.f32 %v721_v12, 0.0  ;;  %v1654_v12 = vld [vmem:[%s6123_s16 + $0xce0] sm:$0xff] }
 0x200   : > { %v4407_v20 = vpack.c.bf16 %v1615_v37, %v1611_v35  ;;  %v1639_v34 = vld [vmem:[%s6123_s16 + $0xc68] sm:$0xff]  ;;  %v1637_v35 = vld [vmem:[%s6123_s16 + $0xc58] sm:$0xff]  ;;  %v1229_v37 = vmax.f32 %v794_v21, 0.0  ;;  %v1652_v21 = vld [vmem:[%s6123_s16 + $0xcd0] sm:$0xff] }
 0x202   : > { %4394 = vmatpush1.bf16.msra.mxu0 %v4393_v41  ;;  %5034 = vmatpush1.bf16.msra.mxu1 %v5033_v43  ;;  %v5047_v41 = vpack.c.bf16 %v1617_v39, %v1613_v38  ;;  %v1612_v43 = vld [vmem:[%s6123_s16 + $0xb90] sm:$0xff]  ;;  %v4417_v38 = vpack.c.bf16 %v1630_v27, %v1626_v26  ;;  %v1661_v26 = vld [vmem:[%s6123_s16 + $0xd18] sm:$0xff] }
 0x203   : > { %4396 = vmatprep.subr.bf16.mxu0 %v4395_v47  ;;  %5036 = vmatprep.subr.bf16.mxu1 %v5035_v48  ;;  %v1623_v47 = vld [vmem:[%s6123_s16 + $0xbe8] sm:$0xff]  ;;  %v1621_v48 = vld [vmem:[%s6123_s16 + $0xbd8] sm:$0xff]  ;;  %v5049_v56 = vpack.c.bf16 %v1616_v44, %v1612_v43 }
 0x204   : > { %v4411_v60 = vpack.c.bf16 %v1623_v47, %v1619_v36  ;;  %v5051_v61 = vpack.c.bf16 %v1625_v49, %v1621_v48  ;;  %v1643_v43 = vld [vmem:[%s6123_s16 + $0xc88] sm:$0xff]  ;;  %v1645_v36 = vld [vmem:[%s6123_s16 + $0xc98] sm:$0xff] }
 0x205   : > { %v1647_v44 = vld [vmem:[%s6123_s16 + $0xca8] sm:$0xff]  ;;  %v1649_v47 = vld [vmem:[%s6123_s16 + $0xcb8] sm:$0xff] }
 0x206   : > { %4398 = vmatpush1.bf16.msra.mxu0 %v4397_v51  ;;  %5038 = vmatpush1.bf16.msra.mxu1 %v5037_v59  ;;  %v1618_v51 = vld [vmem:[%s6123_s16 + $0xbc0] sm:$0xff]  ;;  %v4423_v53 = vpack.c.bf16 %v1647_v44, %v1643_v43  ;;  %v1665_v27 = vld [vmem:[%s6123_s16 + $0xd38] sm:$0xff]  ;;  %v1668_v44 = vld [vmem:[%s6123_s16 + $0xd50] sm:$0xff] }
 0x207   : > { %4400 = vmatprep.subr.bf16.mxu0 %v4399_v62  ;;  %5040 = vmatprep.subr.bf16.mxu1 %v5039_v63  ;;  %v1622_v59 = vld [vmem:[%s6123_s16 + $0xbe0] sm:$0xff]  ;;  %v1620_v62 = vld [vmem:[%s6123_s16 + $0xbd0] sm:$0xff] }
 0x208   : > { %v1624_v63 = vld [vmem:[%s6123_s16 + $0xbf0] sm:$0xff]  ;;  %v4413_v14 = vpack.c.bf16 %v1622_v59, %v1618_v51  ;;  %v5063_v51 = vpack.c.bf16 %v1649_v47, %v1645_v36  ;;  %v1670_v43 = vld [vmem:[%s6123_s16 + $0xd60] sm:$0xff] }
 0x209   : > { %v5053_v17 = vpack.c.bf16 %v1624_v63, %v1620_v62  ;;  %v1648_v59 = vld [vmem:[%s6123_s16 + $0xcb0] sm:$0xff]  ;;  %v1653_v62 = vld [vmem:[%s6123_s16 + $0xcd8] sm:$0xff] }
 0x20a   : > { %4402 = vmatpush1.bf16.msra.mxu0 %v4401_v18  ;;  %5042 = vmatpush1.bf16.msra.mxu1 %v5041_v24  ;;  %v4415_v18 = vpack.c.bf16 %v1631_v2, %v1627_v0  ;;  %v5055_v24 = vpack.c.bf16 %v1633_v11, %v1629_v10  ;;  %v1657_v63 = vld [vmem:[%s6123_s16 + $0xcf8] sm:$0xff]  ;;  %v5065_v2 = vpack.c.bf16 %v1648_v59, %v1644_v57  ;;  %v1650_v11 = vld [vmem:[%s6123_s16 + $0xcc0] sm:$0xff]  ;;  %v1672_v47 = vld [vmem:[%s6123_s16 + $0xd70] sm:$0xff] }
 0x20b   : > { %4404 = vmatprep.subr.bf16.mxu0 %v4403_v30  ;;  %5044 = vmatprep.subr.bf16.mxu1 %v5043_v31  ;;  %v1628_v30 = vld [vmem:[%s6123_s16 + $0xc10] sm:$0xff]  ;;  %v1635_v31 = vld [vmem:[%s6123_s16 + $0xc48] sm:$0xff]  ;;  %v5077_v57 = vpack.c.bf16 %v1672_v47, %v1668_v44  ;;  %v1674_v59 = vld [vmem:[%s6123_s16 + $0xd80] sm:$0xff] }
 0x20c   : > { %v5057_v39 = vpack.c.bf16 %v1632_v45, %v1628_v30  ;;  %v4419_v23 = vpack.c.bf16 %v1639_v34, %v1635_v31  ;;  %v4429_v30 = vpack.c.bf16 %v1654_v12, %v1650_v11  ;;  %v1662_v34 = vld [vmem:[%s6123_s16 + $0xd20] sm:$0xff]  ;;  %v1689_v11 = vld [vmem:[%s6123_s16 + $0xdf8] sm:$0xff] }
 0x20d   : > { %v1698_v47 = vld [vmem:[%s6123_s16 + $0xe40] sm:$0xff] }
 0x20e   : > { %4406 = vmatpush1.bf16.msra.mxu0 %v4405_v40  ;;  %5046 = vmatpush1.bf16.msra.mxu1 %v5045_v32  ;;  %v1634_v40 = vld [vmem:[%s6123_s16 + $0xc40] sm:$0xff] }
 0x20f   : > { %4408 = vmatprep.subr.bf16.mxu0 %v4407_v20  ;;  %5048 = vmatprep.subr.bf16.mxu1 %v5047_v41  ;;  %v1638_v32 = vld [vmem:[%s6123_s16 + $0xc60] sm:$0xff]  ;;  %v5059_v20 = vpack.c.bf16 %v1641_v1, %v1637_v35  ;;  %v1640_v41 = vld [vmem:[%s6123_s16 + $0xc70] sm:$0xff]  ;;  %v5071_v1 = vpack.c.bf16 %v1665_v27, %v1661_v26 }
 0x210   : > { %v4421_v48 = vpack.c.bf16 %v1638_v32, %v1634_v40  ;;  %v5061_v49 = vpack.c.bf16 %v1640_v41, %v1636_v6  ;;  %v1660_v35 = vld [vmem:[%s6123_s16 + $0xd10] sm:$0xff]  ;;  %v1669_v40 = vld [vmem:[%s6123_s16 + $0xd58] sm:$0xff]  ;;  %v1666_v41 = vld [vmem:[%s6123_s16 + $0xd40] sm:$0xff] }
 0x211   : > { %v1673_v32 = vld [vmem:[%s6123_s16 + $0xd78] sm:$0xff]  ;;  %v1688_v27 = vld [vmem:[%s6123_s16 + $0xdf0] sm:$0xff] }
 0x212   : > { %4410 = vmatpush1.bf16.msra.mxu0 %v4409_v55  ;;  %5050 = vmatpush1.bf16.msra.mxu1 %v5049_v56  ;;  %v1642_v55 = vld [vmem:[%s6123_s16 + $0xc80] sm:$0xff]  ;;  %v5075_v36 = vpack.c.bf16 %v1673_v32, %v1669_v40  ;;  %v1696_v32 = vld [vmem:[%s6123_s16 + $0xe30] sm:$0xff] }
 0x213   : > { %4412 = vmatprep.subr.bf16.mxu0 %v4411_v60  ;;  %5052 = vmatprep.subr.bf16.mxu1 %v5051_v61  ;;  %v1646_v56 = vld [vmem:[%s6123_s16 + $0xca0] sm:$0xff]  ;;  %v1651_v60 = vld [vmem:[%s6123_s16 + $0xcc8] sm:$0xff] }
 0x214   : > { %v1655_v61 = vld [vmem:[%s6123_s16 + $0xce8] sm:$0xff]  ;;  %v4425_v0 = vpack.c.bf16 %v1646_v56, %v1642_v55  ;;  %v1681_v55 = vld [vmem:[%s6123_s16 + $0xdb8] sm:$0xff]  ;;  %v4437_v56 = vpack.c.bf16 %v1670_v43, %v1666_v41 }
 0x215   : > { %v4427_v10 = vpack.c.bf16 %v1655_v61, %v1651_v60  ;;  %v1678_v60 = vld [vmem:[%s6123_s16 + $0xda0] sm:$0xff]  ;;  %v1676_v61 = vld [vmem:[%s6123_s16 + $0xd90] sm:$0xff]  ;;  %v1705_v41 = vld [vmem:[%s6123_s16 + $0xe78] sm:$0xff] }
 0x216   : > { %4414 = vmatpush1.bf16.msra.mxu0 %v4413_v14  ;;  %5054 = vmatpush1.bf16.msra.mxu1 %v5053_v17  ;;  %v5067_v14 = vpack.c.bf16 %v1657_v63, %v1653_v62  ;;  %v1656_v17 = vld [vmem:[%s6123_s16 + $0xcf0] sm:$0xff]  ;;  %v4441_v12 = vpack.c.bf16 %v1678_v60, %v1674_v59  ;;  %v1713_v59 = vld [vmem:[%s6123_s16 + $0xeb8] sm:$0xff] }
 0x217   : > { %4416 = vmatprep.subr.bf16.mxu0 %v4415_v18  ;;  %5056 = vmatprep.subr.bf16.mxu1 %v5055_v24  ;;  %v1659_v18 = vld [vmem:[%s6123_s16 + $0xd08] sm:$0xff]  ;;  %v5069_v45 = vpack.c.bf16 %v1656_v17, %v1652_v21  ;;  %v1680_v63 = vld [vmem:[%s6123_s16 + $0xdb0] sm:$0xff]  ;;  %v1682_v17 = vld [vmem:[%s6123_s16 + $0xdc0] sm:$0xff] }
 0x218   : > { %v1663_v24 = vld [vmem:[%s6123_s16 + $0xd28] sm:$0xff]  ;;  %v5081_v21 = vpack.c.bf16 %v1680_v63, %v1676_v61  ;;  %v1706_v63 = vld [vmem:[%s6123_s16 + $0xe80] sm:$0xff] }
 0x219   : > { %2751 = vmatmul.mubr.f32.vlgmr.msra.gmra.mrb[10].mxu0 %v1226_v33  ;;  %3461 = vmatmul.mubr.f32.vlgmr.msra.gmra.mrb[10].mxu1 %v1226_v33  ;;  %v4431_v31 = vpack.c.bf16 %v1663_v24, %v1659_v18  ;;  %v1658_v33 = vld [vmem:[%s6123_s16 + $0xd00] sm:$0xff]  ;;  %v1684_v24 = vld [vmem:[%s6123_s16 + $0xdd0] sm:$0xff] }
 0x21a   : > { %4418 = vmatpush1.bf16.msra.mxu0 %v4417_v38  ;;  %2821 = vmatprep.mubr.f32.mxu0 %v1229_v37  ;;  %v1667_v38 = vld [vmem:[%s6123_s16 + $0xd48] sm:$0xff]  ;;  %v4433_v6 = vpack.c.bf16 %v1662_v34, %v1658_v33  ;;  %v1686_v18 = vld [vmem:[%s6123_s16 + $0xde0] sm:$0xff]  ;;  %v1697_v33 = vld [vmem:[%s6123_s16 + $0xe38] sm:$0xff] }
 0x21b   : > { %5058 = vmatpush1.bf16.msra.mxu1 %v5057_v39  ;;  %3531 = vmatprep.mubr.f32.mxu1 %v1229_v37  ;;  %v1664_v37 = vld [vmem:[%s6123_s16 + $0xd30] sm:$0xff]  ;;  %v1671_v39 = vld [vmem:[%s6123_s16 + $0xd68] sm:$0xff]  ;;  %v4445_v34 = vpack.c.bf16 %v1686_v18, %v1682_v17  ;;  %v1721_v17 = vld [vmem:[%s6123_s16 + $0xef8] sm:$0xff] }
 0x21c   : > { %4420 = vmatprep.subr.bf16.mxu0 %v4419_v23  ;;  %5060 = vmatprep.subr.bf16.mxu1 %v5059_v20  ;;  %v5073_v23 = vpack.c.bf16 %v1664_v37, %v1660_v35  ;;  %v4435_v20 = vpack.c.bf16 %v1671_v39, %v1667_v38  ;;  %v5085_v35 = vpack.c.bf16 %v1688_v27, %v1684_v24  ;;  %v1690_v37 = vld [vmem:[%s6123_s16 + $0xe00] sm:$0xff]  ;;  %v1692_v39 = vld [vmem:[%s6123_s16 + $0xe10] sm:$0xff] }
 0x21d   : > { %v1694_v38 = vld [vmem:[%s6123_s16 + $0xe20] sm:$0xff]  ;;  %v5089_v44 = vpack.c.bf16 %v1696_v32, %v1692_v39 }
 0x21e   : > { %4422 = vmatpush1.bf16.msra.mxu0 %v4421_v48  ;;  %v1675_v48 = vld [vmem:[%s6123_s16 + $0xd88] sm:$0xff]  ;;  %v4449_v43 = vpack.c.bf16 %v1694_v38, %v1690_v37  ;;  %v1714_v27 = vld [vmem:[%s6123_s16 + $0xec0] sm:$0xff]  ;;  %v1729_v37 = vld [vmem:[%s6123_s16 + $0xf38] sm:$0xff] }
 0x21f   : > { %5062 = vmatpush1.bf16.msra.mxu1 %v5061_v49  ;;  %4424 = vmatprep.subr.bf16.mxu0 %v4423_v53  ;;  %v1679_v49 = vld [vmem:[%s6123_s16 + $0xda8] sm:$0xff]  ;;  %v1677_v53 = vld [vmem:[%s6123_s16 + $0xd98] sm:$0xff]  ;;  %v1722_v32 = vld [vmem:[%s6123_s16 + $0xf00] sm:$0xff] }
 0x220   : > { %5064 = vmatprep.subr.bf16.mxu1 %v5063_v51  ;;  %v4439_v51 = vpack.c.bf16 %v1679_v49, %v1675_v48  ;;  %v5079_v62 = vpack.c.bf16 %v1681_v55, %v1677_v53  ;;  %v1702_v48 = vld [vmem:[%s6123_s16 + $0xe60] sm:$0xff]  ;;  %v1700_v49 = vld [vmem:[%s6123_s16 + $0xe50] sm:$0xff] }
 0x221   : > { %v1704_v55 = vld [vmem:[%s6123_s16 + $0xe70] sm:$0xff]  ;;  %v4453_v60 = vpack.c.bf16 %v1702_v48, %v1698_v47  ;;  %v1737_v47 = vld [vmem:[%s6123_s16 + $0xf78] sm:$0xff] }
 0x222   : > { %4426 = vmatpush1.bf16.msra.mxu0 %v4425_v0  ;;  %v1683_v0 = vld [vmem:[%s6123_s16 + $0xdc8] sm:$0xff]  ;;  %v5093_v61 = vpack.c.bf16 %v1704_v55, %v1700_v49  ;;  %v1730_v55 = vld [vmem:[%s6123_s16 + $0xf40] sm:$0xff] }
 0x223   : > { %5066 = vmatpush1.bf16.msra.mxu1 %v5065_v2  ;;  %4428 = vmatprep.subr.bf16.mxu0 %v4427_v10  ;;  %v1687_v2 = vld [vmem:[%s6123_s16 + $0xde8] sm:$0xff]  ;;  %v1685_v10 = vld [vmem:[%s6123_s16 + $0xdd8] sm:$0xff] }
 0x224   : > { %5068 = vmatprep.subr.bf16.mxu1 %v5067_v14  ;;  %v4443_v14 = vpack.c.bf16 %v1687_v2, %v1683_v0  ;;  %v5083_v26 = vpack.c.bf16 %v1689_v11, %v1685_v10  ;;  %v1710_v0 = vld [vmem:[%s6123_s16 + $0xea0] sm:$0xff]  ;;  %v1708_v2 = vld [vmem:[%s6123_s16 + $0xe90] sm:$0xff] }
 0x225   : > { %v1712_v11 = vld [vmem:[%s6123_s16 + $0xeb0] sm:$0xff]  ;;  %v4457_v18 = vpack.c.bf16 %v1710_v0, %v1706_v63  ;;  %v1745_v63 = vld [vmem:[%s6123_s16 + $0xfb8] sm:$0xff] }
 0x226   : > { %4430 = vmatpush1.bf16.msra.mxu0 %v4429_v30  ;;  %v1691_v30 = vld [vmem:[%s6123_s16 + $0xe08] sm:$0xff]  ;;  %v5097_v24 = vpack.c.bf16 %v1712_v11, %v1708_v2  ;;  %v1738_v11 = vld [vmem:[%s6123_s16 + $0xf80] sm:$0xff] }
 0x227   : > { %5070 = vmatpush1.bf16.msra.mxu1 %v5069_v45  ;;  %4432 = vmatprep.subr.bf16.mxu0 %v4431_v31  ;;  %v1695_v45 = vld [vmem:[%s6123_s16 + $0xe28] sm:$0xff]  ;;  %v1693_v31 = vld [vmem:[%s6123_s16 + $0xe18] sm:$0xff] }
 0x228   : > { %5072 = vmatprep.subr.bf16.mxu1 %v5071_v1  ;;  %v4447_v1 = vpack.c.bf16 %v1695_v45, %v1691_v30  ;;  %v5087_v40 = vpack.c.bf16 %v1697_v33, %v1693_v31  ;;  %v1718_v30 = vld [vmem:[%s6123_s16 + $0xee0] sm:$0xff]  ;;  %v1716_v45 = vld [vmem:[%s6123_s16 + $0xed0] sm:$0xff] }
 0x229   : > { %v1720_v33 = vld [vmem:[%s6123_s16 + $0xef0] sm:$0xff]  ;;  %v4461_v38 = vpack.c.bf16 %v1718_v30, %v1714_v27  ;;  %v1753_v27 = vld [vmem:[%s6123_s16 + $0xff8] sm:$0xff] }
 0x22a   : > { %4434 = vmatpush1.bf16.msra.mxu0 %v4433_v6  ;;  %v1699_v6 = vld [vmem:[%s6123_s16 + $0xe48] sm:$0xff]  ;;  %v5101_v39 = vpack.c.bf16 %v1720_v33, %v1716_v45  ;;  %v435_v45 = vrot.slane %v6620_v52, %v434_v16  ;;  %v447_v16 = vrot.slane %v6767_v4, %v6301_v7  ;;  %v1757_v52 = vld [vmem:[%s6123_s16 + $0x1018] sm:$0xff] }
 0x22b   : > { %5074 = vmatpush1.bf16.msra.mxu1 %v5073_v23  ;;  %4436 = vmatprep.subr.bf16.mxu0 %v4435_v20  ;;  %v1703_v23 = vld [vmem:[%s6123_s16 + $0xe68] sm:$0xff]  ;;  %v1701_v20 = vld [vmem:[%s6123_s16 + $0xe58] sm:$0xff] }
 0x22c   : > { %5076 = vmatprep.subr.bf16.mxu1 %v5075_v36  ;;  %v4451_v36 = vpack.c.bf16 %v1703_v23, %v1699_v6  ;;  %v5091_v53 = vpack.c.bf16 %v1705_v41, %v1701_v20  ;;  %v1726_v6 = vld [vmem:[%s6123_s16 + $0xf20] sm:$0xff]  ;;  %v1724_v23 = vld [vmem:[%s6123_s16 + $0xf10] sm:$0xff] }
 0x22d   : > { %v1728_v41 = vld [vmem:[%s6123_s16 + $0xf30] sm:$0xff]  ;;  %v4465_v48 = vpack.c.bf16 %v1726_v6, %v1722_v32  ;;  %v1761_v32 = vld [vmem:[%s6123_s16 + $0x1038] sm:$0xff] }
 0x22e   : > { %4438 = vmatpush1.bf16.msra.mxu0 %v4437_v56  ;;  %v1707_v56 = vld [vmem:[%s6123_s16 + $0xe88] sm:$0xff]  ;;  %v5105_v49 = vpack.c.bf16 %v1728_v41, %v1724_v23  ;;  %v792_v23 = vadd.f32 %v6345_v58, %v435_v45  ;;  %v1776_v45 = vld [vmem:[%s6123_s16 + $0x10b0] sm:$0xff] }
 0x22f   : > { %5078 = vmatpush1.bf16.msra.mxu1 %v5077_v57  ;;  %4440 = vmatprep.subr.bf16.mxu0 %v4439_v51  ;;  %v1711_v57 = vld [vmem:[%s6123_s16 + $0xea8] sm:$0xff]  ;;  %v1709_v51 = vld [vmem:[%s6123_s16 + $0xe98] sm:$0xff] }
 0x230   : > { %5080 = vmatprep.subr.bf16.mxu1 %v5079_v62  ;;  %v4455_v62 = vpack.c.bf16 %v1711_v57, %v1707_v56  ;;  %v5095_v10 = vpack.c.bf16 %v1713_v59, %v1709_v51  ;;  %v1734_v56 = vld [vmem:[%s6123_s16 + $0xf60] sm:$0xff]  ;;  %v1732_v57 = vld [vmem:[%s6123_s16 + $0xf50] sm:$0xff]  ;;  %v1767_v58 = vld [vmem:[%s6123_s16 + $0x1068] sm:$0xff] }
 0x231   : > { %v1736_v59 = vld [vmem:[%s6123_s16 + $0xf70] sm:$0xff]  ;;  %v4469_v0 = vpack.c.bf16 %v1734_v56, %v1730_v55  ;;  %v1765_v56 = vld [vmem:[%s6123_s16 + $0x1058] sm:$0xff] }
 0x232   : > { %4442 = vmatpush1.bf16.msra.mxu0 %v4441_v12  ;;  %v1715_v12 = vld [vmem:[%s6123_s16 + $0xec8] sm:$0xff]  ;;  %v5109_v2 = vpack.c.bf16 %v1736_v59, %v1732_v57  ;;  %v1769_v57 = vld [vmem:[%s6123_s16 + $0x1078] sm:$0xff] }
 0x233   : > { %5082 = vmatpush1.bf16.msra.mxu1 %v5081_v21  ;;  %4444 = vmatprep.subr.bf16.mxu0 %v4443_v14  ;;  %v1719_v21 = vld [vmem:[%s6123_s16 + $0xee8] sm:$0xff]  ;;  %v1717_v14 = vld [vmem:[%s6123_s16 + $0xed8] sm:$0xff] }
 0x234   : > { %5084 = vmatprep.subr.bf16.mxu1 %v5083_v26  ;;  %v4459_v26 = vpack.c.bf16 %v1719_v21, %v1715_v12  ;;  %v5099_v31 = vpack.c.bf16 %v1721_v17, %v1717_v14  ;;  %v1742_v12 = vld [vmem:[%s6123_s16 + $0xfa0] sm:$0xff]  ;;  %v1740_v21 = vld [vmem:[%s6123_s16 + $0xf90] sm:$0xff] }
 0x235   : > { %v1744_v17 = vld [vmem:[%s6123_s16 + $0xfb0] sm:$0xff]  ;;  %v4473_v30 = vpack.c.bf16 %v1742_v12, %v1738_v11  ;;  %v5123_v11 = vpack.c.bf16 %v1769_v57, %v1765_v56  ;;  %v1773_v12 = vld [vmem:[%s6123_s16 + $0x1098] sm:$0xff]  ;;  %v1799_v56 = vld [vmem:[%s6123_s16 + $0x1168] sm:$0xff] }
 0x236   : > { %4446 = vmatpush1.bf16.msra.mxu0 %v4445_v34  ;;  %v1723_v34 = vld [vmem:[%s6123_s16 + $0xf08] sm:$0xff]  ;;  %v1797_v57 = vld [vmem:[%s6123_s16 + $0x1158] sm:$0xff] }
 0x237   : > { %5086 = vmatpush1.bf16.msra.mxu1 %v5085_v35  ;;  %4448 = vmatprep.subr.bf16.mxu0 %v4447_v1  ;;  %v1727_v35 = vld [vmem:[%s6123_s16 + $0xf28] sm:$0xff]  ;;  %v1725_v1 = vld [vmem:[%s6123_s16 + $0xf18] sm:$0xff] }
 0x238   : > { %5088 = vmatprep.subr.bf16.mxu1 %v5087_v40  ;;  %v4463_v40 = vpack.c.bf16 %v1727_v35, %v1723_v34  ;;  %v5103_v20 = vpack.c.bf16 %v1729_v37, %v1725_v1  ;;  %v1746_v34 = vld [vmem:[%s6123_s16 + $0xfc0] sm:$0xff]  ;;  %v1748_v1 = vld [vmem:[%s6123_s16 + $0xfd0] sm:$0xff] }
 0x239   : > { %v1750_v35 = vld [vmem:[%s6123_s16 + $0xfe0] sm:$0xff] }
 0x23a   : > { %4450 = vmatpush1.bf16.msra.mxu0 %v4449_v43  ;;  %v1731_v43 = vld [vmem:[%s6123_s16 + $0xf48] sm:$0xff]  ;;  %v4477_v6 = vpack.c.bf16 %v1750_v35, %v1746_v34  ;;  %v1781_v34 = vld [vmem:[%s6123_s16 + $0x10d8] sm:$0xff] }
 0x23b   : > { %5090 = vmatpush1.bf16.msra.mxu1 %v5089_v44  ;;  %4452 = vmatprep.subr.bf16.mxu0 %v4451_v36  ;;  %v1735_v44 = vld [vmem:[%s6123_s16 + $0xf68] sm:$0xff]  ;;  %v1733_v36 = vld [vmem:[%s6123_s16 + $0xf58] sm:$0xff] }
 0x23c   : > { %5092 = vmatprep.subr.bf16.mxu1 %v5091_v53  ;;  %v4467_v53 = vpack.c.bf16 %v1735_v44, %v1731_v43  ;;  %v5107_v51 = vpack.c.bf16 %v1737_v47, %v1733_v36  ;;  %v1754_v43 = vld [vmem:[%s6123_s16 + $0x1000] sm:$0xff]  ;;  %v5119_v36 = vpack.c.bf16 %v1761_v32, %v1757_v52  ;;  %v1756_v47 = vld [vmem:[%s6123_s16 + $0x1010] sm:$0xff]  ;;  %v1785_v35 = vld [vmem:[%s6123_s16 + $0x10f8] sm:$0xff] }
 0x23d   : > { %v1758_v44 = vld [vmem:[%s6123_s16 + $0x1020] sm:$0xff]  ;;  %v5131_v52 = vpack.c.bf16 %v1785_v35, %v1781_v34  ;;  %v1784_v32 = vld [vmem:[%s6123_s16 + $0x10f0] sm:$0xff]  ;;  %v1813_v34 = vld [vmem:[%s6123_s16 + $0x11d8] sm:$0xff] }
 0x23e   : > { %4454 = vmatpush1.bf16.msra.mxu0 %v4453_v60  ;;  %v1739_v60 = vld [vmem:[%s6123_s16 + $0xf88] sm:$0xff]  ;;  %v4481_v55 = vpack.c.bf16 %v1758_v44, %v1754_v43  ;;  %v1817_v35 = vld [vmem:[%s6123_s16 + $0x11f8] sm:$0xff] }
 0x23f   : > { %5094 = vmatpush1.bf16.msra.mxu1 %v5093_v61  ;;  %4456 = vmatprep.subr.bf16.mxu0 %v4455_v62  ;;  %v1743_v61 = vld [vmem:[%s6123_s16 + $0xfa8] sm:$0xff]  ;;  %v1741_v62 = vld [vmem:[%s6123_s16 + $0xf98] sm:$0xff] }
 0x240   : > { %5096 = vmatprep.subr.bf16.mxu1 %v5095_v10  ;;  %v4471_v10 = vpack.c.bf16 %v1743_v61, %v1739_v60  ;;  %v5111_v14 = vpack.c.bf16 %v1745_v63, %v1741_v62  ;;  %v1762_v60 = vld [vmem:[%s6123_s16 + $0x1040] sm:$0xff]  ;;  %v1764_v62 = vld [vmem:[%s6123_s16 + $0x1050] sm:$0xff] }
 0x241   : > { %v1766_v61 = vld [vmem:[%s6123_s16 + $0x1060] sm:$0xff]  ;;  %v1768_v63 = vld [vmem:[%s6123_s16 + $0x1070] sm:$0xff] }
 0x242   : > { %4458 = vmatpush1.bf16.msra.mxu0 %v4457_v18  ;;  %v1747_v18 = vld [vmem:[%s6123_s16 + $0xfc8] sm:$0xff] }
 0x243   : > { %5098 = vmatpush1.bf16.msra.mxu1 %v5097_v24  ;;  %4460 = vmatprep.subr.bf16.mxu0 %v4459_v26  ;;  %v1751_v24 = vld [vmem:[%s6123_s16 + $0xfe8] sm:$0xff]  ;;  %v1749_v26 = vld [vmem:[%s6123_s16 + $0xfd8] sm:$0xff] }
 0x244   : > { %5100 = vmatprep.subr.bf16.mxu1 %v5099_v31  ;;  %v5113_v31 = vpack.c.bf16 %v1744_v17, %v1740_v21  ;;  %v4475_v33 = vpack.c.bf16 %v1751_v24, %v1747_v18  ;;  %v5115_v37 = vpack.c.bf16 %v1753_v27, %v1749_v26  ;;  %v1777_v21 = vld [vmem:[%s6123_s16 + $0x10b8] sm:$0xff]  ;;  %v5125_v17 = vpack.c.bf16 %v1768_v63, %v1764_v62  ;;  %v1770_v24 = vld [vmem:[%s6123_s16 + $0x1080] sm:$0xff]  ;;  %v1772_v27 = vld [vmem:[%s6123_s16 + $0x1090] sm:$0xff] }
 0x245   : > { %v1774_v26 = vld [vmem:[%s6123_s16 + $0x10a0] sm:$0xff]  ;;  %v1796_v63 = vld [vmem:[%s6123_s16 + $0x1150] sm:$0xff] }
 0x246   : > { %4462 = vmatpush1.bf16.msra.mxu0 %v4461_v38  ;;  %v1752_v38 = vld [vmem:[%s6123_s16 + $0xff0] sm:$0xff]  ;;  %v1794_v62 = vld [vmem:[%s6123_s16 + $0x1140] sm:$0xff] }
 0x247   : > { %5102 = vmatpush1.bf16.msra.mxu1 %v5101_v39  ;;  %4464 = vmatprep.subr.bf16.mxu0 %v4463_v40  ;;  %v1755_v39 = vld [vmem:[%s6123_s16 + $0x1008] sm:$0xff] }
 0x248   : > { %5104 = vmatprep.subr.bf16.mxu1 %v5103_v20  ;;  %v1759_v40 = vld [vmem:[%s6123_s16 + $0x1028] sm:$0xff]  ;;  %v5117_v20 = vpack.c.bf16 %v1752_v38, %v1748_v1  ;;  %v4489_v1 = vpack.c.bf16 %v1774_v26, %v1770_v24  ;;  %v1802_v24 = vld [vmem:[%s6123_s16 + $0x1180] sm:$0xff] }
 0x249   : > { %v4479_v41 = vpack.c.bf16 %v1759_v40, %v1755_v39  ;;  %v1778_v39 = vld [vmem:[%s6123_s16 + $0x10c0] sm:$0xff] }
 0x24a   : > { %4466 = vmatpush1.bf16.msra.mxu0 %v4465_v48  ;;  %v1760_v48 = vld [vmem:[%s6123_s16 + $0x1030] sm:$0xff]  ;;  %v1782_v40 = vld [vmem:[%s6123_s16 + $0x10e0] sm:$0xff] }
 0x24b   : > { %5106 = vmatpush1.bf16.msra.mxu1 %v5105_v49  ;;  %4468 = vmatprep.subr.bf16.mxu0 %v4467_v53  ;;  %v865_v49 = vadd.f32 %v6369_v29, %v447_v16  ;;  %v1763_v53 = vld [vmem:[%s6123_s16 + $0x1048] sm:$0xff]  ;;  %v5121_v59 = vpack.c.bf16 %v1760_v48, %v1756_v47  ;;  %v1780_v16 = vld [vmem:[%s6123_s16 + $0x10d0] sm:$0xff]  ;;  %v4493_v43 = vpack.c.bf16 %v1782_v40, %v1778_v39  ;;  %v1786_v47 = vld [vmem:[%s6123_s16 + $0x1100] sm:$0xff] }
 0x24c   : > { %5108 = vmatprep.subr.bf16.mxu1 %v5107_v51  ;;  %v1228_v51 = vmax.f32 %v792_v23, 0.0  ;;  %v4483_v29 = vpack.c.bf16 %v1767_v58, %v1763_v53  ;;  %v1791_v23 = vld [vmem:[%s6123_s16 + $0x1128] sm:$0xff]  ;;  %v5133_v44 = vpack.c.bf16 %v1784_v32, %v1780_v16  ;;  %v1790_v48 = vld [vmem:[%s6123_s16 + $0x1120] sm:$0xff]  ;;  %v1792_v58 = vld [vmem:[%s6123_s16 + $0x1130] sm:$0xff] }
 0x24d   : > { %v1806_v26 = vld [vmem:[%s6123_s16 + $0x11a0] sm:$0xff]  ;;  %v1812_v16 = vld [vmem:[%s6123_s16 + $0x11d0] sm:$0xff] }
 0x24e   : > { %4470 = vmatpush1.bf16.msra.mxu0 %v4469_v0  ;;  %v1771_v0 = vld [vmem:[%s6123_s16 + $0x1088] sm:$0xff]  ;;  %v1810_v39 = vld [vmem:[%s6123_s16 + $0x11c0] sm:$0xff]  ;;  %v1816_v32 = vld [vmem:[%s6123_s16 + $0x11f0] sm:$0xff] }
 0x24f   : > { %5110 = vmatpush1.bf16.msra.mxu1 %v5109_v2  ;;  %4472 = vmatprep.subr.bf16.mxu0 %v4471_v10  ;;  %v1775_v2 = vld [vmem:[%s6123_s16 + $0x10a8] sm:$0xff]  ;;  %v1231_v10 = vmax.f32 %v865_v49, 0.0  ;;  %v1788_v49 = vld [vmem:[%s6123_s16 + $0x1110] sm:$0xff]  ;;  %v1814_v40 = vld [vmem:[%s6123_s16 + $0x11e0] sm:$0xff] }
 0x250   : > { %5112 = vmatprep.subr.bf16.mxu1 %v5111_v14  ;;  %v4485_v14 = vpack.c.bf16 %v1766_v61, %v1762_v60  ;;  %v4487_v18 = vpack.c.bf16 %v1775_v2, %v1771_v0  ;;  %v5137_v60 = vpack.c.bf16 %v1792_v58, %v1788_v49  ;;  %v1800_v2 = vld [vmem:[%s6123_s16 + $0x1170] sm:$0xff] }
 0x251   : > { %v1820_v49 = vld [vmem:[%s6123_s16 + $0x1210] sm:$0xff] }
 0x252   : > { %4474 = vmatpush1.bf16.msra.mxu0 %v4473_v30  ;;  %v5127_v30 = vpack.c.bf16 %v1777_v21, %v1773_v12  ;;  %v1805_v12 = vld [vmem:[%s6123_s16 + $0x1198] sm:$0xff]  ;;  %v1824_v58 = vld [vmem:[%s6123_s16 + $0x1230] sm:$0xff] }
 0x253   : > { %5114 = vmatpush1.bf16.msra.mxu1 %v5113_v31  ;;  %4476 = vmatprep.subr.bf16.mxu0 %v4475_v33  ;;  %v1779_v31 = vld [vmem:[%s6123_s16 + $0x10c8] sm:$0xff]  ;;  %v1809_v21 = vld [vmem:[%s6123_s16 + $0x11b8] sm:$0xff] }
 0x254   : > { %5116 = vmatprep.subr.bf16.mxu1 %v5115_v37  ;;  %v1783_v33 = vld [vmem:[%s6123_s16 + $0x10e8] sm:$0xff]  ;;  %v5129_v37 = vpack.c.bf16 %v1776_v45, %v1772_v27  ;;  %v1804_v27 = vld [vmem:[%s6123_s16 + $0x1190] sm:$0xff] }
 0x255   : > { %v4491_v38 = vpack.c.bf16 %v1783_v33, %v1779_v31  ;;  %v1808_v45 = vld [vmem:[%s6123_s16 + $0x11b0] sm:$0xff]  ;;  %v1811_v31 = vld [vmem:[%s6123_s16 + $0x11c8] sm:$0xff] }
 0x256   : > { %4478 = vmatpush1.bf16.msra.mxu0 %v4477_v6  ;;  %v1787_v6 = vld [vmem:[%s6123_s16 + $0x1108] sm:$0xff] }
 0x257   : > { %5118 = vmatpush1.bf16.msra.mxu1 %v5117_v20  ;;  %4480 = vmatprep.subr.bf16.mxu0 %v4479_v41  ;;  %v1789_v20 = vld [vmem:[%s6123_s16 + $0x1118] sm:$0xff]  ;;  %v1815_v33 = vld [vmem:[%s6123_s16 + $0x11e8] sm:$0xff] }
 0x258   : > { %5120 = vmatprep.subr.bf16.mxu1 %v5119_v36  ;;  %v1793_v41 = vld [vmem:[%s6123_s16 + $0x1138] sm:$0xff]  ;;  %v4495_v36 = vpack.c.bf16 %v1791_v23, %v1787_v6  ;;  %v1819_v6 = vld [vmem:[%s6123_s16 + $0x1208] sm:$0xff] }
 0x259   : > { %2822 = vmatmul.mubr.f32.vlgmr.msra.gmra.mrb[10].mxu0 %v1228_v51  ;;  %v5135_v53 = vpack.c.bf16 %v1793_v41, %v1789_v20  ;;  %v1823_v23 = vld [vmem:[%s6123_s16 + $0x1228] sm:$0xff]  ;;  %v1821_v20 = vld [vmem:[%s6123_s16 + $0x1218] sm:$0xff] }
 0x25a   : > { %3532 = vmatmul.mubr.f32.vlgmr.msra.gmra.mrb[10].mxu1 %v1228_v51  ;;  %4482 = vmatpush1.bf16.msra.mxu0 %v4481_v55  ;;  %v1795_v55 = vld [vmem:[%s6123_s16 + $0x1148] sm:$0xff]  ;;  %v1801_v51 = vld [vmem:[%s6123_s16 + $0x1178] sm:$0xff] }
 0x25b   : > { %2892 = vmatprep.mubr.f32.mxu0 %v1231_v10  ;;  %5122 = vmatpush1.bf16.msra.mxu1 %v5121_v59  ;;  %v4497_v59 = vpack.c.bf16 %v1790_v48, %v1786_v47  ;;  %v4499_v61 = vpack.c.bf16 %v1799_v56, %v1795_v55  ;;  %v5139_v0 = vpack.c.bf16 %v1801_v51, %v1797_v57  ;;  %v1825_v41 = vld [vmem:[%s6123_s16 + $0x1238] sm:$0xff]  ;;  %v1818_v47 = vld [vmem:[%s6123_s16 + $0x1200] sm:$0xff]  ;;  %v1827_v55 = vld [vmem:[%s6123_s16 + $0x1248] sm:$0xff] }
 0x25c   : > { %3602 = vmatprep.mubr.f32.mxu1 %v1231_v10  ;;  %4484 = vmatprep.subr.bf16.mxu0 %v4483_v29  ;;  %v1798_v29 = vld [vmem:[%s6123_s16 + $0x1160] sm:$0xff]  ;;  %v1803_v10 = vld [vmem:[%s6123_s16 + $0x1188] sm:$0xff]  ;;  %v1829_v57 = vld [vmem:[%s6123_s16 + $0x1258] sm:$0xff] }
 0x25d   : > { %5124 = vmatprep.subr.bf16.mxu1 %v5123_v11  ;;  %v1807_v11 = vld [vmem:[%s6123_s16 + $0x11a8] sm:$0xff]  ;;  %v1822_v48 = vld [vmem:[%s6123_s16 + $0x1220] sm:$0xff]  ;;  %v1833_v51 = vld [vmem:[%s6123_s16 + $0x1278] sm:$0xff] }
 0x25e   : > { %4486 = vmatpush1.bf16.msra.mxu0 %v4485_v14  ;;  %v4501_v14 = vpack.c.bf16 %v1798_v29, %v1794_v62  ;;  %v1831_v56 = vld [vmem:[%s6123_s16 + $0x1268] sm:$0xff]  ;;  %v1826_v62 = vld [vmem:[%s6123_s16 + $0x1240] sm:$0xff] }
 0x25f   : > { %5126 = vmatpush1.bf16.msra.mxu1 %v5125_v17  ;;  %4488 = vmatprep.subr.bf16.mxu0 %v4487_v18  ;;  %v5141_v17 = vpack.c.bf16 %v1800_v2, %v1796_v63  ;;  %v4503_v18 = vpack.c.bf16 %v1807_v11, %v1803_v10  ;;  %v1830_v29 = vld [vmem:[%s6123_s16 + $0x1260] sm:$0xff]  ;;  %v1828_v63 = vld [vmem:[%s6123_s16 + $0x1250] sm:$0xff]  ;;  %v1835_v10 = vld [vmem:[%s6123_s16 + $0x1288] sm:$0xff] }
 0x260   : > { %5128 = vmatprep.subr.bf16.mxu1 %v5127_v30  ;;  %v5143_v30 = vpack.c.bf16 %v1809_v21, %v1805_v12  ;;  %v1832_v2 = vld [vmem:[%s6123_s16 + $0x1270] sm:$0xff]  ;;  %v1839_v11 = vld [vmem:[%s6123_s16 + $0x12a8] sm:$0xff]  ;;  %v1837_v12 = vld [vmem:[%s6123_s16 + $0x1298] sm:$0xff] }
 0x261   : > { %v1841_v21 = vld [vmem:[%s6123_s16 + $0x12b8] sm:$0xff] }
 0x262   : > { %4490 = vmatpush1.bf16.msra.mxu0 %v4489_v1  ;;  %v4505_v1 = vpack.c.bf16 %v1806_v26, %v1802_v24  ;;  %v1834_v24 = vld [vmem:[%s6123_s16 + $0x1280] sm:$0xff] }
 0x263   : > { %5130 = vmatpush1.bf16.msra.mxu1 %v5129_v37  ;;  %4492 = vmatprep.subr.bf16.mxu0 %v4491_v38  ;;  %v5145_v37 = vpack.c.bf16 %v1808_v45, %v1804_v27  ;;  %v4507_v38 = vpack.c.bf16 %v1815_v33, %v1811_v31  ;;  %v1838_v26 = vld [vmem:[%s6123_s16 + $0x12a0] sm:$0xff]  ;;  %v1836_v27 = vld [vmem:[%s6123_s16 + $0x1290] sm:$0xff]  ;;  %v1843_v31 = vld [vmem:[%s6123_s16 + $0x12c8] sm:$0xff] }
 0x264   : > { %5132 = vmatprep.subr.bf16.mxu1 %v5131_v52  ;;  %v5147_v52 = vpack.c.bf16 %v1817_v35, %v1813_v34  ;;  %v1840_v45 = vld [vmem:[%s6123_s16 + $0x12b0] sm:$0xff]  ;;  %v1847_v33 = vld [vmem:[%s6123_s16 + $0x12e8] sm:$0xff]  ;;  %v1845_v34 = vld [vmem:[%s6123_s16 + $0x12d8] sm:$0xff] }
 0x265   : > { %v1849_v35 = vld [vmem:[%s6123_s16 + $0x12f8] sm:$0xff] }
 0x266   : > { %4494 = vmatpush1.bf16.msra.mxu0 %v4493_v43  ;;  %v4509_v43 = vpack.c.bf16 %v1814_v40, %v1810_v39  ;;  %v1842_v39 = vld [vmem:[%s6123_s16 + $0x12c0] sm:$0xff] }
 0x267   : > { %5134 = vmatpush1.bf16.msra.mxu1 %v5133_v44  ;;  %4496 = vmatprep.subr.bf16.mxu0 %v4495_v36  ;;  %v5149_v44 = vpack.c.bf16 %v1816_v32, %v1812_v16  ;;  %v4511_v36 = vpack.c.bf16 %v1823_v23, %v1819_v6  ;;  %v1846_v40 = vld [vmem:[%s6123_s16 + $0x12e0] sm:$0xff]  ;;  %v1844_v16 = vld [vmem:[%s6123_s16 + $0x12d0] sm:$0xff]  ;;  %v1851_v6 = vld [vmem:[%s6123_s16 + $0x1308] sm:$0xff] }
 0x268   : > { %5136 = vmatprep.subr.bf16.mxu1 %v5135_v53  ;;  %v5151_v53 = vpack.c.bf16 %v1825_v41, %v1821_v20  ;;  %v1848_v32 = vld [vmem:[%s6123_s16 + $0x12f0] sm:$0xff]  ;;  %v1855_v23 = vld [vmem:[%s6123_s16 + $0x1328] sm:$0xff]  ;;  %v1853_v20 = vld [vmem:[%s6123_s16 + $0x1318] sm:$0xff] }
 0x269   : > { %v1857_v41 = vld [vmem:[%s6123_s16 + $0x1338] sm:$0xff] }
 0x26a   : > { %4498 = vmatpush1.bf16.msra.mxu0 %v4497_v59  ;;  %v4513_v59 = vpack.c.bf16 %v1822_v48, %v1818_v47  ;;  %v1850_v47 = vld [vmem:[%s6123_s16 + $0x1300] sm:$0xff] }
 0x26b   : > { %5138 = vmatpush1.bf16.msra.mxu1 %v5137_v60  ;;  %4500 = vmatprep.subr.bf16.mxu0 %v4499_v61  ;;  %v5153_v60 = vpack.c.bf16 %v1824_v58, %v1820_v49  ;;  %v4515_v61 = vpack.c.bf16 %v1831_v56, %v1827_v55  ;;  %v1854_v48 = vld [vmem:[%s6123_s16 + $0x1320] sm:$0xff]  ;;  %v1852_v49 = vld [vmem:[%s6123_s16 + $0x1310] sm:$0xff]  ;;  %v1859_v55 = vld [vmem:[%s6123_s16 + $0x1348] sm:$0xff] }
 0x26c   : > { %5140 = vmatprep.subr.bf16.mxu1 %v5139_v0  ;;  %v5155_v0 = vpack.c.bf16 %v1833_v51, %v1829_v57  ;;  %v1856_v58 = vld [vmem:[%s6123_s16 + $0x1330] sm:$0xff]  ;;  %v1863_v56 = vld [vmem:[%s6123_s16 + $0x1368] sm:$0xff]  ;;  %v1861_v57 = vld [vmem:[%s6123_s16 + $0x1358] sm:$0xff] }
 0x26d   : > { %v1865_v51 = vld [vmem:[%s6123_s16 + $0x1378] sm:$0xff] }
 0x26e   : > { %4502 = vmatpush1.bf16.msra.mxu0 %v4501_v14  ;;  %v4517_v14 = vpack.c.bf16 %v1830_v29, %v1826_v62  ;;  %v1858_v62 = vld [vmem:[%s6123_s16 + $0x1340] sm:$0xff] }
 0x26f   : > { %5142 = vmatpush1.bf16.msra.mxu1 %v5141_v17  ;;  %4504 = vmatprep.subr.bf16.mxu0 %v4503_v18  ;;  %v5157_v17 = vpack.c.bf16 %v1832_v2, %v1828_v63  ;;  %v4519_v18 = vpack.c.bf16 %v1839_v11, %v1835_v10  ;;  %v1862_v29 = vld [vmem:[%s6123_s16 + $0x1360] sm:$0xff]  ;;  %v1860_v63 = vld [vmem:[%s6123_s16 + $0x1350] sm:$0xff]  ;;  %v1867_v10 = vld [vmem:[%s6123_s16 + $0x1388] sm:$0xff] }
 0x270   : > { %5144 = vmatprep.subr.bf16.mxu1 %v5143_v30  ;;  %v5159_v30 = vpack.c.bf16 %v1841_v21, %v1837_v12  ;;  %v1864_v2 = vld [vmem:[%s6123_s16 + $0x1370] sm:$0xff]  ;;  %v1871_v11 = vld [vmem:[%s6123_s16 + $0x13a8] sm:$0xff]  ;;  %v1869_v12 = vld [vmem:[%s6123_s16 + $0x1398] sm:$0xff] }
 0x271   : > { %v1873_v21 = vld [vmem:[%s6123_s16 + $0x13b8] sm:$0xff] }
 0x272   : > { %4506 = vmatpush1.bf16.msra.mxu0 %v4505_v1  ;;  %v4521_v1 = vpack.c.bf16 %v1838_v26, %v1834_v24  ;;  %v1866_v24 = vld [vmem:[%s6123_s16 + $0x1380] sm:$0xff] }
 0x273   : > { %5146 = vmatpush1.bf16.msra.mxu1 %v5145_v37  ;;  %4508 = vmatprep.subr.bf16.mxu0 %v4507_v38  ;;  %v5161_v37 = vpack.c.bf16 %v1840_v45, %v1836_v27  ;;  %v4523_v38 = vpack.c.bf16 %v1847_v33, %v1843_v31  ;;  %v1870_v26 = vld [vmem:[%s6123_s16 + $0x13a0] sm:$0xff]  ;;  %v1868_v27 = vld [vmem:[%s6123_s16 + $0x1390] sm:$0xff]  ;;  %v1875_v31 = vld [vmem:[%s6123_s16 + $0x13c8] sm:$0xff] }
 0x274   : > { %5148 = vmatprep.subr.bf16.mxu1 %v5147_v52  ;;  %v5163_v52 = vpack.c.bf16 %v1849_v35, %v1845_v34  ;;  %v1872_v45 = vld [vmem:[%s6123_s16 + $0x13b0] sm:$0xff]  ;;  %v1879_v33 = vld [vmem:[%s6123_s16 + $0x13e8] sm:$0xff]  ;;  %v1877_v34 = vld [vmem:[%s6123_s16 + $0x13d8] sm:$0xff] }
 0x275   : > { %v1881_v35 = vld [vmem:[%s6123_s16 + $0x13f8] sm:$0xff] }
 0x276   : > { %4510 = vmatpush1.bf16.msra.mxu0 %v4509_v43  ;;  %v4525_v43 = vpack.c.bf16 %v1846_v40, %v1842_v39  ;;  %v4539_v39 = vpack.c.bf16 %v1879_v33, %v1875_v31  ;;  %v1874_v40 = vld [vmem:[%s6123_s16 + $0x13c0] sm:$0xff]  ;;  %v1904_v31 = vld [vmem:[%s6123_s16 + $0x14b0] sm:$0xff]  ;;  %v1907_v33 = vld [vmem:[%s6123_s16 + $0x14c8] sm:$0xff] }
 0x277   : > { %5150 = vmatpush1.bf16.msra.mxu1 %v5149_v44  ;;  %4512 = vmatprep.subr.bf16.mxu0 %v4511_v36  ;;  %v5165_v44 = vpack.c.bf16 %v1848_v32, %v1844_v16  ;;  %v4527_v36 = vpack.c.bf16 %v1855_v23, %v1851_v6  ;;  %v1878_v16 = vld [vmem:[%s6123_s16 + $0x13e0] sm:$0xff]  ;;  %v5179_v32 = vpack.c.bf16 %v1881_v35, %v1877_v34  ;;  %v1880_v6 = vld [vmem:[%s6123_s16 + $0x13f0] sm:$0xff]  ;;  %v1883_v23 = vld [vmem:[%s6123_s16 + $0x1408] sm:$0xff] }
 0x278   : > { %5152 = vmatprep.subr.bf16.mxu1 %v5151_v53  ;;  %v5167_v53 = vpack.c.bf16 %v1857_v41, %v1853_v20  ;;  %v1887_v20 = vld [vmem:[%s6123_s16 + $0x1428] sm:$0xff]  ;;  %v1885_v41 = vld [vmem:[%s6123_s16 + $0x1418] sm:$0xff] }
 0x279   : > { %v1911_v34 = vld [vmem:[%s6123_s16 + $0x14e8] sm:$0xff]  ;;  %v1909_v35 = vld [vmem:[%s6123_s16 + $0x14d8] sm:$0xff] }
 0x27a   : > { %4514 = vmatpush1.bf16.msra.mxu0 %v4513_v59  ;;  %v4529_v59 = vpack.c.bf16 %v1854_v48, %v1850_v47  ;;  %v4543_v47 = vpack.c.bf16 %v1887_v20, %v1883_v23  ;;  %v1882_v48 = vld [vmem:[%s6123_s16 + $0x1400] sm:$0xff]  ;;  %v1915_v23 = vld [vmem:[%s6123_s16 + $0x1508] sm:$0xff] }
 0x27b   : > { %5154 = vmatpush1.bf16.msra.mxu1 %v5153_v60  ;;  %4516 = vmatprep.subr.bf16.mxu0 %v4515_v61  ;;  %v5169_v60 = vpack.c.bf16 %v1856_v58, %v1852_v49  ;;  %v4531_v61 = vpack.c.bf16 %v1863_v56, %v1859_v55  ;;  %v1886_v49 = vld [vmem:[%s6123_s16 + $0x1420] sm:$0xff]  ;;  %v1884_v58 = vld [vmem:[%s6123_s16 + $0x1410] sm:$0xff]  ;;  %v1891_v56 = vld [vmem:[%s6123_s16 + $0x1448] sm:$0xff] }
 0x27c   : > { %5156 = vmatprep.subr.bf16.mxu1 %v5155_v0  ;;  %v5171_v0 = vpack.c.bf16 %v1865_v51, %v1861_v57  ;;  %v1888_v55 = vld [vmem:[%s6123_s16 + $0x1430] sm:$0xff]  ;;  %v1895_v57 = vld [vmem:[%s6123_s16 + $0x1468] sm:$0xff]  ;;  %v1893_v51 = vld [vmem:[%s6123_s16 + $0x1458] sm:$0xff] }
 0x27d   : > { %v1919_v20 = vld [vmem:[%s6123_s16 + $0x1528] sm:$0xff] }
 0x27e   : > { %4518 = vmatpush1.bf16.msra.mxu0 %v4517_v14  ;;  %v4533_v14 = vpack.c.bf16 %v1862_v29, %v1858_v62  ;;  %v1890_v62 = vld [vmem:[%s6123_s16 + $0x1440] sm:$0xff] }
 0x27f   : > { %5158 = vmatpush1.bf16.msra.mxu1 %v5157_v17  ;;  %4520 = vmatprep.subr.bf16.mxu0 %v4519_v18  ;;  %v5173_v17 = vpack.c.bf16 %v1864_v2, %v1860_v63  ;;  %v4535_v18 = vpack.c.bf16 %v1871_v11, %v1867_v10  ;;  %v1894_v29 = vld [vmem:[%s6123_s16 + $0x1460] sm:$0xff]  ;;  %v1892_v63 = vld [vmem:[%s6123_s16 + $0x1450] sm:$0xff]  ;;  %v1899_v10 = vld [vmem:[%s6123_s16 + $0x1488] sm:$0xff] }
 0x280   : > { %5160 = vmatprep.subr.bf16.mxu1 %v5159_v30  ;;  %v5175_v30 = vpack.c.bf16 %v1873_v21, %v1869_v12  ;;  %v1896_v2 = vld [vmem:[%s6123_s16 + $0x1470] sm:$0xff]  ;;  %v1903_v11 = vld [vmem:[%s6123_s16 + $0x14a8] sm:$0xff]  ;;  %v1233_v12 = vmax.f32 %v6390_v50, 0.0 }
 0x282   : > { %4522 = vmatpush1.bf16.msra.mxu0 %v4521_v1  ;;  %v4537_v1 = vpack.c.bf16 %v1870_v26, %v1866_v24  ;;  %v5189_v24 = vpack.c.bf16 %v1896_v2, %v1892_v63  ;;  %v4551_v26 = vpack.c.bf16 %v1903_v11, %v1899_v10  ;;  %v1931_v2 = vld [vmem:[%s6123_s16 + $0x1588] sm:$0xff]  ;;  %v1933_v11 = vld [vmem:[%s6123_s16 + $0x1598] sm:$0xff] }
 0x283   : > { %5162 = vmatpush1.bf16.msra.mxu1 %v5161_v37  ;;  %4524 = vmatprep.subr.bf16.mxu0 %v4523_v38  ;;  %v443_v37 = vrot.slane %v6767_v4, %v6296_v5  ;;  %v5177_v38 = vpack.c.bf16 %v1872_v45, %v1868_v27  ;;  %v1889_v4 = vld [vmem:[%s6123_s16 + $0x1438] sm:$0xff]  ;;  %v1898_v27 = vld [vmem:[%s6123_s16 + $0x1480] sm:$0xff]  ;;  %v1900_v45 = vld [vmem:[%s6123_s16 + $0x1490] sm:$0xff] }
 0x284   : > { %5164 = vmatprep.subr.bf16.mxu1 %v5163_v52  ;;  %v1876_v52 = vld [vmem:[%s6123_s16 + $0x13d0] sm:$0xff]  ;;  %v1935_v10 = vld [vmem:[%s6123_s16 + $0x15a8] sm:$0xff] }
 0x286   : > { %4526 = vmatpush1.bf16.msra.mxu0 %v4525_v43  ;;  %v4541_v43 = vpack.c.bf16 %v1878_v16, %v1874_v40  ;;  %v1906_v40 = vld [vmem:[%s6123_s16 + $0x14c0] sm:$0xff] }
 0x287   : > { %5166 = vmatpush1.bf16.msra.mxu1 %v5165_v44  ;;  %4528 = vmatprep.subr.bf16.mxu0 %v4527_v36  ;;  %v863_v44 = vadd.f32 %v6363_v22, %v443_v37  ;;  %v5181_v36 = vpack.c.bf16 %v1880_v6, %v1876_v52  ;;  %v4545_v22 = vpack.c.bf16 %v1886_v49, %v1882_v48  ;;  %v1910_v16 = vld [vmem:[%s6123_s16 + $0x14e0] sm:$0xff]  ;;  %v1908_v52 = vld [vmem:[%s6123_s16 + $0x14d0] sm:$0xff] }
 0x288   : > { %5168 = vmatprep.subr.bf16.mxu1 %v5167_v53  ;;  %v5183_v53 = vpack.c.bf16 %v1889_v4, %v1885_v41  ;;  %v1912_v6 = vld [vmem:[%s6123_s16 + $0x14f0] sm:$0xff]  ;;  %v1917_v41 = vld [vmem:[%s6123_s16 + $0x1518] sm:$0xff]  ;;  %v1918_v48 = vld [vmem:[%s6123_s16 + $0x1520] sm:$0xff] }
 0x289   : > { %v1921_v4 = vld [vmem:[%s6123_s16 + $0x1538] sm:$0xff]  ;;  %v1916_v49 = vld [vmem:[%s6123_s16 + $0x1510] sm:$0xff] }
 0x28a   : > { %4530 = vmatpush1.bf16.msra.mxu0 %v4529_v59  ;;  %v1897_v59 = vld [vmem:[%s6123_s16 + $0x1478] sm:$0xff] }
 0x28b   : > { %5170 = vmatpush1.bf16.msra.mxu1 %v5169_v60  ;;  %4532 = vmatprep.subr.bf16.mxu0 %v4531_v61  ;;  %v1230_v60 = vmax.f32 %v863_v44, 0.0  ;;  %v5185_v61 = vpack.c.bf16 %v1888_v55, %v1884_v58  ;;  %v5187_v21 = vpack.c.bf16 %v1897_v59, %v1893_v51  ;;  %v5197_v44 = vpack.c.bf16 %v1912_v6, %v1908_v52  ;;  %v1920_v58 = vld [vmem:[%s6123_s16 + $0x1530] sm:$0xff]  ;;  %v1923_v55 = vld [vmem:[%s6123_s16 + $0x1548] sm:$0xff]  ;;  %v1949_v6 = vld [vmem:[%s6123_s16 + $0x1618] sm:$0xff] }
 0x28c   : > { %5172 = vmatprep.subr.bf16.mxu1 %v5171_v0  ;;  %v4547_v0 = vpack.c.bf16 %v1895_v57, %v1891_v56  ;;  %v1927_v56 = vld [vmem:[%s6123_s16 + $0x1568] sm:$0xff]  ;;  %v1925_v57 = vld [vmem:[%s6123_s16 + $0x1558] sm:$0xff]  ;;  %v5201_v59 = vpack.c.bf16 %v1920_v58, %v1916_v49 }
 0x28d   : > { %v1947_v52 = vld [vmem:[%s6123_s16 + $0x1608] sm:$0xff]  ;;  %v1957_v58 = vld [vmem:[%s6123_s16 + $0x1658] sm:$0xff] }
 0x28e   : > { %4534 = vmatpush1.bf16.msra.mxu0 %v4533_v14  ;;  %v1901_v14 = vld [vmem:[%s6123_s16 + $0x1498] sm:$0xff]  ;;  %v1955_v49 = vld [vmem:[%s6123_s16 + $0x1648] sm:$0xff] }
 0x28f   : > { %5174 = vmatpush1.bf16.msra.mxu1 %v5173_v17  ;;  %4536 = vmatprep.subr.bf16.mxu0 %v4535_v18  ;;  %v1905_v17 = vld [vmem:[%s6123_s16 + $0x14b8] sm:$0xff]  ;;  %v4549_v18 = vpack.c.bf16 %v1894_v29, %v1890_v62  ;;  %v1926_v62 = vld [vmem:[%s6123_s16 + $0x1560] sm:$0xff]  ;;  %v1924_v29 = vld [vmem:[%s6123_s16 + $0x1550] sm:$0xff] }
 0x290   : > { %5176 = vmatprep.subr.bf16.mxu1 %v5175_v30  ;;  %v1902_v30 = vld [vmem:[%s6123_s16 + $0x14a0] sm:$0xff]  ;;  %v5191_v50 = vpack.c.bf16 %v1905_v17, %v1901_v14  ;;  %v4567_v17 = vpack.c.bf16 %v1935_v10, %v1931_v2  ;;  %v1969_v2 = vld [vmem:[%s6123_s16 + $0x16b8] sm:$0xff] }
 0x291   : > { %v4553_v37 = vpack.c.bf16 %v1902_v30, %v1898_v27  ;;  %v1936_v30 = vld [vmem:[%s6123_s16 + $0x15b0] sm:$0xff] }
 0x292   : > { %4538 = vmatpush1.bf16.msra.mxu0 %v4537_v1  ;;  %v1913_v1 = vld [vmem:[%s6123_s16 + $0x14f8] sm:$0xff] }
 0x293   : > { %5178 = vmatpush1.bf16.msra.mxu1 %v5177_v38  ;;  %4540 = vmatprep.subr.bf16.mxu0 %v4539_v39  ;;  %v5193_v38 = vpack.c.bf16 %v1904_v31, %v1900_v45  ;;  %v4555_v39 = vpack.c.bf16 %v1911_v34, %v1907_v33  ;;  %v1939_v45 = vld [vmem:[%s6123_s16 + $0x15c8] sm:$0xff]  ;;  %v1941_v31 = vld [vmem:[%s6123_s16 + $0x15d8] sm:$0xff] }
 0x294   : > { %5180 = vmatprep.subr.bf16.mxu1 %v5179_v32  ;;  %v5195_v32 = vpack.c.bf16 %v1913_v1, %v1909_v35  ;;  %v1945_v33 = vld [vmem:[%s6123_s16 + $0x15f8] sm:$0xff] }
 0x296   : > { %4542 = vmatpush1.bf16.msra.mxu0 %v4541_v43  ;;  %v4557_v43 = vpack.c.bf16 %v1910_v16, %v1906_v40  ;;  %v5211_v40 = vpack.c.bf16 %v1945_v33, %v1941_v31  ;;  %v1944_v16 = vld [vmem:[%s6123_s16 + $0x15f0] sm:$0xff] }
 0x297   : > { %5182 = vmatpush1.bf16.msra.mxu1 %v5181_v36  ;;  %4544 = vmatprep.subr.bf16.mxu0 %v4543_v47  ;;  %v4559_v36 = vpack.c.bf16 %v1919_v20, %v1915_v23  ;;  %v1914_v47 = vld [vmem:[%s6123_s16 + $0x1500] sm:$0xff]  ;;  %v1953_v23 = vld [vmem:[%s6123_s16 + $0x1638] sm:$0xff] }
 0x298   : > { %5184 = vmatprep.subr.bf16.mxu1 %v5183_v53  ;;  %v5199_v53 = vpack.c.bf16 %v1921_v4, %v1917_v41  ;;  %v4561_v51 = vpack.c.bf16 %v1918_v48, %v1914_v47  ;;  %v5215_v47 = vpack.c.bf16 %v1953_v23, %v1949_v6  ;;  %v1952_v48 = vld [vmem:[%s6123_s16 + $0x1630] sm:$0xff] }
 0x299   : > { %2893 = vmatmul.mubr.f32.vlgmr.msra.gmra.mrb[10].mxu0 %v1230_v60 }
 0x29a   : > { %3603 = vmatmul.mubr.f32.vlgmr.msra.gmra.mrb[10].mxu1 %v1230_v60  ;;  %4546 = vmatpush1.bf16.msra.mxu0 %v4545_v22  ;;  %v1929_v22 = vld [vmem:[%s6123_s16 + $0x1578] sm:$0xff]  ;;  %v4563_v60 = vpack.c.bf16 %v1927_v56, %v1923_v55 }
 0x29b   : > { %2963 = vmatprep.mubr.f32.mxu0 %v1233_v12  ;;  %5186 = vmatpush1.bf16.msra.mxu1 %v5185_v61  ;;  %v1922_v61 = vld [vmem:[%s6123_s16 + $0x1540] sm:$0xff]  ;;  %v5203_v63 = vpack.c.bf16 %v1929_v22, %v1925_v57  ;;  %v1961_v55 = vld [vmem:[%s6123_s16 + $0x1678] sm:$0xff] }
 0x29c   : > { %3673 = vmatprep.mubr.f32.mxu1 %v1233_v12  ;;  %4548 = vmatprep.subr.bf16.mxu0 %v4547_v0  ;;  %v1928_v0 = vld [vmem:[%s6123_s16 + $0x1570] sm:$0xff]  ;;  %v1937_v12 = vld [vmem:[%s6123_s16 + $0x15b8] sm:$0xff] }
 0x29d   : > { %5188 = vmatprep.subr.bf16.mxu1 %v5187_v21  ;;  %v4565_v21 = vpack.c.bf16 %v1926_v62, %v1922_v61  ;;  %v5205_v14 = vpack.c.bf16 %v1928_v0, %v1924_v29  ;;  %v5207_v27 = vpack.c.bf16 %v1937_v12, %v1933_v11  ;;  %v5219_v61 = vpack.c.bf16 %v1961_v55, %v1957_v58  ;;  %v1960_v62 = vld [vmem:[%s6123_s16 + $0x1670] sm:$0xff]  ;;  %v1963_v29 = vld [vmem:[%s6123_s16 + $0x1688] sm:$0xff]  ;;  %v1965_v0 = vld [vmem:[%s6123_s16 + $0x1698] sm:$0xff] }
 0x29e   : > { %4550 = vmatpush1.bf16.msra.mxu0 %v4549_v18  ;;  %v1930_v18 = vld [vmem:[%s6123_s16 + $0x1580] sm:$0xff] }
 0x29f   : > { %5190 = vmatpush1.bf16.msra.mxu1 %v5189_v24  ;;  %4552 = vmatprep.subr.bf16.mxu0 %v4551_v26  ;;  %v1934_v24 = vld [vmem:[%s6123_s16 + $0x15a0] sm:$0xff]  ;;  %v1932_v26 = vld [vmem:[%s6123_s16 + $0x1590] sm:$0xff] }
 0x2a0   : > { %5192 = vmatprep.subr.bf16.mxu1 %v5191_v50  ;;  %v1943_v50 = vld [vmem:[%s6123_s16 + $0x15e8] sm:$0xff]  ;;  %v4569_v34 = vpack.c.bf16 %v1934_v24, %v1930_v18  ;;  %v5209_v35 = vpack.c.bf16 %v1936_v30, %v1932_v26  ;;  %v5223_v18 = vpack.c.bf16 %v1969_v2, %v1965_v0  ;;  %v1968_v24 = vld [vmem:[%s6123_s16 + $0x16b0] sm:$0xff]  ;;  %v1973_v30 = vld [vmem:[%s6123_s16 + $0x16d8] sm:$0xff] }
 0x2a1   : > { %v4571_v1 = vpack.c.bf16 %v1943_v50, %v1939_v45  ;;  %v1971_v26 = vld [vmem:[%s6123_s16 + $0x16c8] sm:$0xff]  ;;  %v1977_v45 = vld [vmem:[%s6123_s16 + $0x16f8] sm:$0xff] }
 0x2a2   : > { %4554 = vmatpush1.bf16.msra.mxu0 %v4553_v37  ;;  %v1938_v37 = vld [vmem:[%s6123_s16 + $0x15c0] sm:$0xff] }
 0x2a3   : > { %5194 = vmatpush1.bf16.msra.mxu1 %v5193_v38  ;;  %4556 = vmatprep.subr.bf16.mxu0 %v4555_v39  ;;  %v1942_v38 = vld [vmem:[%s6123_s16 + $0x15e0] sm:$0xff]  ;;  %v1940_v39 = vld [vmem:[%s6123_s16 + $0x15d0] sm:$0xff] }
 0x2a4   : > { %5196 = vmatprep.subr.bf16.mxu1 %v5195_v32  ;;  %v1951_v32 = vld [vmem:[%s6123_s16 + $0x1628] sm:$0xff]  ;;  %v4573_v20 = vpack.c.bf16 %v1942_v38, %v1938_v37  ;;  %v5213_v41 = vpack.c.bf16 %v1944_v16, %v1940_v39  ;;  %v5227_v37 = vpack.c.bf16 %v1977_v45, %v1973_v30  ;;  %v1976_v38 = vld [vmem:[%s6123_s16 + $0x16f0] sm:$0xff]  ;;  %v1981_v16 = vld [vmem:[%s6123_s16 + $0x1718] sm:$0xff] }
 0x2a5   : > { %v4575_v4 = vpack.c.bf16 %v1951_v32, %v1947_v52  ;;  %v1979_v39 = vld [vmem:[%s6123_s16 + $0x1708] sm:$0xff]  ;;  %v1985_v52 = vld [vmem:[%s6123_s16 + $0x1738] sm:$0xff] }
 0x2a6   : > { %4558 = vmatpush1.bf16.msra.mxu0 %v4557_v43  ;;  %v1946_v43 = vld [vmem:[%s6123_s16 + $0x1600] sm:$0xff] }
 0x2a7   : > { %5198 = vmatpush1.bf16.msra.mxu1 %v5197_v44  ;;  %4560 = vmatprep.subr.bf16.mxu0 %v4559_v36  ;;  %v1950_v44 = vld [vmem:[%s6123_s16 + $0x1620] sm:$0xff]  ;;  %v1948_v36 = vld [vmem:[%s6123_s16 + $0x1610] sm:$0xff] }
 0x2a8   : > { %5200 = vmatprep.subr.bf16.mxu1 %v5199_v53  ;;  %v1959_v53 = vld [vmem:[%s6123_s16 + $0x1668] sm:$0xff]  ;;  %v4577_v56 = vpack.c.bf16 %v1950_v44, %v1946_v43  ;;  %v5217_v57 = vpack.c.bf16 %v1952_v48, %v1948_v36  ;;  %v5231_v43 = vpack.c.bf16 %v1985_v52, %v1981_v16  ;;  %v1984_v44 = vld [vmem:[%s6123_s16 + $0x1730] sm:$0xff]  ;;  %v1989_v48 = vld [vmem:[%s6123_s16 + $0x1758] sm:$0xff] }
 0x2a9   : > { %v4579_v22 = vpack.c.bf16 %v1959_v53, %v1955_v49  ;;  %v1987_v36 = vld [vmem:[%s6123_s16 + $0x1748] sm:$0xff]  ;;  %v1993_v49 = vld [vmem:[%s6123_s16 + $0x1778] sm:$0xff] }
 0x2aa   : > { %4562 = vmatpush1.bf16.msra.mxu0 %v4561_v51  ;;  %v1954_v51 = vld [vmem:[%s6123_s16 + $0x1640] sm:$0xff] }
 0x2ab   : > { %5202 = vmatpush1.bf16.msra.mxu1 %v5201_v59  ;;  %4564 = vmatprep.subr.bf16.mxu0 %v4563_v60  ;;  %v1958_v59 = vld [vmem:[%s6123_s16 + $0x1660] sm:$0xff]  ;;  %v1956_v60 = vld [vmem:[%s6123_s16 + $0x1650] sm:$0xff] }
 0x2ac   : > { %5204 = vmatprep.subr.bf16.mxu1 %v5203_v63  ;;  %v1967_v63 = vld [vmem:[%s6123_s16 + $0x16a8] sm:$0xff]  ;;  %v4581_v10 = vpack.c.bf16 %v1958_v59, %v1954_v51  ;;  %v5221_v11 = vpack.c.bf16 %v1960_v62, %v1956_v60  ;;  %v5235_v51 = vpack.c.bf16 %v1993_v49, %v1989_v48  ;;  %v1992_v59 = vld [vmem:[%s6123_s16 + $0x1770] sm:$0xff]  ;;  %v1997_v62 = vld [vmem:[%s6123_s16 + $0x1798] sm:$0xff]  ;;  %v1232_v48 = vmax.f32 %v6385_v42, 0.0 }
 0x2ad   : > { %v4583_v12 = vpack.c.bf16 %v1967_v63, %v1963_v29  ;;  %v1995_v60 = vld [vmem:[%s6123_s16 + $0x1788] sm:$0xff]  ;;  %v2001_v29 = vld [vmem:[%s6123_s16 + $0x17b8] sm:$0xff] }
 0x2ae   : > { %4566 = vmatpush1.bf16.msra.mxu0 %v4565_v21  ;;  %v1962_v21 = vld [vmem:[%s6123_s16 + $0x1680] sm:$0xff]  ;;  %v2029_v42 = vld [vmem:[%s6123_s16 + $0x1898] sm:$0xff] }
 0x2af   : > { %5206 = vmatpush1.bf16.msra.mxu1 %v5205_v14  ;;  %4568 = vmatprep.subr.bf16.mxu0 %v4567_v17  ;;  %v1966_v14 = vld [vmem:[%s6123_s16 + $0x16a0] sm:$0xff]  ;;  %v1964_v17 = vld [vmem:[%s6123_s16 + $0x1690] sm:$0xff] }
 0x2b0   : > { %5208 = vmatprep.subr.bf16.mxu1 %v5207_v27  ;;  %v1975_v27 = vld [vmem:[%s6123_s16 + $0x16e8] sm:$0xff]  ;;  %v4585_v50 = vpack.c.bf16 %v1966_v14, %v1962_v21  ;;  %v5225_v31 = vpack.c.bf16 %v1968_v24, %v1964_v17  ;;  %v5239_v21 = vpack.c.bf16 %v2001_v29, %v1997_v62  ;;  %v2000_v14 = vld [vmem:[%s6123_s16 + $0x17b0] sm:$0xff]  ;;  %v2005_v24 = vld [vmem:[%s6123_s16 + $0x17d8] sm:$0xff] }
 0x2b1   : > { %v4587_v33 = vpack.c.bf16 %v1975_v27, %v1971_v26  ;;  %v2003_v17 = vld [vmem:[%s6123_s16 + $0x17c8] sm:$0xff]  ;;  %v2009_v26 = vld [vmem:[%s6123_s16 + $0x17f8] sm:$0xff] }
 0x2b2   : > { %4570 = vmatpush1.bf16.msra.mxu0 %v4569_v34  ;;  %v1970_v34 = vld [vmem:[%s6123_s16 + $0x16c0] sm:$0xff] }
 0x2b3   : > { %5210 = vmatpush1.bf16.msra.mxu1 %v5209_v35  ;;  %4572 = vmatprep.subr.bf16.mxu0 %v4571_v1  ;;  %v1974_v35 = vld [vmem:[%s6123_s16 + $0x16e0] sm:$0xff]  ;;  %v1972_v1 = vld [vmem:[%s6123_s16 + $0x16d0] sm:$0xff] }
 0x2b4   : > { %5212 = vmatprep.subr.bf16.mxu1 %v5211_v40  ;;  %v1983_v40 = vld [vmem:[%s6123_s16 + $0x1728] sm:$0xff]  ;;  %v4589_v32 = vpack.c.bf16 %v1974_v35, %v1970_v34  ;;  %v5229_v6 = vpack.c.bf16 %v1976_v38, %v1972_v1  ;;  %v5243_v34 = vpack.c.bf16 %v2009_v26, %v2005_v24  ;;  %v2008_v35 = vld [vmem:[%s6123_s16 + $0x17f0] sm:$0xff]  ;;  %v2013_v38 = vld [vmem:[%s6123_s16 + $0x1818] sm:$0xff] }
 0x2b5   : > { %v4591_v23 = vpack.c.bf16 %v1983_v40, %v1979_v39  ;;  %v2011_v1 = vld [vmem:[%s6123_s16 + $0x1808] sm:$0xff]  ;;  %v2017_v39 = vld [vmem:[%s6123_s16 + $0x1838] sm:$0xff] }
 0x2b6   : > { %4574 = vmatpush1.bf16.msra.mxu0 %v4573_v20  ;;  %v1978_v20 = vld [vmem:[%s6123_s16 + $0x1700] sm:$0xff] }
 0x2b7   : > { %5214 = vmatpush1.bf16.msra.mxu1 %v5213_v41  ;;  %4576 = vmatprep.subr.bf16.mxu0 %v4575_v4  ;;  %v1982_v41 = vld [vmem:[%s6123_s16 + $0x1720] sm:$0xff]  ;;  %v1980_v4 = vld [vmem:[%s6123_s16 + $0x1710] sm:$0xff] }
 0x2b8   : > { %5216 = vmatprep.subr.bf16.mxu1 %v5215_v47  ;;  %v1991_v47 = vld [vmem:[%s6123_s16 + $0x1768] sm:$0xff]  ;;  %v4593_v53 = vpack.c.bf16 %v1982_v41, %v1978_v20  ;;  %v5233_v58 = vpack.c.bf16 %v1984_v44, %v1980_v4  ;;  %v2012_v20 = vld [vmem:[%s6123_s16 + $0x1810] sm:$0xff] }
 0x2b9   : > { %v4595_v55 = vpack.c.bf16 %v1991_v47, %v1987_v36  ;;  %v2016_v41 = vld [vmem:[%s6123_s16 + $0x1830] sm:$0xff]  ;;  %v2019_v4 = vld [vmem:[%s6123_s16 + $0x1848] sm:$0xff]  ;;  %v2021_v36 = vld [vmem:[%s6123_s16 + $0x1858] sm:$0xff] }
 0x2ba   : > { %4578 = vmatpush1.bf16.msra.mxu0 %v4577_v56  ;;  %v1986_v56 = vld [vmem:[%s6123_s16 + $0x1740] sm:$0xff]  ;;  %v2025_v47 = vld [vmem:[%s6123_s16 + $0x1878] sm:$0xff]  ;;  %v5249_v49 = vpack.c.bf16 %v2016_v41, %v2012_v20  ;;  %v2055_v20 = vld [vmem:[%s6123_s16 + $0x1968] sm:$0xff] }
 0x2bb   : > { %5218 = vmatpush1.bf16.msra.mxu1 %v5217_v57  ;;  %4580 = vmatprep.subr.bf16.mxu0 %v4579_v22  ;;  %v1990_v57 = vld [vmem:[%s6123_s16 + $0x1760] sm:$0xff]  ;;  %v1988_v22 = vld [vmem:[%s6123_s16 + $0x1750] sm:$0xff]  ;;  %v2053_v41 = vld [vmem:[%s6123_s16 + $0x1958] sm:$0xff] }
 0x2bc   : > { %5220 = vmatprep.subr.bf16.mxu1 %v5219_v61  ;;  %v1999_v61 = vld [vmem:[%s6123_s16 + $0x17a8] sm:$0xff]  ;;  %v4597_v63 = vpack.c.bf16 %v1990_v57, %v1986_v56  ;;  %v5237_v0 = vpack.c.bf16 %v1992_v59, %v1988_v22  ;;  %v2024_v57 = vld [vmem:[%s6123_s16 + $0x1870] sm:$0xff]  ;;  %v1235_v59 = vmax.f32 %v6405_v15, 0.0 }
 0x2bd   : > { %v4599_v2 = vpack.c.bf16 %v1999_v61, %v1995_v60  ;;  %v2027_v22 = vld [vmem:[%s6123_s16 + $0x1888] sm:$0xff]  ;;  %v5251_v60 = vpack.c.bf16 %v2025_v47, %v2021_v36  ;;  %v2033_v61 = vld [vmem:[%s6123_s16 + $0x18b8] sm:$0xff]  ;;  %v2050_v47 = vld [vmem:[%s6123_s16 + $0x1940] sm:$0xff] }
 0x2be   : > { %4582 = vmatpush1.bf16.msra.mxu0 %v4581_v10  ;;  %v1994_v10 = vld [vmem:[%s6123_s16 + $0x1780] sm:$0xff]  ;;  %v5255_v15 = vpack.c.bf16 %v2033_v61, %v2029_v42 }
 0x2bf   : > { %5222 = vmatpush1.bf16.msra.mxu1 %v5221_v11  ;;  %4584 = vmatprep.subr.bf16.mxu0 %v4583_v12  ;;  %v1998_v11 = vld [vmem:[%s6123_s16 + $0x17a0] sm:$0xff]  ;;  %v1996_v12 = vld [vmem:[%s6123_s16 + $0x1790] sm:$0xff] }
 0x2c0   : > { %5224 = vmatprep.subr.bf16.mxu1 %v5223_v18  ;;  %v2007_v18 = vld [vmem:[%s6123_s16 + $0x17e8] sm:$0xff]  ;;  %v4601_v27 = vpack.c.bf16 %v1998_v11, %v1994_v10  ;;  %v5241_v30 = vpack.c.bf16 %v2000_v14, %v1996_v12  ;;  %v2028_v10 = vld [vmem:[%s6123_s16 + $0x1890] sm:$0xff]  ;;  %v2037_v14 = vld [vmem:[%s6123_s16 + $0x18d8] sm:$0xff] }
 0x2c1   : > { %v4603_v45 = vpack.c.bf16 %v2007_v18, %v2003_v17  ;;  %v2032_v11 = vld [vmem:[%s6123_s16 + $0x18b0] sm:$0xff]  ;;  %v2035_v12 = vld [vmem:[%s6123_s16 + $0x18c8] sm:$0xff]  ;;  %v2041_v17 = vld [vmem:[%s6123_s16 + $0x18f8] sm:$0xff] }
 0x2c2   : > { %4586 = vmatpush1.bf16.msra.mxu0 %v4585_v50  ;;  %v2002_v50 = vld [vmem:[%s6123_s16 + $0x17c0] sm:$0xff]  ;;  %v5257_v24 = vpack.c.bf16 %v2032_v11, %v2028_v10  ;;  %v2069_v10 = vld [vmem:[%s6123_s16 + $0x19d8] sm:$0xff] }
 0x2c3   : > { %5226 = vmatpush1.bf16.msra.mxu1 %v5225_v31  ;;  %4588 = vmatprep.subr.bf16.mxu0 %v4587_v33  ;;  %v2006_v31 = vld [vmem:[%s6123_s16 + $0x17e0] sm:$0xff]  ;;  %v2004_v33 = vld [vmem:[%s6123_s16 + $0x17d0] sm:$0xff] }
 0x2c4   : > { %5228 = vmatprep.subr.bf16.mxu1 %v5227_v37  ;;  %v2015_v37 = vld [vmem:[%s6123_s16 + $0x1828] sm:$0xff]  ;;  %v4605_v40 = vpack.c.bf16 %v2006_v31, %v2002_v50  ;;  %v5245_v16 = vpack.c.bf16 %v2008_v35, %v2004_v33  ;;  %v5259_v50 = vpack.c.bf16 %v2041_v17, %v2037_v14  ;;  %v2040_v31 = vld [vmem:[%s6123_s16 + $0x18f0] sm:$0xff]  ;;  %v2045_v35 = vld [vmem:[%s6123_s16 + $0x1918] sm:$0xff] }
 0x2c5   : > { %v4607_v52 = vpack.c.bf16 %v2015_v37, %v2011_v1  ;;  %v2043_v33 = vld [vmem:[%s6123_s16 + $0x1908] sm:$0xff]  ;;  %v2049_v1 = vld [vmem:[%s6123_s16 + $0x1938] sm:$0xff]  ;;  %v2058_v42 = vld [vmem:[%s6123_s16 + $0x1980] sm:$0xff] }
 0x2c6   : > { %4590 = vmatpush1.bf16.msra.mxu0 %v4589_v32  ;;  %v2010_v32 = vld [vmem:[%s6123_s16 + $0x1800] sm:$0xff] }
 0x2c7   : > { %5230 = vmatpush1.bf16.msra.mxu1 %v5229_v6  ;;  %4592 = vmatprep.subr.bf16.mxu0 %v4591_v23  ;;  %v2014_v6 = vld [vmem:[%s6123_s16 + $0x1820] sm:$0xff]  ;;  %v5247_v23 = vpack.c.bf16 %v2017_v39, %v2013_v38 }
 0x2c8   : > { %5232 = vmatprep.subr.bf16.mxu1 %v5231_v43  ;;  %v2023_v43 = vld [vmem:[%s6123_s16 + $0x1868] sm:$0xff]  ;;  %v4609_v44 = vpack.c.bf16 %v2014_v6, %v2010_v32  ;;  %v5263_v32 = vpack.c.bf16 %v2049_v1, %v2045_v35  ;;  %v2048_v6 = vld [vmem:[%s6123_s16 + $0x1930] sm:$0xff]  ;;  %v2062_v61 = vld [vmem:[%s6123_s16 + $0x19a0] sm:$0xff] }
 0x2c9   : > { %v4611_v56 = vpack.c.bf16 %v2023_v43, %v2019_v4  ;;  %v2057_v4 = vld [vmem:[%s6123_s16 + $0x1978] sm:$0xff]  ;;  %v4633_v11 = vpack.c.bf16 %v2062_v61, %v2058_v42  ;;  %v2066_v14 = vld [vmem:[%s6123_s16 + $0x19c0] sm:$0xff]  ;;  %v2099_v42 = vld [vmem:[%s6123_s16 + $0x1ac8] sm:$0xff] }
 0x2ca   : > { %4594 = vmatpush1.bf16.msra.mxu0 %v4593_v53  ;;  %v2018_v53 = vld [vmem:[%s6123_s16 + $0x1840] sm:$0xff]  ;;  %v2103_v61 = vld [vmem:[%s6123_s16 + $0x1ae8] sm:$0xff] }
 0x2cb   : > { %5234 = vmatpush1.bf16.msra.mxu1 %v5233_v58  ;;  %4596 = vmatprep.subr.bf16.mxu0 %v4595_v55  ;;  %v2022_v58 = vld [vmem:[%s6123_s16 + $0x1860] sm:$0xff]  ;;  %v2020_v55 = vld [vmem:[%s6123_s16 + $0x1850] sm:$0xff] }
 0x2cc   : > { %5236 = vmatprep.subr.bf16.mxu1 %v5235_v51  ;;  %v2031_v51 = vld [vmem:[%s6123_s16 + $0x18a8] sm:$0xff]  ;;  %v4613_v62 = vpack.c.bf16 %v2022_v58, %v2018_v53  ;;  %v5253_v29 = vpack.c.bf16 %v2024_v57, %v2020_v55  ;;  %v5267_v53 = vpack.c.bf16 %v2057_v4, %v2053_v41  ;;  %v2056_v58 = vld [vmem:[%s6123_s16 + $0x1970] sm:$0xff]  ;;  %v2061_v57 = vld [vmem:[%s6123_s16 + $0x1998] sm:$0xff] }
 0x2cd   : > { %v2059_v55 = vld [vmem:[%s6123_s16 + $0x1988] sm:$0xff]  ;;  %v2070_v17 = vld [vmem:[%s6123_s16 + $0x19e0] sm:$0xff] }
 0x2ce   : > { %4598 = vmatpush1.bf16.msra.mxu0 %v4597_v63  ;;  %v4615_v63 = vpack.c.bf16 %v2031_v51, %v2027_v22  ;;  %v2065_v22 = vld [vmem:[%s6123_s16 + $0x19b8] sm:$0xff]  ;;  %v2074_v35 = vld [vmem:[%s6123_s16 + $0x1a00] sm:$0xff] }
 0x2cf   : > { %5238 = vmatpush1.bf16.msra.mxu1 %v5237_v0  ;;  %4600 = vmatprep.subr.bf16.mxu0 %v4599_v2  ;;  %v2026_v0 = vld [vmem:[%s6123_s16 + $0x1880] sm:$0xff] }
 0x2d0   : > { %5240 = vmatprep.subr.bf16.mxu1 %v5239_v21  ;;  %v2030_v2 = vld [vmem:[%s6123_s16 + $0x18a0] sm:$0xff]  ;;  %v2039_v21 = vld [vmem:[%s6123_s16 + $0x18e8] sm:$0xff] }
 0x2d1   : > { %v4617_v18 = vpack.c.bf16 %v2030_v2, %v2026_v0  ;;  %v4619_v26 = vpack.c.bf16 %v2039_v21, %v2035_v12  ;;  %v2067_v0 = vld [vmem:[%s6123_s16 + $0x19c8] sm:$0xff]  ;;  %v2078_v1 = vld [vmem:[%s6123_s16 + $0x1a20] sm:$0xff] }
 0x2d2   : > { %4602 = vmatpush1.bf16.msra.mxu0 %v4601_v27  ;;  %v2034_v27 = vld [vmem:[%s6123_s16 + $0x18c0] sm:$0xff]  ;;  %v2071_v2 = vld [vmem:[%s6123_s16 + $0x19e8] sm:$0xff] }
 0x2d3   : > { %5242 = vmatpush1.bf16.msra.mxu1 %v5241_v30  ;;  %4604 = vmatprep.subr.bf16.mxu0 %v4603_v45  ;;  %v2038_v30 = vld [vmem:[%s6123_s16 + $0x18e0] sm:$0xff]  ;;  %v2036_v45 = vld [vmem:[%s6123_s16 + $0x18d0] sm:$0xff]  ;;  %v4635_v21 = vpack.c.bf16 %v2071_v2, %v2067_v0  ;;  %v4651_v2 = vpack.c.bf16 %v2103_v61, %v2099_v42 }
 0x2d4   : > { %5244 = vmatprep.subr.bf16.mxu1 %v5243_v34  ;;  %v2047_v34 = vld [vmem:[%s6123_s16 + $0x1928] sm:$0xff]  ;;  %v4621_v37 = vpack.c.bf16 %v2038_v30, %v2034_v27  ;;  %v5261_v38 = vpack.c.bf16 %v2040_v31, %v2036_v45  ;;  %v2077_v45 = vld [vmem:[%s6123_s16 + $0x1a18] sm:$0xff]  ;;  %v4637_v31 = vpack.c.bf16 %v2070_v17, %v2066_v14  ;;  %v2082_v41 = vld [vmem:[%s6123_s16 + $0x1a40] sm:$0xff] }
 0x2d5   : > { %v4623_v39 = vpack.c.bf16 %v2047_v34, %v2043_v33  ;;  %v2075_v27 = vld [vmem:[%s6123_s16 + $0x1a08] sm:$0xff]  ;;  %v2086_v4 = vld [vmem:[%s6123_s16 + $0x1a60] sm:$0xff] }
 0x2d6   : > { %4606 = vmatpush1.bf16.msra.mxu0 %v4605_v40  ;;  %v2042_v40 = vld [vmem:[%s6123_s16 + $0x1900] sm:$0xff]  ;;  %v2079_v30 = vld [vmem:[%s6123_s16 + $0x1a28] sm:$0xff] }
 0x2d7   : > { %5246 = vmatpush1.bf16.msra.mxu1 %v5245_v16  ;;  %4608 = vmatprep.subr.bf16.mxu0 %v4607_v52  ;;  %v2046_v16 = vld [vmem:[%s6123_s16 + $0x1920] sm:$0xff]  ;;  %v2044_v52 = vld [vmem:[%s6123_s16 + $0x1910] sm:$0xff]  ;;  %v4639_v34 = vpack.c.bf16 %v2079_v30, %v2075_v27  ;;  %v2107_v14 = vld [vmem:[%s6123_s16 + $0x1b08] sm:$0xff] }
 0x2d8   : > { %5248 = vmatprep.subr.bf16.mxu1 %v5247_v23  ;;  %v2051_v23 = vld [vmem:[%s6123_s16 + $0x1948] sm:$0xff]  ;;  %v4625_v43 = vpack.c.bf16 %v2046_v16, %v2042_v40 }
 0x2d9   : > { %2964 = vmatmul.mubr.f32.vlgmr.msra.gmra.mrb[10].mxu0 %v1232_v48  ;;  %v4627_v36 = vpack.c.bf16 %v2055_v20, %v2051_v23  ;;  %v2083_v40 = vld [vmem:[%s6123_s16 + $0x1a48] sm:$0xff] }
 0x2da   : > { %3674 = vmatmul.mubr.f32.vlgmr.msra.gmra.mrb[10].mxu1 %v1232_v48  ;;  %4610 = vmatpush1.bf16.msra.mxu0 %v4609_v44  ;;  %v5265_v44 = vpack.c.bf16 %v2048_v6, %v2044_v52  ;;  %v2054_v48 = vld [vmem:[%s6123_s16 + $0x1960] sm:$0xff]  ;;  %v2087_v16 = vld [vmem:[%s6123_s16 + $0x1a68] sm:$0xff]  ;;  %v2085_v52 = vld [vmem:[%s6123_s16 + $0x1a58] sm:$0xff]  ;;  %v4641_v6 = vpack.c.bf16 %v2078_v1, %v2074_v35 }
 0x2db   : > { %3034 = vmatprep.mubr.f32.mxu0 %v1235_v59  ;;  %5250 = vmatpush1.bf16.msra.mxu1 %v5249_v49  ;;  %v2052_v49 = vld [vmem:[%s6123_s16 + $0x1950] sm:$0xff]  ;;  %v4629_v51 = vpack.c.bf16 %v2054_v48, %v2050_v47  ;;  %v4643_v20 = vpack.c.bf16 %v2087_v16, %v2083_v40  ;;  %v2091_v47 = vld [vmem:[%s6123_s16 + $0x1a88] sm:$0xff] }
 0x2dc   : > { %3744 = vmatprep.mubr.f32.mxu1 %v1235_v59  ;;  %4612 = vmatprep.subr.bf16.mxu0 %v4611_v56  ;;  %v2063_v56 = vld [vmem:[%s6123_s16 + $0x19a8] sm:$0xff]  ;;  %v5269_v59 = vpack.c.bf16 %v2056_v58, %v2052_v49  ;;  %v2093_v49 = vld [vmem:[%s6123_s16 + $0x1a98] sm:$0xff]  ;;  %v4645_v58 = vpack.c.bf16 %v2086_v4, %v2082_v41 }
 0x2dd   : > { %5252 = vmatprep.subr.bf16.mxu1 %v5251_v60  ;;  %v4631_v60 = vpack.c.bf16 %v2063_v56, %v2059_v55  ;;  %v2095_v48 = vld [vmem:[%s6123_s16 + $0x1aa8] sm:$0xff] }
 0x2de   : > { %4614 = vmatpush1.bf16.msra.mxu0 %v4613_v62  ;;  %v2060_v62 = vld [vmem:[%s6123_s16 + $0x1990] sm:$0xff]  ;;  %v4647_v56 = vpack.c.bf16 %v2095_v48, %v2091_v47  ;;  %v2111_v17 = vld [vmem:[%s6123_s16 + $0x1b28] sm:$0xff] }
 0x2df   : > { %5254 = vmatpush1.bf16.msra.mxu1 %v5253_v29  ;;  %4616 = vmatprep.subr.bf16.mxu0 %v4615_v63  ;;  %v5271_v29 = vpack.c.bf16 %v2065_v22, %v2061_v57  ;;  %v2064_v63 = vld [vmem:[%s6123_s16 + $0x19b0] sm:$0xff]  ;;  %v2090_v57 = vld [vmem:[%s6123_s16 + $0x1a80] sm:$0xff]  ;;  %v4655_v30 = vpack.c.bf16 %v2111_v17, %v2107_v14  ;;  %v2115_v35 = vld [vmem:[%s6123_s16 + $0x1b48] sm:$0xff] }
 0x2e0   : > { %5256 = vmatprep.subr.bf16.mxu1 %v5255_v15  ;;  %v2073_v15 = vld [vmem:[%s6123_s16 + $0x19f8] sm:$0xff]  ;;  %v5273_v12 = vpack.c.bf16 %v2064_v63, %v2060_v62  ;;  %v2094_v22 = vld [vmem:[%s6123_s16 + $0x1aa0] sm:$0xff]  ;;  %v2119_v1 = vld [vmem:[%s6123_s16 + $0x1b68] sm:$0xff] }
 0x2e1   : > { %v2101_v62 = vld [vmem:[%s6123_s16 + $0x1ad8] sm:$0xff]  ;;  %v4649_v63 = vpack.c.bf16 %v2094_v22, %v2090_v57  ;;  %v4659_v16 = vpack.c.bf16 %v2119_v1, %v2115_v35  ;;  %v2123_v41 = vld [vmem:[%s6123_s16 + $0x1b88] sm:$0xff]  ;;  %v1234_v35 = vmax.f32 %v6400_v8, 0.0 }
 0x2e2   : > { %4618 = vmatpush1.bf16.msra.mxu0 %v4617_v18  ;;  %v2068_v18 = vld [vmem:[%s6123_s16 + $0x19d0] sm:$0xff]  ;;  %v2127_v4 = vld [vmem:[%s6123_s16 + $0x1ba8] sm:$0xff]  ;;  %v2157_v8 = vld [vmem:[%s6123_s16 + $0x1c98] sm:$0xff] }
 0x2e3   : > { %5258 = vmatpush1.bf16.msra.mxu1 %v5257_v24  ;;  %4620 = vmatprep.subr.bf16.mxu0 %v4619_v26  ;;  %v5275_v24 = vpack.c.bf16 %v2073_v15, %v2069_v10  ;;  %v2072_v26 = vld [vmem:[%s6123_s16 + $0x19f0] sm:$0xff]  ;;  %v2098_v10 = vld [vmem:[%s6123_s16 + $0x1ac0] sm:$0xff]  ;;  %v4663_v48 = vpack.c.bf16 %v2127_v4, %v2123_v41  ;;  %v2131_v57 = vld [vmem:[%s6123_s16 + $0x1bc8] sm:$0xff] }
 0x2e4   : > { %5260 = vmatprep.subr.bf16.mxu1 %v5259_v50  ;;  %v2081_v50 = vld [vmem:[%s6123_s16 + $0x1a38] sm:$0xff]  ;;  %v5277_v33 = vpack.c.bf16 %v2072_v26, %v2068_v18  ;;  %v2102_v15 = vld [vmem:[%s6123_s16 + $0x1ae0] sm:$0xff]  ;;  %v2135_v22 = vld [vmem:[%s6123_s16 + $0x1be8] sm:$0xff] }
 0x2e5   : > { %v2109_v18 = vld [vmem:[%s6123_s16 + $0x1b18] sm:$0xff]  ;;  %v4653_v26 = vpack.c.bf16 %v2102_v15, %v2098_v10  ;;  %v4667_v61 = vpack.c.bf16 %v2135_v22, %v2131_v57  ;;  %v2139_v10 = vld [vmem:[%s6123_s16 + $0x1c08] sm:$0xff] }
 0x2e6   : > { %4622 = vmatpush1.bf16.msra.mxu0 %v4621_v37  ;;  %v2076_v37 = vld [vmem:[%s6123_s16 + $0x1a10] sm:$0xff]  ;;  %v2143_v15 = vld [vmem:[%s6123_s16 + $0x1c28] sm:$0xff] }
 0x2e7   : > { %5262 = vmatpush1.bf16.msra.mxu1 %v5261_v38  ;;  %4624 = vmatprep.subr.bf16.mxu0 %v4623_v39  ;;  %v5279_v38 = vpack.c.bf16 %v2081_v50, %v2077_v45  ;;  %v2080_v39 = vld [vmem:[%s6123_s16 + $0x1a30] sm:$0xff]  ;;  %v2106_v45 = vld [vmem:[%s6123_s16 + $0x1b00] sm:$0xff]  ;;  %v4671_v17 = vpack.c.bf16 %v2143_v15, %v2139_v10 }
 0x2e8   : > { %5264 = vmatprep.subr.bf16.mxu1 %v5263_v32  ;;  %v2089_v32 = vld [vmem:[%s6123_s16 + $0x1a78] sm:$0xff]  ;;  %v5281_v23 = vpack.c.bf16 %v2080_v39, %v2076_v37  ;;  %v2110_v50 = vld [vmem:[%s6123_s16 + $0x1b20] sm:$0xff] }
 0x2e9   : > { %v2117_v37 = vld [vmem:[%s6123_s16 + $0x1b58] sm:$0xff]  ;;  %v4657_v39 = vpack.c.bf16 %v2110_v50, %v2106_v45  ;;  %v2147_v45 = vld [vmem:[%s6123_s16 + $0x1c48] sm:$0xff] }
 0x2ea   : > { %4626 = vmatpush1.bf16.msra.mxu0 %v4625_v43  ;;  %v2084_v43 = vld [vmem:[%s6123_s16 + $0x1a50] sm:$0xff]  ;;  %v2151_v50 = vld [vmem:[%s6123_s16 + $0x1c68] sm:$0xff] }
 0x2eb   : > { %5266 = vmatpush1.bf16.msra.mxu1 %v5265_v44  ;;  %4628 = vmatprep.subr.bf16.mxu0 %v4627_v36  ;;  %v5283_v44 = vpack.c.bf16 %v2089_v32, %v2085_v52  ;;  %v2088_v36 = vld [vmem:[%s6123_s16 + $0x1a70] sm:$0xff]  ;;  %v2114_v52 = vld [vmem:[%s6123_s16 + $0x1b40] sm:$0xff] }
 0x2ec   : > { %5268 = vmatprep.subr.bf16.mxu1 %v5267_v53  ;;  %v2097_v53 = vld [vmem:[%s6123_s16 + $0x1ab8] sm:$0xff]  ;;  %v5285_v55 = vpack.c.bf16 %v2088_v36, %v2084_v43  ;;  %v2118_v32 = vld [vmem:[%s6123_s16 + $0x1b60] sm:$0xff] }
 0x2ed   : > { %v2125_v43 = vld [vmem:[%s6123_s16 + $0x1b98] sm:$0xff]  ;;  %v4661_v36 = vpack.c.bf16 %v2118_v32, %v2114_v52  ;;  %v2155_v52 = vld [vmem:[%s6123_s16 + $0x1c88] sm:$0xff] }
 0x2ee   : > { %4630 = vmatpush1.bf16.msra.mxu0 %v4629_v51  ;;  %v2092_v51 = vld [vmem:[%s6123_s16 + $0x1a90] sm:$0xff]  ;;  %v2159_v32 = vld [vmem:[%s6123_s16 + $0x1ca8] sm:$0xff] }
 0x2ef   : > { %5270 = vmatpush1.bf16.msra.mxu1 %v5269_v59  ;;  %4632 = vmatprep.subr.bf16.mxu0 %v4631_v60  ;;  %v5287_v59 = vpack.c.bf16 %v2097_v53, %v2093_v49  ;;  %v2096_v60 = vld [vmem:[%s6123_s16 + $0x1ab0] sm:$0xff]  ;;  %v2122_v49 = vld [vmem:[%s6123_s16 + $0x1b80] sm:$0xff] }
 0x2f0   : > { %5272 = vmatprep.subr.bf16.mxu1 %v5271_v29  ;;  %v2105_v29 = vld [vmem:[%s6123_s16 + $0x1af8] sm:$0xff]  ;;  %v5289_v0 = vpack.c.bf16 %v2096_v60, %v2092_v51  ;;  %v2126_v53 = vld [vmem:[%s6123_s16 + $0x1ba0] sm:$0xff] }
 0x2f1   : > { %v2133_v51 = vld [vmem:[%s6123_s16 + $0x1bd8] sm:$0xff]  ;;  %v4665_v60 = vpack.c.bf16 %v2126_v53, %v2122_v49  ;;  %v2163_v49 = vld [vmem:[%s6123_s16 + $0x1cc8] sm:$0xff] }
 0x2f2   : > { %4634 = vmatpush1.bf16.msra.mxu0 %v4633_v11  ;;  %v2100_v11 = vld [vmem:[%s6123_s16 + $0x1ad0] sm:$0xff]  ;;  %v2167_v53 = vld [vmem:[%s6123_s16 + $0x1ce8] sm:$0xff] }
 0x2f3   : > { %5274 = vmatpush1.bf16.msra.mxu1 %v5273_v12  ;;  %4636 = vmatprep.subr.bf16.mxu0 %v4635_v21  ;;  %v5291_v12 = vpack.c.bf16 %v2105_v29, %v2101_v62  ;;  %v2104_v21 = vld [vmem:[%s6123_s16 + $0x1af0] sm:$0xff]  ;;  %v2130_v62 = vld [vmem:[%s6123_s16 + $0x1bc0] sm:$0xff]  ;;  %v4683_v22 = vpack.c.bf16 %v2167_v53, %v2163_v49 }
 0x2f4   : > { %5276 = vmatprep.subr.bf16.mxu1 %v5275_v24  ;;  %v2113_v24 = vld [vmem:[%s6123_s16 + $0x1b38] sm:$0xff]  ;;  %v5293_v27 = vpack.c.bf16 %v2104_v21, %v2100_v11  ;;  %v2134_v29 = vld [vmem:[%s6123_s16 + $0x1be0] sm:$0xff] }
 0x2f5   : > { %v2141_v11 = vld [vmem:[%s6123_s16 + $0x1c18] sm:$0xff]  ;;  %v4669_v21 = vpack.c.bf16 %v2134_v29, %v2130_v62  ;;  %v2171_v62 = vld [vmem:[%s6123_s16 + $0x1d08] sm:$0xff]  ;;  %v2194_v49 = vld [vmem:[%s6123_s16 + $0x1dc0] sm:$0xff] }
 0x2f6   : > { %4638 = vmatpush1.bf16.msra.mxu0 %v4637_v31  ;;  %v2108_v31 = vld [vmem:[%s6123_s16 + $0x1b10] sm:$0xff]  ;;  %v2175_v29 = vld [vmem:[%s6123_s16 + $0x1d28] sm:$0xff]  ;;  %v2198_v53 = vld [vmem:[%s6123_s16 + $0x1de0] sm:$0xff] }
 0x2f7   : > { %5278 = vmatpush1.bf16.msra.mxu1 %v5277_v33  ;;  %4640 = vmatprep.subr.bf16.mxu0 %v4639_v34  ;;  %v5295_v33 = vpack.c.bf16 %v2113_v24, %v2109_v18  ;;  %v2112_v34 = vld [vmem:[%s6123_s16 + $0x1b30] sm:$0xff]  ;;  %v2138_v18 = vld [vmem:[%s6123_s16 + $0x1c00] sm:$0xff]  ;;  %v4687_v15 = vpack.c.bf16 %v2175_v29, %v2171_v62 }
 0x2f8   : > { %5280 = vmatprep.subr.bf16.mxu1 %v5279_v38  ;;  %v2121_v38 = vld [vmem:[%s6123_s16 + $0x1b78] sm:$0xff]  ;;  %v5297_v40 = vpack.c.bf16 %v2112_v34, %v2108_v31  ;;  %v2142_v24 = vld [vmem:[%s6123_s16 + $0x1c20] sm:$0xff] }
 0x2f9   : > { %v4673_v31 = vpack.c.bf16 %v2142_v24, %v2138_v18  ;;  %v2153_v34 = vld [vmem:[%s6123_s16 + $0x1c78] sm:$0xff]  ;;  %v2179_v18 = vld [vmem:[%s6123_s16 + $0x1d48] sm:$0xff]  ;;  %v2202_v62 = vld [vmem:[%s6123_s16 + $0x1e00] sm:$0xff] }
 0x2fa   : > { %4642 = vmatpush1.bf16.msra.mxu0 %v4641_v6  ;;  %v2116_v6 = vld [vmem:[%s6123_s16 + $0x1b50] sm:$0xff]  ;;  %v2183_v24 = vld [vmem:[%s6123_s16 + $0x1d68] sm:$0xff]  ;;  %v2206_v29 = vld [vmem:[%s6123_s16 + $0x1e20] sm:$0xff] }
 0x2fb   : > { %5282 = vmatpush1.bf16.msra.mxu1 %v5281_v23  ;;  %4644 = vmatprep.subr.bf16.mxu0 %v4643_v20  ;;  %v5299_v23 = vpack.c.bf16 %v2121_v38, %v2117_v37  ;;  %v2120_v20 = vld [vmem:[%s6123_s16 + $0x1b70] sm:$0xff]  ;;  %v2146_v37 = vld [vmem:[%s6123_s16 + $0x1c40] sm:$0xff] }
 0x2fc   : > { %5284 = vmatprep.subr.bf16.mxu1 %v5283_v44  ;;  %v2129_v44 = vld [vmem:[%s6123_s16 + $0x1bb8] sm:$0xff]  ;;  %v5301_v47 = vpack.c.bf16 %v2120_v20, %v2116_v6  ;;  %v2150_v38 = vld [vmem:[%s6123_s16 + $0x1c60] sm:$0xff]  ;;  %v1237_v6 = vmax.f32 %v6414_v25, 0.0 }
 0x2fd   : > { %v2161_v20 = vld [vmem:[%s6123_s16 + $0x1cb8] sm:$0xff]  ;;  %v4677_v41 = vpack.c.bf16 %v2150_v38, %v2146_v37  ;;  %v2187_v37 = vld [vmem:[%s6123_s16 + $0x1d88] sm:$0xff] }
 0x2fe   : > { %4646 = vmatpush1.bf16.msra.mxu0 %v4645_v58  ;;  %v2124_v58 = vld [vmem:[%s6123_s16 + $0x1b90] sm:$0xff]  ;;  %v5319_v25 = vpack.c.bf16 %v2161_v20, %v2157_v8  ;;  %v2191_v38 = vld [vmem:[%s6123_s16 + $0x1da8] sm:$0xff] }
 0x2ff   : > { %5286 = vmatpush1.bf16.msra.mxu1 %v5285_v55  ;;  %4648 = vmatprep.subr.bf16.mxu0 %v4647_v56  ;;  %v5303_v55 = vpack.c.bf16 %v2129_v44, %v2125_v43  ;;  %v2128_v56 = vld [vmem:[%s6123_s16 + $0x1bb0] sm:$0xff]  ;;  %v4679_v43 = vpack.c.bf16 %v2159_v32, %v2155_v52  ;;  %v2154_v44 = vld [vmem:[%s6123_s16 + $0x1c80] sm:$0xff]  ;;  %v4695_v32 = vpack.c.bf16 %v2191_v38, %v2187_v37 }
 0x300   : > { %5288 = vmatprep.subr.bf16.mxu1 %v5287_v59  ;;  %v2137_v59 = vld [vmem:[%s6123_s16 + $0x1bf8] sm:$0xff]  ;;  %v5305_v42 = vpack.c.bf16 %v2128_v56, %v2124_v58  ;;  %v2188_v8 = vld [vmem:[%s6123_s16 + $0x1d90] sm:$0xff]  ;;  %v2218_v37 = vld [vmem:[%s6123_s16 + $0x1e80] sm:$0xff] }
 0x301   : > { %v2165_v58 = vld [vmem:[%s6123_s16 + $0x1cd8] sm:$0xff]  ;;  %v2222_v38 = vld [vmem:[%s6123_s16 + $0x1ea0] sm:$0xff] }
 0x302   : > { %4650 = vmatpush1.bf16.msra.mxu0 %v4649_v63  ;;  %v2132_v63 = vld [vmem:[%s6123_s16 + $0x1bd0] sm:$0xff] }
 0x303   : > { %5290 = vmatpush1.bf16.msra.mxu1 %v5289_v0  ;;  %4652 = vmatprep.subr.bf16.mxu0 %v4651_v2  ;;  %v5307_v0 = vpack.c.bf16 %v2137_v59, %v2133_v51  ;;  %v2136_v2 = vld [vmem:[%s6123_s16 + $0x1bf0] sm:$0xff]  ;;  %v2162_v51 = vld [vmem:[%s6123_s16 + $0x1cc0] sm:$0xff] }
 0x304   : > { %5292 = vmatprep.subr.bf16.mxu1 %v5291_v12  ;;  %v2145_v12 = vld [vmem:[%s6123_s16 + $0x1c38] sm:$0xff]  ;;  %v5309_v14 = vpack.c.bf16 %v2136_v2, %v2132_v63  ;;  %v2166_v59 = vld [vmem:[%s6123_s16 + $0x1ce0] sm:$0xff] }
 0x305   : > { %v2173_v63 = vld [vmem:[%s6123_s16 + $0x1d18] sm:$0xff]  ;;  %v4685_v2 = vpack.c.bf16 %v2166_v59, %v2162_v51 }
 0x306   : > { %4654 = vmatpush1.bf16.msra.mxu0 %v4653_v26  ;;  %v5311_v26 = vpack.c.bf16 %v2145_v12, %v2141_v11  ;;  %v2170_v11 = vld [vmem:[%s6123_s16 + $0x1d00] sm:$0xff]  ;;  %v2205_v51 = vld [vmem:[%s6123_s16 + $0x1e18] sm:$0xff] }
 0x307   : > { %5294 = vmatpush1.bf16.msra.mxu1 %v5293_v27  ;;  %4656 = vmatprep.subr.bf16.mxu0 %v4655_v30  ;;  %v2140_v27 = vld [vmem:[%s6123_s16 + $0x1c10] sm:$0xff]  ;;  %v2174_v12 = vld [vmem:[%s6123_s16 + $0x1d20] sm:$0xff]  ;;  %v2209_v59 = vld [vmem:[%s6123_s16 + $0x1e38] sm:$0xff] }
 0x308   : > { %5296 = vmatprep.subr.bf16.mxu1 %v5295_v33  ;;  %v2144_v30 = vld [vmem:[%s6123_s16 + $0x1c30] sm:$0xff]  ;;  %v2149_v33 = vld [vmem:[%s6123_s16 + $0x1c58] sm:$0xff] }
 0x309   : > { %v5313_v1 = vpack.c.bf16 %v2144_v30, %v2140_v27  ;;  %v2185_v27 = vld [vmem:[%s6123_s16 + $0x1d78] sm:$0xff]  ;;  %v4689_v30 = vpack.c.bf16 %v2174_v12, %v2170_v11 }
 0x30a   : > { %4658 = vmatpush1.bf16.msra.mxu0 %v4657_v39  ;;  %v2148_v39 = vld [vmem:[%s6123_s16 + $0x1c50] sm:$0xff]  ;;  %v2213_v11 = vld [vmem:[%s6123_s16 + $0x1e58] sm:$0xff] }
 0x30b   : > { %5298 = vmatpush1.bf16.msra.mxu1 %v5297_v40  ;;  %4660 = vmatprep.subr.bf16.mxu0 %v4659_v16  ;;  %v4675_v40 = vpack.c.bf16 %v2151_v50, %v2147_v45  ;;  %v2152_v16 = vld [vmem:[%s6123_s16 + $0x1c70] sm:$0xff]  ;;  %v4691_v50 = vpack.c.bf16 %v2183_v24, %v2179_v18  ;;  %v2217_v12 = vld [vmem:[%s6123_s16 + $0x1e78] sm:$0xff]  ;;  %v2210_v18 = vld [vmem:[%s6123_s16 + $0x1e40] sm:$0xff] }
 0x30c   : > { %5300 = vmatprep.subr.bf16.mxu1 %v5299_v23  ;;  %v5315_v23 = vpack.c.bf16 %v2153_v34, %v2149_v33  ;;  %v5317_v4 = vpack.c.bf16 %v2152_v16, %v2148_v39  ;;  %v2182_v33 = vld [vmem:[%s6123_s16 + $0x1d60] sm:$0xff]  ;;  %v2180_v34 = vld [vmem:[%s6123_s16 + $0x1d50] sm:$0xff]  ;;  %v2189_v39 = vld [vmem:[%s6123_s16 + $0x1d98] sm:$0xff] }
 0x30d   : > { %v2214_v24 = vld [vmem:[%s6123_s16 + $0x1e60] sm:$0xff] }
 0x30e   : > { %4662 = vmatpush1.bf16.msra.mxu0 %v4661_v36  ;;  %v2158_v36 = vld [vmem:[%s6123_s16 + $0x1ca0] sm:$0xff] }
 0x30f   : > { %5302 = vmatpush1.bf16.msra.mxu1 %v5301_v47  ;;  %4664 = vmatprep.subr.bf16.mxu0 %v4663_v48  ;;  %v2156_v47 = vld [vmem:[%s6123_s16 + $0x1c90] sm:$0xff]  ;;  %v4681_v56 = vpack.c.bf16 %v2158_v36, %v2154_v44  ;;  %v2197_v44 = vld [vmem:[%s6123_s16 + $0x1dd8] sm:$0xff] }
 0x310   : > { %5304 = vmatprep.subr.bf16.mxu1 %v5303_v55  ;;  %v2160_v48 = vld [vmem:[%s6123_s16 + $0x1cb0] sm:$0xff]  ;;  %v2169_v55 = vld [vmem:[%s6123_s16 + $0x1cf8] sm:$0xff] }
 0x311   : > { %v5321_v57 = vpack.c.bf16 %v2160_v48, %v2156_v47  ;;  %v2201_v36 = vld [vmem:[%s6123_s16 + $0x1df8] sm:$0xff] }
 0x312   : > { %4666 = vmatpush1.bf16.msra.mxu0 %v4665_v60  ;;  %v2164_v60 = vld [vmem:[%s6123_s16 + $0x1cd0] sm:$0xff] }
 0x313   : > { %5306 = vmatpush1.bf16.msra.mxu1 %v5305_v42  ;;  %4668 = vmatprep.subr.bf16.mxu0 %v4667_v61  ;;  %v5323_v42 = vpack.c.bf16 %v2169_v55, %v2165_v58  ;;  %v2168_v61 = vld [vmem:[%s6123_s16 + $0x1cf0] sm:$0xff]  ;;  %v5339_v55 = vpack.c.bf16 %v2201_v36, %v2197_v44 }
 0x314   : > { %5308 = vmatprep.subr.bf16.mxu1 %v5307_v0  ;;  %v2177_v0 = vld [vmem:[%s6123_s16 + $0x1d38] sm:$0xff]  ;;  %v5325_v10 = vpack.c.bf16 %v2168_v61, %v2164_v60  ;;  %v2196_v58 = vld [vmem:[%s6123_s16 + $0x1dd0] sm:$0xff]  ;;  %v4701_v60 = vpack.c.bf16 %v2198_v53, %v2194_v49 }
 0x315   : > { %v2228_v44 = vld [vmem:[%s6123_s16 + $0x1ed0] sm:$0xff]  ;;  %v2237_v49 = vld [vmem:[%s6123_s16 + $0x1f18] sm:$0xff] }
 0x316   : > { %4670 = vmatpush1.bf16.msra.mxu0 %v4669_v21  ;;  %v2172_v21 = vld [vmem:[%s6123_s16 + $0x1d10] sm:$0xff]  ;;  %v2241_v53 = vld [vmem:[%s6123_s16 + $0x1f38] sm:$0xff] }
 0x317   : > { %5310 = vmatpush1.bf16.msra.mxu1 %v5309_v14  ;;  %4672 = vmatprep.subr.bf16.mxu0 %v4671_v17  ;;  %v5327_v14 = vpack.c.bf16 %v2177_v0, %v2173_v63  ;;  %v2176_v17 = vld [vmem:[%s6123_s16 + $0x1d30] sm:$0xff]  ;;  %v5343_v0 = vpack.c.bf16 %v2209_v59, %v2205_v51  ;;  %v5359_v59 = vpack.c.bf16 %v2241_v53, %v2237_v49  ;;  %v2266_v49 = vld [vmem:[%s6123_s16 + $0x2000] sm:$0xff] }
 0x318   : > { %5312 = vmatprep.subr.bf16.mxu1 %v5311_v26  ;;  %v2181_v26 = vld [vmem:[%s6123_s16 + $0x1d58] sm:$0xff]  ;;  %v5329_v45 = vpack.c.bf16 %v2176_v17, %v2172_v21  ;;  %v2204_v63 = vld [vmem:[%s6123_s16 + $0x1e10] sm:$0xff]  ;;  %v4705_v21 = vpack.c.bf16 %v2206_v29, %v2202_v62  ;;  %v2270_v53 = vld [vmem:[%s6123_s16 + $0x2020] sm:$0xff] }
 0x319   : > { %3035 = vmatmul.mubr.f32.vlgmr.msra.gmra.mrb[10].mxu0 %v1234_v35  ;;  %v2236_v51 = vld [vmem:[%s6123_s16 + $0x1f10] sm:$0xff]  ;;  %v2245_v62 = vld [vmem:[%s6123_s16 + $0x1f58] sm:$0xff] }
 0x31a   : > { %3745 = vmatmul.mubr.f32.vlgmr.msra.gmra.mrb[10].mxu1 %v1234_v35  ;;  %4674 = vmatpush1.bf16.msra.mxu0 %v4673_v31  ;;  %v2178_v31 = vld [vmem:[%s6123_s16 + $0x1d40] sm:$0xff]  ;;  %v5331_v35 = vpack.c.bf16 %v2185_v27, %v2181_v26  ;;  %v2212_v26 = vld [vmem:[%s6123_s16 + $0x1e50] sm:$0xff]  ;;  %v5347_v27 = vpack.c.bf16 %v2217_v12, %v2213_v11  ;;  %v2249_v29 = vld [vmem:[%s6123_s16 + $0x1f78] sm:$0xff] }
 0x31b   : > { %3105 = vmatprep.mubr.f32.mxu0 %v1237_v6  ;;  %5314 = vmatpush1.bf16.msra.mxu1 %v5313_v1  ;;  %v2184_v1 = vld [vmem:[%s6123_s16 + $0x1d70] sm:$0xff]  ;;  %v4693_v16 = vpack.c.bf16 %v2182_v33, %v2178_v31  ;;  %v2221_v31 = vld [vmem:[%s6123_s16 + $0x1e98] sm:$0xff]  ;;  %v5363_v12 = vpack.c.bf16 %v2249_v29, %v2245_v62  ;;  %v2274_v29 = vld [vmem:[%s6123_s16 + $0x2040] sm:$0xff] }
 0x31c   : > { %3815 = vmatprep.mubr.f32.mxu1 %v1237_v6  ;;  %4676 = vmatprep.subr.bf16.mxu0 %v4675_v40  ;;  %v2193_v40 = vld [vmem:[%s6123_s16 + $0x1db8] sm:$0xff]  ;;  %v5333_v52 = vpack.c.bf16 %v2184_v1, %v2180_v34  ;;  %v2186_v6 = vld [vmem:[%s6123_s16 + $0x1d80] sm:$0xff]  ;;  %v4709_v34 = vpack.c.bf16 %v2214_v24, %v2210_v18  ;;  %v2244_v11 = vld [vmem:[%s6123_s16 + $0x1f50] sm:$0xff] }
 0x31d   : > { %5316 = vmatprep.subr.bf16.mxu1 %v5315_v23  ;;  %v2190_v23 = vld [vmem:[%s6123_s16 + $0x1da0] sm:$0xff]  ;;  %v5335_v20 = vpack.c.bf16 %v2193_v40, %v2189_v39  ;;  %v2225_v33 = vld [vmem:[%s6123_s16 + $0x1eb8] sm:$0xff]  ;;  %v2220_v39 = vld [vmem:[%s6123_s16 + $0x1e90] sm:$0xff] }
 0x31e   : > { %4678 = vmatpush1.bf16.msra.mxu0 %v4677_v41  ;;  %v2192_v41 = vld [vmem:[%s6123_s16 + $0x1db0] sm:$0xff]  ;;  %v4697_v47 = vpack.c.bf16 %v2190_v23, %v2186_v6  ;;  %v5351_v40 = vpack.c.bf16 %v2225_v33, %v2221_v31  ;;  %v2229_v6 = vld [vmem:[%s6123_s16 + $0x1ed8] sm:$0xff] }
 0x31f   : > { %5318 = vmatpush1.bf16.msra.mxu1 %v5317_v4  ;;  %4680 = vmatprep.subr.bf16.mxu0 %v4679_v43  ;;  %v2195_v4 = vld [vmem:[%s6123_s16 + $0x1dc8] sm:$0xff]  ;;  %v2233_v23 = vld [vmem:[%s6123_s16 + $0x1ef8] sm:$0xff]  ;;  %v2252_v31 = vld [vmem:[%s6123_s16 + $0x1f90] sm:$0xff] }
 0x320   : > { %5320 = vmatprep.subr.bf16.mxu1 %v5319_v25  ;;  %v2199_v43 = vld [vmem:[%s6123_s16 + $0x1de8] sm:$0xff]  ;;  %v5337_v25 = vpack.c.bf16 %v2192_v41, %v2188_v8  ;;  %v4713_v8 = vpack.c.bf16 %v2222_v38, %v2218_v37  ;;  %v5355_v36 = vpack.c.bf16 %v2233_v23, %v2229_v6  ;;  %v2253_v18 = vld [vmem:[%s6123_s16 + $0x1f98] sm:$0xff]  ;;  %v2260_v6 = vld [vmem:[%s6123_s16 + $0x1fd0] sm:$0xff] }
 0x321   : > { %v4699_v48 = vpack.c.bf16 %v2199_v43, %v2195_v4  ;;  %v2226_v4 = vld [vmem:[%s6123_s16 + $0x1ec0] sm:$0xff]  ;;  %v2257_v24 = vld [vmem:[%s6123_s16 + $0x1fb8] sm:$0xff] }
 0x322   : > { %4682 = vmatpush1.bf16.msra.mxu0 %v4681_v56  ;;  %v2200_v56 = vld [vmem:[%s6123_s16 + $0x1df0] sm:$0xff]  ;;  %v2230_v43 = vld [vmem:[%s6123_s16 + $0x1ee0] sm:$0xff]  ;;  %v5367_v33 = vpack.c.bf16 %v2257_v24, %v2253_v18  ;;  %v2261_v37 = vld [vmem:[%s6123_s16 + $0x1fd8] sm:$0xff] }
 0x323   : > { %5322 = vmatpush1.bf16.msra.mxu1 %v5321_v57  ;;  %4684 = vmatprep.subr.bf16.mxu0 %v4683_v22  ;;  %v2203_v57 = vld [vmem:[%s6123_s16 + $0x1e08] sm:$0xff]  ;;  %v2265_v38 = vld [vmem:[%s6123_s16 + $0x1ff8] sm:$0xff]  ;;  %v2282_v24 = vld [vmem:[%s6123_s16 + $0x2080] sm:$0xff] }
 0x324   : > { %5324 = vmatprep.subr.bf16.mxu1 %v5323_v42  ;;  %v2207_v22 = vld [vmem:[%s6123_s16 + $0x1e28] sm:$0xff]  ;;  %v5341_v42 = vpack.c.bf16 %v2200_v56, %v2196_v58  ;;  %v4717_v58 = vpack.c.bf16 %v2230_v43, %v2226_v4  ;;  %v5371_v23 = vpack.c.bf16 %v2265_v38, %v2261_v37  ;;  %v7293_v4 = vld [vmem:[#allocation7 + $0x10] sm:$0xf]  ;;  %v2290_v38 = vld [vmem:[%s6123_s16 + $0x20c0] sm:$0xff] }
 0x325   : > { %v4703_v61 = vpack.c.bf16 %v2207_v22, %v2203_v57  ;;  %v2234_v57 = vld [vmem:[%s6123_s16 + $0x1f00] sm:$0xff]  ;;  %v479_v43 = vrot.slane %v7293_v4, %v6301_v7 }
 0x326   : > { %4686 = vmatpush1.bf16.msra.mxu0 %v4685_v2  ;;  %v2208_v2 = vld [vmem:[%s6123_s16 + $0x1e30] sm:$0xff]  ;;  %v2238_v22 = vld [vmem:[%s6123_s16 + $0x1f20] sm:$0xff] }
 0x327   : > { %5326 = vmatpush1.bf16.msra.mxu1 %v5325_v10  ;;  %4688 = vmatprep.subr.bf16.mxu0 %v4687_v15  ;;  %v2211_v10 = vld [vmem:[%s6123_s16 + $0x1e48] sm:$0xff] }
 0x328   : > { %5328 = vmatprep.subr.bf16.mxu1 %v5327_v14  ;;  %v2215_v15 = vld [vmem:[%s6123_s16 + $0x1e68] sm:$0xff]  ;;  %v5345_v14 = vpack.c.bf16 %v2208_v2, %v2204_v63  ;;  %v4721_v63 = vpack.c.bf16 %v2238_v22, %v2234_v57  ;;  %v1149_v57 = vadd.f32 %v6427_v54, %v479_v43 }
 0x329   : > { %v4707_v17 = vpack.c.bf16 %v2215_v15, %v2211_v10  ;;  %v2242_v10 = vld [vmem:[%s6123_s16 + $0x1f40] sm:$0xff]  ;;  %v2275_v22 = vld [vmem:[%s6123_s16 + $0x2048] sm:$0xff] }
 0x32a   : > { %4690 = vmatpush1.bf16.msra.mxu0 %v4689_v30  ;;  %v2216_v30 = vld [vmem:[%s6123_s16 + $0x1e70] sm:$0xff]  ;;  %v2246_v15 = vld [vmem:[%s6123_s16 + $0x1f60] sm:$0xff] }
 0x32b   : > { %5330 = vmatpush1.bf16.msra.mxu1 %v5329_v45  ;;  %4692 = vmatprep.subr.bf16.mxu0 %v4691_v50  ;;  %v2219_v45 = vld [vmem:[%s6123_s16 + $0x1e88] sm:$0xff] }
 0x32c   : > { %5332 = vmatprep.subr.bf16.mxu1 %v5331_v35  ;;  %v2223_v50 = vld [vmem:[%s6123_s16 + $0x1ea8] sm:$0xff]  ;;  %v5349_v35 = vpack.c.bf16 %v2216_v30, %v2212_v26  ;;  %v4725_v26 = vpack.c.bf16 %v2246_v15, %v2242_v10 }
 0x32d   : > { %v4711_v1 = vpack.c.bf16 %v2223_v50, %v2219_v45  ;;  %v2250_v45 = vld [vmem:[%s6123_s16 + $0x1f80] sm:$0xff]  ;;  %v2283_v10 = vld [vmem:[%s6123_s16 + $0x2088] sm:$0xff] }
 0x32e   : > { %4694 = vmatpush1.bf16.msra.mxu0 %v4693_v16  ;;  %v2224_v16 = vld [vmem:[%s6123_s16 + $0x1eb0] sm:$0xff]  ;;  %v2254_v50 = vld [vmem:[%s6123_s16 + $0x1fa0] sm:$0xff]  ;;  %v2287_v15 = vld [vmem:[%s6123_s16 + $0x20a8] sm:$0xff] }
 0x32f   : > { %5334 = vmatpush1.bf16.msra.mxu1 %v5333_v52  ;;  %4696 = vmatprep.subr.bf16.mxu0 %v4695_v32  ;;  %v2227_v52 = vld [vmem:[%s6123_s16 + $0x1ec8] sm:$0xff]  ;;  %v4743_v18 = vpack.c.bf16 %v2287_v15, %v2283_v10  ;;  %v2314_v15 = vld [vmem:[%s6123_s16 + $0x2180] sm:$0xff] }
 0x330   : > { %5336 = vmatprep.subr.bf16.mxu1 %v5335_v20  ;;  %v2231_v32 = vld [vmem:[%s6123_s16 + $0x1ee8] sm:$0xff]  ;;  %v5353_v20 = vpack.c.bf16 %v2224_v16, %v2220_v39  ;;  %v4729_v39 = vpack.c.bf16 %v2254_v50, %v2250_v45  ;;  %v2288_v45 = vld [vmem:[%s6123_s16 + $0x20b0] sm:$0xff] }
 0x331   : > { %v4715_v41 = vpack.c.bf16 %v2231_v32, %v2227_v52  ;;  %v2258_v52 = vld [vmem:[%s6123_s16 + $0x1fc0] sm:$0xff]  ;;  %v2291_v50 = vld [vmem:[%s6123_s16 + $0x20c8] sm:$0xff] }
 0x332   : > { %4698 = vmatpush1.bf16.msra.mxu0 %v4697_v47  ;;  %v2232_v47 = vld [vmem:[%s6123_s16 + $0x1ef0] sm:$0xff]  ;;  %v2262_v32 = vld [vmem:[%s6123_s16 + $0x1fe0] sm:$0xff] }
 0x333   : > { %5338 = vmatpush1.bf16.msra.mxu1 %v5337_v25  ;;  %4700 = vmatprep.subr.bf16.mxu0 %v4699_v48  ;;  %v2235_v25 = vld [vmem:[%s6123_s16 + $0x1f08] sm:$0xff] }
 0x334   : > { %5340 = vmatprep.subr.bf16.mxu1 %v5339_v55  ;;  %v2239_v48 = vld [vmem:[%s6123_s16 + $0x1f28] sm:$0xff]  ;;  %v5357_v55 = vpack.c.bf16 %v2232_v47, %v2228_v44  ;;  %v2269_v44 = vld [vmem:[%s6123_s16 + $0x2018] sm:$0xff]  ;;  %v4733_v47 = vpack.c.bf16 %v2262_v32, %v2258_v52  ;;  %v2296_v52 = vld [vmem:[%s6123_s16 + $0x20f0] sm:$0xff] }
 0x335   : > { %v4719_v56 = vpack.c.bf16 %v2239_v48, %v2235_v25  ;;  %v2299_v32 = vld [vmem:[%s6123_s16 + $0x2108] sm:$0xff] }
 0x336   : > { %4702 = vmatpush1.bf16.msra.mxu0 %v4701_v60  ;;  %v2240_v60 = vld [vmem:[%s6123_s16 + $0x1f30] sm:$0xff] }
 0x337   : > { %5342 = vmatpush1.bf16.msra.mxu1 %v5341_v42  ;;  %4704 = vmatprep.subr.bf16.mxu0 %v4703_v61  ;;  %v2243_v42 = vld [vmem:[%s6123_s16 + $0x1f48] sm:$0xff] }
 0x338   : > { %5344 = vmatprep.subr.bf16.mxu1 %v5343_v0  ;;  %v2247_v61 = vld [vmem:[%s6123_s16 + $0x1f68] sm:$0xff]  ;;  %v5361_v0 = vpack.c.bf16 %v2240_v60, %v2236_v51  ;;  %v2277_v60 = vld [vmem:[%s6123_s16 + $0x2058] sm:$0xff] }
 0x339   : > { %v4723_v2 = vpack.c.bf16 %v2247_v61, %v2243_v42  ;;  %v2279_v51 = vld [vmem:[%s6123_s16 + $0x2068] sm:$0xff]  ;;  %v2281_v42 = vld [vmem:[%s6123_s16 + $0x2078] sm:$0xff]  ;;  %v1236_v61 = vmax.f32 %v6410_v28, 0.0 }
 0x33a   : > { %4706 = vmatpush1.bf16.msra.mxu0 %v4705_v21  ;;  %v2248_v21 = vld [vmem:[%s6123_s16 + $0x1f70] sm:$0xff]  ;;  %v4739_v54 = vpack.c.bf16 %v2279_v51, %v2275_v22  ;;  %v2285_v28 = vld [vmem:[%s6123_s16 + $0x2098] sm:$0xff]  ;;  %v2306_v51 = vld [vmem:[%s6123_s16 + $0x2140] sm:$0xff] }
 0x33b   : > { %5346 = vmatpush1.bf16.msra.mxu1 %v5345_v14  ;;  %4708 = vmatprep.subr.bf16.mxu0 %v4707_v17  ;;  %v2251_v14 = vld [vmem:[%s6123_s16 + $0x1f88] sm:$0xff] }
 0x33c   : > { %5348 = vmatprep.subr.bf16.mxu1 %v5347_v27  ;;  %v2255_v17 = vld [vmem:[%s6123_s16 + $0x1fa8] sm:$0xff]  ;;  %v5365_v27 = vpack.c.bf16 %v2248_v21, %v2244_v11  ;;  %v1239_v11 = vmax.f32 %v1149_v57, 0.0  ;;  %v2289_v21 = vld [vmem:[%s6123_s16 + $0x20b8] sm:$0xff] }
 0x33d   : > { %v4727_v30 = vpack.c.bf16 %v2255_v17, %v2251_v14 }
 0x33e   : > { %4710 = vmatpush1.bf16.msra.mxu0 %v4709_v34  ;;  %v2256_v34 = vld [vmem:[%s6123_s16 + $0x1fb0] sm:$0xff] }
 0x33f   : > { %5350 = vmatpush1.bf16.msra.mxu1 %v5349_v35  ;;  %4712 = vmatprep.subr.bf16.mxu0 %v4711_v1  ;;  %v2259_v35 = vld [vmem:[%s6123_s16 + $0x1fc8] sm:$0xff] }
 0x340   : > { %5352 = vmatprep.subr.bf16.mxu1 %v5351_v40  ;;  %v2263_v1 = vld [vmem:[%s6123_s16 + $0x1fe8] sm:$0xff]  ;;  %v5369_v40 = vpack.c.bf16 %v2256_v34, %v2252_v31  ;;  %v2297_v34 = vld [vmem:[%s6123_s16 + $0x20f8] sm:$0xff] }
 0x341   : > { %v4731_v16 = vpack.c.bf16 %v2263_v1, %v2259_v35  ;;  %v2295_v31 = vld [vmem:[%s6123_s16 + $0x20e8] sm:$0xff] }
 0x342   : > { %4714 = vmatpush1.bf16.msra.mxu0 %v4713_v8  ;;  %v2264_v8 = vld [vmem:[%s6123_s16 + $0x1ff0] sm:$0xff]  ;;  %v4747_v37 = vpack.c.bf16 %v2295_v31, %v2291_v50  ;;  %v2326_v50 = vld [vmem:[%s6123_s16 + $0x21e0] sm:$0xff] }
 0x343   : > { %5354 = vmatpush1.bf16.msra.mxu1 %v5353_v20  ;;  %4716 = vmatprep.subr.bf16.mxu0 %v4715_v41  ;;  %v2267_v20 = vld [vmem:[%s6123_s16 + $0x2008] sm:$0xff]  ;;  %v5373_v25 = vpack.c.bf16 %v2264_v8, %v2260_v6  ;;  %v2305_v8 = vld [vmem:[%s6123_s16 + $0x2138] sm:$0xff]  ;;  %v2324_v31 = vld [vmem:[%s6123_s16 + $0x21d0] sm:$0xff] }
 0x344   : > { %5356 = vmatprep.subr.bf16.mxu1 %v5355_v36  ;;  %v2271_v41 = vld [vmem:[%s6123_s16 + $0x2028] sm:$0xff]  ;;  %v2273_v36 = vld [vmem:[%s6123_s16 + $0x2038] sm:$0xff] }
 0x345   : > { %v4735_v48 = vpack.c.bf16 %v2271_v41, %v2267_v20  ;;  %v2303_v6 = vld [vmem:[%s6123_s16 + $0x2128] sm:$0xff] }
 0x346   : > { %4718 = vmatpush1.bf16.msra.mxu0 %v4717_v58  ;;  %v5375_v58 = vpack.c.bf16 %v2273_v36, %v2269_v44  ;;  %v4751_v43 = vpack.c.bf16 %v2303_v6, %v2299_v32  ;;  %v2298_v44 = vld [vmem:[%s6123_s16 + $0x2100] sm:$0xff]  ;;  %v2332_v6 = vld [vmem:[%s6123_s16 + $0x2210] sm:$0xff] }
 0x347   : > { %5358 = vmatpush1.bf16.msra.mxu1 %v5357_v55  ;;  %4720 = vmatprep.subr.bf16.mxu0 %v4719_v56  ;;  %v2268_v55 = vld [vmem:[%s6123_s16 + $0x2010] sm:$0xff]  ;;  %v2302_v36 = vld [vmem:[%s6123_s16 + $0x2120] sm:$0xff] }
 0x348   : > { %5360 = vmatprep.subr.bf16.mxu1 %v5359_v59  ;;  %v2272_v56 = vld [vmem:[%s6123_s16 + $0x2030] sm:$0xff]  ;;  %v4737_v59 = vpack.c.bf16 %v2270_v53, %v2266_v49  ;;  %v2307_v49 = vld [vmem:[%s6123_s16 + $0x2148] sm:$0xff]  ;;  %v2334_v32 = vld [vmem:[%s6123_s16 + $0x2220] sm:$0xff] }
 0x349   : > { %v5377_v62 = vpack.c.bf16 %v2272_v56, %v2268_v55  ;;  %v2311_v53 = vld [vmem:[%s6123_s16 + $0x2168] sm:$0xff]  ;;  %v2313_v55 = vld [vmem:[%s6123_s16 + $0x2178] sm:$0xff]  ;;  %v4753_v56 = vpack.c.bf16 %v2302_v36, %v2298_v44 }
 0x34a   : > { %4722 = vmatpush1.bf16.msra.mxu0 %v4721_v63  ;;  %v2278_v63 = vld [vmem:[%s6123_s16 + $0x2060] sm:$0xff]  ;;  %v4755_v22 = vpack.c.bf16 %v2311_v53, %v2307_v49  ;;  %v2345_v44 = vld [vmem:[%s6123_s16 + $0x2278] sm:$0xff]  ;;  %v2340_v53 = vld [vmem:[%s6123_s16 + $0x2250] sm:$0xff] }
 0x34b   : > { %5362 = vmatpush1.bf16.msra.mxu1 %v5361_v0  ;;  %4724 = vmatprep.subr.bf16.mxu0 %v4723_v2  ;;  %v2276_v0 = vld [vmem:[%s6123_s16 + $0x2050] sm:$0xff]  ;;  %v4741_v14 = vpack.c.bf16 %v2278_v63, %v2274_v29  ;;  %v2319_v29 = vld [vmem:[%s6123_s16 + $0x21a8] sm:$0xff]  ;;  %v2317_v63 = vld [vmem:[%s6123_s16 + $0x2198] sm:$0xff] }
 0x34c   : > { %5364 = vmatprep.subr.bf16.mxu1 %v5363_v12  ;;  %v2280_v2 = vld [vmem:[%s6123_s16 + $0x2070] sm:$0xff]  ;;  %v5379_v12 = vpack.c.bf16 %v2281_v42, %v2277_v60  ;;  %v2342_v49 = vld [vmem:[%s6123_s16 + $0x2260] sm:$0xff] }
 0x34d   : > { %v5381_v17 = vpack.c.bf16 %v2280_v2, %v2276_v0  ;;  %v2308_v60 = vld [vmem:[%s6123_s16 + $0x2150] sm:$0xff]  ;;  %v2321_v0 = vld [vmem:[%s6123_s16 + $0x21b8] sm:$0xff] }
 0x34e   : > { %4726 = vmatpush1.bf16.msra.mxu0 %v4725_v26  ;;  %v2286_v26 = vld [vmem:[%s6123_s16 + $0x20a0] sm:$0xff] }
 0x34f   : > { %5366 = vmatpush1.bf16.msra.mxu1 %v5365_v27  ;;  %4728 = vmatprep.subr.bf16.mxu0 %v4727_v30  ;;  %v2284_v27 = vld [vmem:[%s6123_s16 + $0x2090] sm:$0xff]  ;;  %v5383_v30 = vpack.c.bf16 %v2289_v21, %v2285_v28  ;;  %v4745_v35 = vpack.c.bf16 %v2286_v26, %v2282_v24  ;;  %v5399_v28 = vpack.c.bf16 %v2321_v0, %v2317_v63  ;;  %v2329_v24 = vld [vmem:[%s6123_s16 + $0x21f8] sm:$0xff] }
 0x350   : > { %5368 = vmatprep.subr.bf16.mxu1 %v5367_v33  ;;  %v2293_v33 = vld [vmem:[%s6123_s16 + $0x20d8] sm:$0xff]  ;;  %v5385_v1 = vpack.c.bf16 %v2288_v45, %v2284_v27  ;;  %v2320_v21 = vld [vmem:[%s6123_s16 + $0x21b0] sm:$0xff]  ;;  %v2322_v45 = vld [vmem:[%s6123_s16 + $0x21c0] sm:$0xff] }
 0x351   : > { %v2352_v0 = vld [vmem:[%s6123_s16 + $0x22b0] sm:$0xff] }
 0x352   : > { %4730 = vmatpush1.bf16.msra.mxu0 %v4729_v39  ;;  %v2294_v39 = vld [vmem:[%s6123_s16 + $0x20e0] sm:$0xff] }
 0x353   : > { %5370 = vmatpush1.bf16.msra.mxu1 %v5369_v40  ;;  %4732 = vmatprep.subr.bf16.mxu0 %v4731_v16  ;;  %v2292_v40 = vld [vmem:[%s6123_s16 + $0x20d0] sm:$0xff]  ;;  %v5387_v16 = vpack.c.bf16 %v2297_v34, %v2293_v33  ;;  %v4749_v20 = vpack.c.bf16 %v2294_v39, %v2290_v38  ;;  %v2337_v38 = vld [vmem:[%s6123_s16 + $0x2238] sm:$0xff]  ;;  %v4765_v39 = vpack.c.bf16 %v2326_v50, %v2322_v45 }
 0x354   : > { %5372 = vmatprep.subr.bf16.mxu1 %v5371_v23  ;;  %v2301_v23 = vld [vmem:[%s6123_s16 + $0x2118] sm:$0xff]  ;;  %v5389_v41 = vpack.c.bf16 %v2296_v52, %v2292_v40  ;;  %v2328_v34 = vld [vmem:[%s6123_s16 + $0x21f0] sm:$0xff]  ;;  %v2330_v52 = vld [vmem:[%s6123_s16 + $0x2200] sm:$0xff] }
 0x355   : > { %v5405_v40 = vpack.c.bf16 %v2328_v34, %v2324_v31  ;;  %v4769_v36 = vpack.c.bf16 %v2334_v32, %v2330_v52  ;;  %v2369_v45 = vld [vmem:[%s6123_s16 + $0x2338] sm:$0xff]  ;;  %v2362_v34 = vld [vmem:[%s6123_s16 + $0x2300] sm:$0xff] }
 0x356   : > { %4734 = vmatpush1.bf16.msra.mxu0 %v4733_v47  ;;  %v2300_v47 = vld [vmem:[%s6123_s16 + $0x2110] sm:$0xff]  ;;  %v2377_v52 = vld [vmem:[%s6123_s16 + $0x2378] sm:$0xff] }
 0x357   : > { %5374 = vmatpush1.bf16.msra.mxu1 %v5373_v25  ;;  %4736 = vmatprep.subr.bf16.mxu0 %v4735_v48  ;;  %v5391_v25 = vpack.c.bf16 %v2305_v8, %v2301_v23  ;;  %v2304_v48 = vld [vmem:[%s6123_s16 + $0x2130] sm:$0xff] }
 0x358   : > { %5376 = vmatprep.subr.bf16.mxu1 %v5375_v58  ;;  %v2309_v58 = vld [vmem:[%s6123_s16 + $0x2158] sm:$0xff]  ;;  %v5393_v57 = vpack.c.bf16 %v2304_v48, %v2300_v47  ;;  %v2336_v8 = vld [vmem:[%s6123_s16 + $0x2230] sm:$0xff]  ;;  %v2338_v48 = vld [vmem:[%s6123_s16 + $0x2240] sm:$0xff] }
 0x359   : > { %3106 = vmatmul.mubr.f32.vlgmr.msra.gmra.mrb[10].mxu0 %v1236_v61  ;;  %v5395_v42 = vpack.c.bf16 %v2313_v55, %v2309_v58  ;;  %v5409_v47 = vpack.c.bf16 %v2336_v8, %v2332_v6  ;;  %v2344_v55 = vld [vmem:[%s6123_s16 + $0x2270] sm:$0xff]  ;;  %v2370_v8 = vld [vmem:[%s6123_s16 + $0x2340] sm:$0xff] }
 0x35a   : > { %3816 = vmatmul.mubr.f32.vlgmr.msra.gmra.mrb[10].mxu1 %v1236_v61  ;;  %4738 = vmatpush1.bf16.msra.mxu0 %v4737_v59  ;;  %v2310_v59 = vld [vmem:[%s6123_s16 + $0x2160] sm:$0xff]  ;;  %v2312_v61 = vld [vmem:[%s6123_s16 + $0x2170] sm:$0xff] }
 0x35b   : > { %3176 = vmatprep.mubr.f32.mxu0 %v1239_v11  ;;  %5378 = vmatpush1.bf16.msra.mxu1 %v5377_v62  ;;  %v2315_v62 = vld [vmem:[%s6123_s16 + $0x2188] sm:$0xff]  ;;  %v5397_v2 = vpack.c.bf16 %v2312_v61, %v2308_v60  ;;  %v5413_v60 = vpack.c.bf16 %v2344_v55, %v2340_v53  ;;  %v2346_v61 = vld [vmem:[%s6123_s16 + $0x2280] sm:$0xff] }
 0x35c   : > { %3886 = vmatprep.mubr.f32.mxu1 %v1239_v11  ;;  %4740 = vmatprep.subr.bf16.mxu0 %v4739_v54  ;;  %v4757_v54 = vpack.c.bf16 %v2310_v59, %v2306_v51  ;;  %v4759_v10 = vpack.c.bf16 %v2319_v29, %v2315_v62  ;;  %v2318_v11 = vld [vmem:[%s6123_s16 + $0x21a0] sm:$0xff]  ;;  %v2353_v51 = vld [vmem:[%s6123_s16 + $0x22b8] sm:$0xff]  ;;  %v4773_v59 = vpack.c.bf16 %v2342_v49, %v2338_v48  ;;  %v2348_v29 = vld [vmem:[%s6123_s16 + $0x2290] sm:$0xff] }
 0x35d   : > { %5380 = vmatprep.subr.bf16.mxu1 %v5379_v12  ;;  %v2316_v12 = vld [vmem:[%s6123_s16 + $0x2190] sm:$0xff]  ;;  %v4761_v26 = vpack.c.bf16 %v2318_v11, %v2314_v15  ;;  %v2350_v62 = vld [vmem:[%s6123_s16 + $0x22a0] sm:$0xff]  ;;  %v2361_v15 = vld [vmem:[%s6123_s16 + $0x22f8] sm:$0xff] }
 0x35e   : > { %4742 = vmatpush1.bf16.msra.mxu0 %v4741_v14  ;;  %v2323_v14 = vld [vmem:[%s6123_s16 + $0x21c8] sm:$0xff]  ;;  %v5401_v27 = vpack.c.bf16 %v2320_v21, %v2316_v12  ;;  %v4777_v11 = vpack.c.bf16 %v2350_v62, %v2346_v61  ;;  %v5417_v12 = vpack.c.bf16 %v2352_v0, %v2348_v29  ;;  %v2354_v21 = vld [vmem:[%s6123_s16 + $0x22c0] sm:$0xff]  ;;  %v2385_v48 = vld [vmem:[%s6123_s16 + $0x23b8] sm:$0xff]  ;;  %v475_v29 = vrot.slane %v7293_v4, %v6296_v5 }
 0x35f   : > { %5382 = vmatpush1.bf16.msra.mxu1 %v5381_v17  ;;  %4744 = vmatprep.subr.bf16.mxu0 %v4743_v18  ;;  %v2327_v17 = vld [vmem:[%s6123_s16 + $0x21e8] sm:$0xff]  ;;  %v2325_v18 = vld [vmem:[%s6123_s16 + $0x21d8] sm:$0xff]  ;;  %v2378_v55 = vld [vmem:[%s6123_s16 + $0x2380] sm:$0xff] }
 0x360   : > { %5384 = vmatprep.subr.bf16.mxu1 %v5383_v30  ;;  %v4763_v30 = vpack.c.bf16 %v2327_v17, %v2323_v14  ;;  %v5403_v33 = vpack.c.bf16 %v2329_v24, %v2325_v18  ;;  %v2358_v14 = vld [vmem:[%s6123_s16 + $0x22e0] sm:$0xff]  ;;  %v2356_v17 = vld [vmem:[%s6123_s16 + $0x22d0] sm:$0xff]  ;;  %v2393_v61 = vld [vmem:[%s6123_s16 + $0x23f8] sm:$0xff] }
 0x361   : > { %v2360_v24 = vld [vmem:[%s6123_s16 + $0x22f0] sm:$0xff]  ;;  %v4781_v50 = vpack.c.bf16 %v2358_v14, %v2354_v21  ;;  %v2397_v21 = vld [vmem:[%s6123_s16 + $0x2418] sm:$0xff] }
 0x362   : > { %4746 = vmatpush1.bf16.msra.mxu0 %v4745_v35  ;;  %v2331_v35 = vld [vmem:[%s6123_s16 + $0x2208] sm:$0xff]  ;;  %v5421_v31 = vpack.c.bf16 %v2360_v24, %v2356_v17  ;;  %v2401_v4 = vld [vmem:[%s6123_s16 + $0x2438] sm:$0xff]  ;;  %v1147_v17 = vadd.f32 %v6421_v46, %v475_v29 }
 0x363   : > { %5386 = vmatpush1.bf16.msra.mxu1 %v5385_v1  ;;  %4748 = vmatprep.subr.bf16.mxu0 %v4747_v37  ;;  %v2335_v1 = vld [vmem:[%s6123_s16 + $0x2228] sm:$0xff]  ;;  %v2333_v37 = vld [vmem:[%s6123_s16 + $0x2218] sm:$0xff] }
 0x364   : > { %5388 = vmatprep.subr.bf16.mxu1 %v5387_v16  ;;  %v4767_v16 = vpack.c.bf16 %v2335_v1, %v2331_v35  ;;  %v5407_v23 = vpack.c.bf16 %v2337_v38, %v2333_v37  ;;  %v2366_v35 = vld [vmem:[%s6123_s16 + $0x2320] sm:$0xff]  ;;  %v2364_v1 = vld [vmem:[%s6123_s16 + $0x2310] sm:$0xff]  ;;  %v2427_v29 = vld [vmem:[%s6123_s16 + $0x2508] sm:$0xff] }
 0x365   : > { %v2368_v38 = vld [vmem:[%s6123_s16 + $0x2330] sm:$0xff]  ;;  %v4785_v32 = vpack.c.bf16 %v2366_v35, %v2362_v34  ;;  %v2405_v34 = vld [vmem:[%s6123_s16 + $0x2458] sm:$0xff] }
 0x366   : > { %4750 = vmatpush1.bf16.msra.mxu0 %v4749_v20  ;;  %v2339_v20 = vld [vmem:[%s6123_s16 + $0x2248] sm:$0xff]  ;;  %v5425_v6 = vpack.c.bf16 %v2368_v38, %v2364_v1  ;;  %v2409_v35 = vld [vmem:[%s6123_s16 + $0x2478] sm:$0xff]  ;;  %v1238_v1 = vmax.f32 %v1147_v17, 0.0  ;;  %v2402_v38 = vld [vmem:[%s6123_s16 + $0x2440] sm:$0xff] }
 0x367   : > { %5390 = vmatpush1.bf16.msra.mxu1 %v5389_v41  ;;  %4752 = vmatprep.subr.bf16.mxu0 %v4751_v43  ;;  %v2343_v41 = vld [vmem:[%s6123_s16 + $0x2268] sm:$0xff]  ;;  %v2341_v43 = vld [vmem:[%s6123_s16 + $0x2258] sm:$0xff] }
 0x368   : > { %5392 = vmatprep.subr.bf16.mxu1 %v5391_v25  ;;  %v4771_v25 = vpack.c.bf16 %v2343_v41, %v2339_v20  ;;  %v5411_v58 = vpack.c.bf16 %v2345_v44, %v2341_v43  ;;  %v2374_v20 = vld [vmem:[%s6123_s16 + $0x2360] sm:$0xff]  ;;  %v2372_v41 = vld [vmem:[%s6123_s16 + $0x2350] sm:$0xff]  ;;  %v2439_v17 = vld [vmem:[%s6123_s16 + $0x2568] sm:$0xff] }
 0x369   : > { %v2376_v44 = vld [vmem:[%s6123_s16 + $0x2370] sm:$0xff]  ;;  %v4789_v49 = vpack.c.bf16 %v2374_v20, %v2370_v8  ;;  %v5443_v8 = vpack.c.bf16 %v2409_v35, %v2405_v34  ;;  %v2413_v20 = vld [vmem:[%s6123_s16 + $0x2498] sm:$0xff]  ;;  %v2443_v34 = vld [vmem:[%s6123_s16 + $0x2588] sm:$0xff] }
 0x36a   : > { %4754 = vmatpush1.bf16.msra.mxu0 %v4753_v56  ;;  %v2347_v56 = vld [vmem:[%s6123_s16 + $0x2288] sm:$0xff]  ;;  %v5429_v53 = vpack.c.bf16 %v2376_v44, %v2372_v41  ;;  %v2417_v41 = vld [vmem:[%s6123_s16 + $0x24b8] sm:$0xff] }
 0x36b   : > { %5394 = vmatpush1.bf16.msra.mxu1 %v5393_v57  ;;  %4756 = vmatprep.subr.bf16.mxu0 %v4755_v22  ;;  %v2351_v57 = vld [vmem:[%s6123_s16 + $0x22a8] sm:$0xff]  ;;  %v2349_v22 = vld [vmem:[%s6123_s16 + $0x2298] sm:$0xff] }
 0x36c   : > { %5396 = vmatprep.subr.bf16.mxu1 %v5395_v42  ;;  %v4775_v42 = vpack.c.bf16 %v2351_v57, %v2347_v56  ;;  %v5415_v63 = vpack.c.bf16 %v2353_v51, %v2349_v22  ;;  %v2382_v56 = vld [vmem:[%s6123_s16 + $0x23a0] sm:$0xff]  ;;  %v2380_v57 = vld [vmem:[%s6123_s16 + $0x2390] sm:$0xff]  ;;  %v2447_v35 = vld [vmem:[%s6123_s16 + $0x25a8] sm:$0xff] }
 0x36d   : > { %v2384_v51 = vld [vmem:[%s6123_s16 + $0x23b0] sm:$0xff]  ;;  %v4793_v62 = vpack.c.bf16 %v2382_v56, %v2378_v55  ;;  %v2421_v55 = vld [vmem:[%s6123_s16 + $0x24d8] sm:$0xff] }
 0x36e   : > { %4758 = vmatpush1.bf16.msra.mxu0 %v4757_v54  ;;  %v2355_v54 = vld [vmem:[%s6123_s16 + $0x22c8] sm:$0xff]  ;;  %v2425_v56 = vld [vmem:[%s6123_s16 + $0x24f8] sm:$0xff] }
 0x36f   : > { %5398 = vmatpush1.bf16.msra.mxu1 %v5397_v2  ;;  %4760 = vmatprep.subr.bf16.mxu0 %v4759_v10  ;;  %v2359_v2 = vld [vmem:[%s6123_s16 + $0x22e8] sm:$0xff]  ;;  %v2357_v10 = vld [vmem:[%s6123_s16 + $0x22d8] sm:$0xff] }
 0x370   : > { %5400 = vmatprep.subr.bf16.mxu1 %v5399_v28  ;;  %v4779_v28 = vpack.c.bf16 %v2359_v2, %v2355_v54  ;;  %v5419_v18 = vpack.c.bf16 %v2361_v15, %v2357_v10  ;;  %v2386_v54 = vld [vmem:[%s6123_s16 + $0x23c0] sm:$0xff]  ;;  %v2388_v10 = vld [vmem:[%s6123_s16 + $0x23d0] sm:$0xff] }
 0x371   : > { %v2390_v2 = vld [vmem:[%s6123_s16 + $0x23e0] sm:$0xff] }
 0x372   : > { %4762 = vmatpush1.bf16.msra.mxu0 %v4761_v26  ;;  %v2363_v26 = vld [vmem:[%s6123_s16 + $0x2308] sm:$0xff]  ;;  %v4797_v14 = vpack.c.bf16 %v2390_v2, %v2386_v54  ;;  %v2433_v54 = vld [vmem:[%s6123_s16 + $0x2538] sm:$0xff] }
 0x373   : > { %5402 = vmatpush1.bf16.msra.mxu1 %v5401_v27  ;;  %4764 = vmatprep.subr.bf16.mxu0 %v4763_v30  ;;  %v2367_v27 = vld [vmem:[%s6123_s16 + $0x2328] sm:$0xff]  ;;  %v2365_v30 = vld [vmem:[%s6123_s16 + $0x2318] sm:$0xff] }
 0x374   : > { %5404 = vmatprep.subr.bf16.mxu1 %v5403_v33  ;;  %v4783_v33 = vpack.c.bf16 %v2367_v27, %v2363_v26  ;;  %v5423_v37 = vpack.c.bf16 %v2369_v45, %v2365_v30  ;;  %v2394_v26 = vld [vmem:[%s6123_s16 + $0x2400] sm:$0xff]  ;;  %v5439_v30 = vpack.c.bf16 %v2401_v4, %v2397_v21  ;;  %v2396_v45 = vld [vmem:[%s6123_s16 + $0x2410] sm:$0xff] }
 0x375   : > { %v2398_v27 = vld [vmem:[%s6123_s16 + $0x2420] sm:$0xff]  ;;  %v2432_v4 = vld [vmem:[%s6123_s16 + $0x2530] sm:$0xff] }
 0x376   : > { %4766 = vmatpush1.bf16.msra.mxu0 %v4765_v39  ;;  %v2371_v39 = vld [vmem:[%s6123_s16 + $0x2348] sm:$0xff]  ;;  %v4801_v46 = vpack.c.bf16 %v2398_v27, %v2394_v26 }
 0x377   : > { %5406 = vmatpush1.bf16.msra.mxu1 %v5405_v40  ;;  %4768 = vmatprep.subr.bf16.mxu0 %v4767_v16  ;;  %v2375_v40 = vld [vmem:[%s6123_s16 + $0x2368] sm:$0xff]  ;;  %v2373_v16 = vld [vmem:[%s6123_s16 + $0x2358] sm:$0xff] }
 0x378   : > { %5408 = vmatprep.subr.bf16.mxu1 %v5407_v23  ;;  %v4787_v23 = vpack.c.bf16 %v2375_v40, %v2371_v39  ;;  %v5427_v43 = vpack.c.bf16 %v2377_v52, %v2373_v16  ;;  %v2406_v39 = vld [vmem:[%s6123_s16 + $0x2460] sm:$0xff]  ;;  %v2404_v40 = vld [vmem:[%s6123_s16 + $0x2450] sm:$0xff] }
 0x379   : > { %v2408_v52 = vld [vmem:[%s6123_s16 + $0x2470] sm:$0xff] }
 0x37a   : > { %4770 = vmatpush1.bf16.msra.mxu0 %v4769_v36  ;;  %v2379_v36 = vld [vmem:[%s6123_s16 + $0x2388] sm:$0xff]  ;;  %v5445_v44 = vpack.c.bf16 %v2408_v52, %v2404_v40  ;;  %v4823_v40 = vpack.c.bf16 %v2447_v35, %v2443_v34  ;;  %v2446_v52 = vld [vmem:[%s6123_s16 + $0x25a0] sm:$0xff]  ;;  %v2480_v34 = vld [vmem:[%s6123_s16 + $0x26b0] sm:$0xff] }
 0x37b   : > { %5410 = vmatpush1.bf16.msra.mxu1 %v5409_v47  ;;  %4772 = vmatprep.subr.bf16.mxu0 %v4771_v25  ;;  %v2383_v47 = vld [vmem:[%s6123_s16 + $0x23a8] sm:$0xff]  ;;  %v2381_v25 = vld [vmem:[%s6123_s16 + $0x2398] sm:$0xff] }
 0x37c   : > { %5412 = vmatprep.subr.bf16.mxu1 %v5411_v58  ;;  %v4791_v58 = vpack.c.bf16 %v2383_v47, %v2379_v36  ;;  %v5431_v22 = vpack.c.bf16 %v2385_v48, %v2381_v25  ;;  %v2410_v47 = vld [vmem:[%s6123_s16 + $0x2480] sm:$0xff]  ;;  %v2412_v48 = vld [vmem:[%s6123_s16 + $0x2490] sm:$0xff]  ;;  %v2483_v35 = vld [vmem:[%s6123_s16 + $0x26c8] sm:$0xff] }
 0x37d   : > { %v2414_v25 = vld [vmem:[%s6123_s16 + $0x24a0] sm:$0xff] }
 0x37e   : > { %4774 = vmatpush1.bf16.msra.mxu0 %v4773_v59  ;;  %v2387_v59 = vld [vmem:[%s6123_s16 + $0x23c8] sm:$0xff] }
 0x37f   : > { %5414 = vmatpush1.bf16.msra.mxu1 %v5413_v60  ;;  %4776 = vmatprep.subr.bf16.mxu0 %v4775_v42  ;;  %v2391_v60 = vld [vmem:[%s6123_s16 + $0x23e8] sm:$0xff]  ;;  %v2389_v42 = vld [vmem:[%s6123_s16 + $0x23d8] sm:$0xff] }
 0x380   : > { %5416 = vmatprep.subr.bf16.mxu1 %v5415_v63  ;;  %v5433_v63 = vpack.c.bf16 %v2384_v51, %v2380_v57  ;;  %v4795_v0 = vpack.c.bf16 %v2391_v60, %v2387_v59  ;;  %v5435_v15 = vpack.c.bf16 %v2393_v61, %v2389_v42  ;;  %v4809_v57 = vpack.c.bf16 %v2414_v25, %v2410_v47  ;;  %v2418_v59 = vld [vmem:[%s6123_s16 + $0x24c0] sm:$0xff]  ;;  %v2420_v42 = vld [vmem:[%s6123_s16 + $0x24d0] sm:$0xff] }
 0x381   : > { %v2422_v60 = vld [vmem:[%s6123_s16 + $0x24e0] sm:$0xff]  ;;  %v5451_v61 = vpack.c.bf16 %v2425_v56, %v2421_v55  ;;  %v2463_v55 = vld [vmem:[%s6123_s16 + $0x2628] sm:$0xff]  ;;  %v2461_v56 = vld [vmem:[%s6123_s16 + $0x2618] sm:$0xff] }
 0x382   : > { %4778 = vmatpush1.bf16.msra.mxu0 %v4777_v11  ;;  %v2392_v11 = vld [vmem:[%s6123_s16 + $0x23f0] sm:$0xff]  ;;  %v4813_v2 = vpack.c.bf16 %v2422_v60, %v2418_v59  ;;  %v2450_v25 = vld [vmem:[%s6123_s16 + $0x25c0] sm:$0xff] }
 0x383   : > { %5418 = vmatpush1.bf16.msra.mxu1 %v5417_v12  ;;  %4780 = vmatprep.subr.bf16.mxu0 %v4779_v28  ;;  %v2395_v12 = vld [vmem:[%s6123_s16 + $0x2408] sm:$0xff]  ;;  %v2458_v60 = vld [vmem:[%s6123_s16 + $0x2600] sm:$0xff] }
 0x384   : > { %5420 = vmatprep.subr.bf16.mxu1 %v5419_v18  ;;  %v2399_v28 = vld [vmem:[%s6123_s16 + $0x2428] sm:$0xff]  ;;  %v5437_v18 = vpack.c.bf16 %v2392_v11, %v2388_v10  ;;  %v2426_v11 = vld [vmem:[%s6123_s16 + $0x2500] sm:$0xff] }
 0x385   : > { %v4799_v24 = vpack.c.bf16 %v2399_v28, %v2395_v12  ;;  %v2430_v12 = vld [vmem:[%s6123_s16 + $0x2520] sm:$0xff]  ;;  %v2428_v28 = vld [vmem:[%s6123_s16 + $0x2510] sm:$0xff] }
 0x386   : > { %4782 = vmatpush1.bf16.msra.mxu0 %v4781_v50  ;;  %v2400_v50 = vld [vmem:[%s6123_s16 + $0x2430] sm:$0xff]  ;;  %v4817_v26 = vpack.c.bf16 %v2430_v12, %v2426_v11  ;;  %v5457_v27 = vpack.c.bf16 %v2432_v4, %v2428_v28  ;;  %v2466_v12 = vld [vmem:[%s6123_s16 + $0x2640] sm:$0xff] }
 0x387   : > { %5422 = vmatpush1.bf16.msra.mxu1 %v5421_v31  ;;  %4784 = vmatprep.subr.bf16.mxu0 %v4783_v33  ;;  %v2403_v31 = vld [vmem:[%s6123_s16 + $0x2448] sm:$0xff]  ;;  %v2470_v28 = vld [vmem:[%s6123_s16 + $0x2660] sm:$0xff] }
 0x388   : > { %5424 = vmatprep.subr.bf16.mxu1 %v5423_v37  ;;  %v2407_v33 = vld [vmem:[%s6123_s16 + $0x2468] sm:$0xff]  ;;  %v5441_v37 = vpack.c.bf16 %v2400_v50, %v2396_v45  ;;  %v2434_v45 = vld [vmem:[%s6123_s16 + $0x2540] sm:$0xff] }
 0x389   : > { %v4803_v16 = vpack.c.bf16 %v2407_v33, %v2403_v31  ;;  %v2438_v50 = vld [vmem:[%s6123_s16 + $0x2560] sm:$0xff]  ;;  %v2436_v31 = vld [vmem:[%s6123_s16 + $0x2550] sm:$0xff] }
 0x38a   : > { %4786 = vmatpush1.bf16.msra.mxu0 %v4785_v32  ;;  %v2411_v32 = vld [vmem:[%s6123_s16 + $0x2488] sm:$0xff] }
 0x38b   : > { %5426 = vmatpush1.bf16.msra.mxu1 %v5425_v6  ;;  %4788 = vmatprep.subr.bf16.mxu0 %v4787_v23  ;;  %v2415_v6 = vld [vmem:[%s6123_s16 + $0x24a8] sm:$0xff]  ;;  %v1241_v23 = vmax.f32 %v6440_v19, 0.0  ;;  %v5447_v19 = vpack.c.bf16 %v2417_v41, %v2413_v20  ;;  %v2453_v41 = vld [vmem:[%s6123_s16 + $0x25d8] sm:$0xff] }
 0x38c   : > { %5428 = vmatprep.subr.bf16.mxu1 %v5427_v43  ;;  %v4805_v43 = vpack.c.bf16 %v2406_v39, %v2402_v38  ;;  %v4807_v36 = vpack.c.bf16 %v2415_v6, %v2411_v32  ;;  %v4821_v38 = vpack.c.bf16 %v2438_v50, %v2434_v45  ;;  %v2444_v32 = vld [vmem:[%s6123_s16 + $0x2590] sm:$0xff]  ;;  %v2455_v20 = vld [vmem:[%s6123_s16 + $0x25e8] sm:$0xff]  ;;  %v2474_v50 = vld [vmem:[%s6123_s16 + $0x2680] sm:$0xff] }
 0x38e   : > { %4790 = vmatpush1.bf16.msra.mxu0 %v4789_v49  ;;  %v2416_v49 = vld [vmem:[%s6123_s16 + $0x24b0] sm:$0xff] }
 0x38f   : > { %5430 = vmatpush1.bf16.msra.mxu1 %v5429_v53  ;;  %4792 = vmatprep.subr.bf16.mxu0 %v4791_v58  ;;  %v2419_v53 = vld [vmem:[%s6123_s16 + $0x24c8] sm:$0xff] }
 0x390   : > { %5432 = vmatprep.subr.bf16.mxu1 %v5431_v22  ;;  %v2423_v58 = vld [vmem:[%s6123_s16 + $0x24e8] sm:$0xff]  ;;  %v5449_v22 = vpack.c.bf16 %v2416_v49, %v2412_v48  ;;  %v2454_v48 = vld [vmem:[%s6123_s16 + $0x25e0] sm:$0xff] }
 0x391   : > { %v4811_v51 = vpack.c.bf16 %v2423_v58, %v2419_v53  ;;  %v2456_v53 = vld [vmem:[%s6123_s16 + $0x25f0] sm:$0xff]  ;;  %v2459_v58 = vld [vmem:[%s6123_s16 + $0x2608] sm:$0xff] }
 0x392   : > { %4794 = vmatpush1.bf16.msra.mxu0 %v4793_v62  ;;  %v2424_v62 = vld [vmem:[%s6123_s16 + $0x24f0] sm:$0xff]  ;;  %v4831_v59 = vpack.c.bf16 %v2463_v55, %v2459_v58  ;;  %v2499_v55 = vld [vmem:[%s6123_s16 + $0x2748] sm:$0xff] }
 0x393   : > { %5434 = vmatpush1.bf16.msra.mxu1 %v5433_v63  ;;  %4796 = vmatprep.subr.bf16.mxu0 %v4795_v0  ;;  %v2431_v63 = vld [vmem:[%s6123_s16 + $0x2528] sm:$0xff]  ;;  %v2429_v0 = vld [vmem:[%s6123_s16 + $0x2518] sm:$0xff]  ;;  %v5453_v10 = vpack.c.bf16 %v2424_v62, %v2420_v42  ;;  %v2462_v42 = vld [vmem:[%s6123_s16 + $0x2620] sm:$0xff] }
 0x394   : > { %5436 = vmatprep.subr.bf16.mxu1 %v5435_v15  ;;  %v4815_v15 = vpack.c.bf16 %v2431_v63, %v2427_v29  ;;  %v5455_v21 = vpack.c.bf16 %v2433_v54, %v2429_v0  ;;  %v2464_v29 = vld [vmem:[%s6123_s16 + $0x2630] sm:$0xff]  ;;  %v2467_v63 = vld [vmem:[%s6123_s16 + $0x2648] sm:$0xff]  ;;  %v2469_v54 = vld [vmem:[%s6123_s16 + $0x2658] sm:$0xff] }
 0x395   : > { %v2471_v0 = vld [vmem:[%s6123_s16 + $0x2668] sm:$0xff]  ;;  %v2496_v58 = vld [vmem:[%s6123_s16 + $0x2730] sm:$0xff] }
 0x396   : > { %4798 = vmatpush1.bf16.msra.mxu0 %v4797_v14  ;;  %v2435_v14 = vld [vmem:[%s6123_s16 + $0x2548] sm:$0xff]  ;;  %v4835_v11 = vpack.c.bf16 %v2471_v0, %v2467_v63  ;;  %v2504_v63 = vld [vmem:[%s6123_s16 + $0x2770] sm:$0xff] }
 0x397   : > { %5438 = vmatpush1.bf16.msra.mxu1 %v5437_v18  ;;  %4800 = vmatprep.subr.bf16.mxu0 %v4799_v24  ;;  %v2437_v18 = vld [vmem:[%s6123_s16 + $0x2558] sm:$0xff]  ;;  %v2507_v0 = vld [vmem:[%s6123_s16 + $0x2788] sm:$0xff] }
 0x398   : > { %5440 = vmatprep.subr.bf16.mxu1 %v5439_v30  ;;  %v2441_v24 = vld [vmem:[%s6123_s16 + $0x2578] sm:$0xff]  ;;  %v4819_v30 = vpack.c.bf16 %v2439_v17, %v2435_v14  ;;  %v2472_v14 = vld [vmem:[%s6123_s16 + $0x2670] sm:$0xff]  ;;  %v2475_v17 = vld [vmem:[%s6123_s16 + $0x2688] sm:$0xff] }
 0x399   : > { %3177 = vmatmul.mubr.f32.vlgmr.msra.gmra.mrb[10].mxu0 %v1238_v1  ;;  %v5459_v33 = vpack.c.bf16 %v2441_v24, %v2437_v18  ;;  %v2479_v18 = vld [vmem:[%s6123_s16 + $0x26a8] sm:$0xff]  ;;  %v2477_v24 = vld [vmem:[%s6123_s16 + $0x2698] sm:$0xff] }
 0x39a   : > { %3887 = vmatmul.mubr.f32.vlgmr.msra.gmra.mrb[10].mxu1 %v1238_v1  ;;  %4802 = vmatpush1.bf16.msra.mxu0 %v4801_v46  ;;  %v2440_v46 = vld [vmem:[%s6123_s16 + $0x2570] sm:$0xff]  ;;  %v2445_v1 = vld [vmem:[%s6123_s16 + $0x2598] sm:$0xff]  ;;  %v4839_v45 = vpack.c.bf16 %v2479_v18, %v2475_v17  ;;  %v2515_v18 = vld [vmem:[%s6123_s16 + $0x27c8] sm:$0xff] }
 0x39b   : > { %3247 = vmatprep.mubr.f32.mxu0 %v1241_v23  ;;  %5442 = vmatpush1.bf16.msra.mxu1 %v5441_v37  ;;  %v2449_v37 = vld [vmem:[%s6123_s16 + $0x25b8] sm:$0xff]  ;;  %v5461_v39 = vpack.c.bf16 %v2440_v46, %v2436_v31  ;;  %v2478_v31 = vld [vmem:[%s6123_s16 + $0x26a0] sm:$0xff]  ;;  %v2512_v17 = vld [vmem:[%s6123_s16 + $0x27b0] sm:$0xff] }
 0x39c   : > { %3957 = vmatprep.mubr.f32.mxu1 %v1241_v23  ;;  %4804 = vmatprep.subr.bf16.mxu0 %v4803_v16  ;;  %v2442_v16 = vld [vmem:[%s6123_s16 + $0x2580] sm:$0xff]  ;;  %v5463_v6 = vpack.c.bf16 %v2449_v37, %v2445_v1  ;;  %v2448_v23 = vld [vmem:[%s6123_s16 + $0x25b0] sm:$0xff]  ;;  %v2487_v1 = vld [vmem:[%s6123_s16 + $0x26e8] sm:$0xff] }
 0x39d   : > { %5444 = vmatprep.subr.bf16.mxu1 %v5443_v8  ;;  %v2451_v8 = vld [vmem:[%s6123_s16 + $0x25c8] sm:$0xff]  ;;  %v2485_v37 = vld [vmem:[%s6123_s16 + $0x26d8] sm:$0xff] }
 0x39e   : > { %4806 = vmatpush1.bf16.msra.mxu0 %v4805_v43  ;;  %v2457_v43 = vld [vmem:[%s6123_s16 + $0x25f8] sm:$0xff]  ;;  %v4827_v47 = vpack.c.bf16 %v2455_v20, %v2451_v8  ;;  %v2488_v8 = vld [vmem:[%s6123_s16 + $0x26f0] sm:$0xff]  ;;  %v2491_v20 = vld [vmem:[%s6123_s16 + $0x2708] sm:$0xff] }
 0x39f   : > { %5446 = vmatpush1.bf16.msra.mxu1 %v5445_v44  ;;  %4808 = vmatprep.subr.bf16.mxu0 %v4807_v36  ;;  %v4825_v44 = vpack.c.bf16 %v2446_v52, %v2442_v16  ;;  %v5465_v36 = vpack.c.bf16 %v2448_v23, %v2444_v32  ;;  %v5467_v49 = vpack.c.bf16 %v2457_v43, %v2453_v41  ;;  %v2482_v52 = vld [vmem:[%s6123_s16 + $0x26c0] sm:$0xff]  ;;  %v2495_v41 = vld [vmem:[%s6123_s16 + $0x2728] sm:$0xff]  ;;  %v2493_v43 = vld [vmem:[%s6123_s16 + $0x2718] sm:$0xff] }
 0x3a0   : > { %5448 = vmatprep.subr.bf16.mxu1 %v5447_v19  ;;  %v2452_v19 = vld [vmem:[%s6123_s16 + $0x25d0] sm:$0xff]  ;;  %v4843_v16 = vpack.c.bf16 %v2487_v1, %v2483_v35  ;;  %v2486_v32 = vld [vmem:[%s6123_s16 + $0x26e0] sm:$0xff] }
 0x3a1   : > { %v2520_v35 = vld [vmem:[%s6123_s16 + $0x27f0] sm:$0xff] }
 0x3a2   : > { %4810 = vmatpush1.bf16.msra.mxu0 %v4809_v57  ;;  %v2465_v57 = vld [vmem:[%s6123_s16 + $0x2638] sm:$0xff] }
 0x3a3   : > { %5450 = vmatpush1.bf16.msra.mxu1 %v5449_v22  ;;  %4812 = vmatprep.subr.bf16.mxu0 %v4811_v51  ;;  %v4829_v22 = vpack.c.bf16 %v2454_v48, %v2450_v25  ;;  %v5469_v51 = vpack.c.bf16 %v2456_v53, %v2452_v19  ;;  %v5471_v62 = vpack.c.bf16 %v2465_v57, %v2461_v56  ;;  %v2490_v48 = vld [vmem:[%s6123_s16 + $0x2700] sm:$0xff]  ;;  %v2503_v56 = vld [vmem:[%s6123_s16 + $0x2768] sm:$0xff]  ;;  %v2501_v57 = vld [vmem:[%s6123_s16 + $0x2758] sm:$0xff] }
 0x3a4   : > { %5452 = vmatprep.subr.bf16.mxu1 %v5451_v61  ;;  %v2460_v61 = vld [vmem:[%s6123_s16 + $0x2610] sm:$0xff]  ;;  %v4847_v25 = vpack.c.bf16 %v2495_v41, %v2491_v20  ;;  %v2494_v19 = vld [vmem:[%s6123_s16 + $0x2720] sm:$0xff] }
 0x3a6   : > { %4814 = vmatpush1.bf16.msra.mxu0 %v4813_v2  ;;  %v2473_v2 = vld [vmem:[%s6123_s16 + $0x2678] sm:$0xff] }
 0x3a7   : > { %5454 = vmatpush1.bf16.msra.mxu1 %v5453_v10  ;;  %4816 = vmatprep.subr.bf16.mxu0 %v4815_v15  ;;  %v4833_v10 = vpack.c.bf16 %v2462_v42, %v2458_v60  ;;  %v5473_v15 = vpack.c.bf16 %v2464_v29, %v2460_v61  ;;  %v5475_v4 = vpack.c.bf16 %v2473_v2, %v2469_v54  ;;  %v2498_v42 = vld [vmem:[%s6123_s16 + $0x2740] sm:$0xff]  ;;  %v2511_v54 = vld [vmem:[%s6123_s16 + $0x27a8] sm:$0xff]  ;;  %v2509_v2 = vld [vmem:[%s6123_s16 + $0x2798] sm:$0xff] }
 0x3a8   : > { %5456 = vmatprep.subr.bf16.mxu1 %v5455_v21  ;;  %v2468_v21 = vld [vmem:[%s6123_s16 + $0x2650] sm:$0xff]  ;;  %v4851_v60 = vpack.c.bf16 %v2503_v56, %v2499_v55  ;;  %v2502_v61 = vld [vmem:[%s6123_s16 + $0x2760] sm:$0xff] }
 0x3aa   : > { %4818 = vmatpush1.bf16.msra.mxu0 %v4817_v26  ;;  %v2481_v26 = vld [vmem:[%s6123_s16 + $0x26b8] sm:$0xff] }
 0x3ab   : > { %5458 = vmatpush1.bf16.msra.mxu1 %v5457_v27  ;;  %4820 = vmatprep.subr.bf16.mxu0 %v4819_v30  ;;  %v4837_v27 = vpack.c.bf16 %v2470_v28, %v2466_v12  ;;  %v5477_v30 = vpack.c.bf16 %v2472_v14, %v2468_v21  ;;  %v5479_v46 = vpack.c.bf16 %v2481_v26, %v2477_v24  ;;  %v2506_v28 = vld [vmem:[%s6123_s16 + $0x2780] sm:$0xff]  ;;  %v2519_v24 = vld [vmem:[%s6123_s16 + $0x27e8] sm:$0xff]  ;;  %v2517_v26 = vld [vmem:[%s6123_s16 + $0x27d8] sm:$0xff] }
 0x3ac   : > { %5460 = vmatprep.subr.bf16.mxu1 %v5459_v33  ;;  %v2476_v33 = vld [vmem:[%s6123_s16 + $0x2690] sm:$0xff]  ;;  %v4855_v12 = vpack.c.bf16 %v2511_v54, %v2507_v0  ;;  %v2510_v21 = vld [vmem:[%s6123_s16 + $0x27a0] sm:$0xff] }
 0x3ae   : > { %4822 = vmatpush1.bf16.msra.mxu0 %v4821_v38  ;;  %v2489_v38 = vld [vmem:[%s6123_s16 + $0x26f8] sm:$0xff] }
 0x3af   : > { %5462 = vmatpush1.bf16.msra.mxu1 %v5461_v39  ;;  %4824 = vmatprep.subr.bf16.mxu0 %v4823_v40  ;;  %v4841_v39 = vpack.c.bf16 %v2478_v31, %v2474_v50  ;;  %v5481_v40 = vpack.c.bf16 %v2480_v34, %v2476_v33  ;;  %v5483_v23 = vpack.c.bf16 %v2489_v38, %v2485_v37  ;;  %v2514_v31 = vld [vmem:[%s6123_s16 + $0x27c0] sm:$0xff]  ;;  %v2516_v34 = vld [vmem:[%s6123_s16 + $0x27d0] sm:$0xff]  ;;  %v1240_v38 = vmax.f32 %v6435_v3, 0.0 }
 0x3b0   : > { %5464 = vmatprep.subr.bf16.mxu1 %v5463_v6  ;;  %v2484_v6 = vld [vmem:[%s6123_s16 + $0x26d0] sm:$0xff]  ;;  %v4859_v50 = vpack.c.bf16 %v2519_v24, %v2515_v18  ;;  %v2518_v33 = vld [vmem:[%s6123_s16 + $0x27e0] sm:$0xff]  ;;  %v5501_v37 = vpack.c.bf16 %v2520_v35, %v2516_v34 }
 0x3b1   : > { %v4861_v1 = vpack.c.bf16 %v2518_v33, %v2514_v31 }
 0x3b2   : > { %4826 = vmatpush1.bf16.msra.mxu0 %v4825_v44  ;;  %v2497_v44 = vld [vmem:[%s6123_s16 + $0x2738] sm:$0xff] }
 0x3b3   : > { %5466 = vmatpush1.bf16.msra.mxu1 %v5465_v36  ;;  %4828 = vmatprep.subr.bf16.mxu0 %v4827_v47  ;;  %v4845_v36 = vpack.c.bf16 %v2486_v32, %v2482_v52  ;;  %v5485_v47 = vpack.c.bf16 %v2488_v8, %v2484_v6  ;;  %v5487_v53 = vpack.c.bf16 %v2497_v44, %v2493_v43 }
 0x3b4   : > { %5468 = vmatprep.subr.bf16.mxu1 %v5467_v49  ;;  %v2492_v49 = vld [vmem:[%s6123_s16 + $0x2710] sm:$0xff] }
 0x3b6   : > { %4830 = vmatpush1.bf16.msra.mxu0 %v4829_v22  ;;  %v2505_v22 = vld [vmem:[%s6123_s16 + $0x2778] sm:$0xff] }
 0x3b7   : > { %5470 = vmatpush1.bf16.msra.mxu1 %v5469_v51  ;;  %4832 = vmatprep.subr.bf16.mxu0 %v4831_v59  ;;  %v4849_v51 = vpack.c.bf16 %v2494_v19, %v2490_v48  ;;  %v5489_v59 = vpack.c.bf16 %v2496_v58, %v2492_v49  ;;  %v5491_v29 = vpack.c.bf16 %v2505_v22, %v2501_v57 }
 0x3b8   : > { %5472 = vmatprep.subr.bf16.mxu1 %v5471_v62  ;;  %v2500_v62 = vld [vmem:[%s6123_s16 + $0x2750] sm:$0xff] }
 0x3ba   : > { %4834 = vmatpush1.bf16.msra.mxu0 %v4833_v10  ;;  %v2513_v10 = vld [vmem:[%s6123_s16 + $0x27b8] sm:$0xff] }
 0x3bb   : > { %5474 = vmatpush1.bf16.msra.mxu1 %v5473_v15  ;;  %4836 = vmatprep.subr.bf16.mxu0 %v4835_v11  ;;  %v4853_v15 = vpack.c.bf16 %v2502_v61, %v2498_v42  ;;  %v5493_v11 = vpack.c.bf16 %v2504_v63, %v2500_v62  ;;  %v5495_v14 = vpack.c.bf16 %v2513_v10, %v2509_v2 }
 0x3bc   : > { %5476 = vmatprep.subr.bf16.mxu1 %v5475_v4  ;;  %v2508_v4 = vld [vmem:[%s6123_s16 + $0x2790] sm:$0xff] }
 0x3be   : > { %4838 = vmatpush1.bf16.msra.mxu0 %v4837_v27  ;;  %v2521_v27 = vld [vmem:[%s6123_s16 + $0x27f8] sm:$0xff] }
 0x3bf   : > { %5478 = vmatpush1.bf16.msra.mxu1 %v5477_v30  ;;  %4840 = vmatprep.subr.bf16.mxu0 %v4839_v45  ;;  %v4857_v30 = vpack.c.bf16 %v2510_v21, %v2506_v28  ;;  %v5497_v45 = vpack.c.bf16 %v2512_v17, %v2508_v4 }
 0x3c0   : > { %5480 = vmatprep.subr.bf16.mxu1 %v5479_v46  ;;  %v5499_v46 = vpack.c.bf16 %v2521_v27, %v2517_v26 }
 0x3c2   : > { %4842 = vmatpush1.bf16.msra.mxu0 %v4841_v39  ;;  %v2522_v39 = vld [vmem:[%s286_s24] sm:$0xf] }
 0x3c3   : > { %5482 = vmatpush1.bf16.msra.mxu1 %v5481_v40  ;;  %4844 = vmatprep.subr.bf16.mxu0 %v4843_v16  ;;  %v2527_v40 = vrot.slane %v2522_v39, %v6296_v5  ;;  %v2535_v16 = vrot.slane %v2522_v39, %v6355_v13  ;;  %v2531_v52 = vrot.slane %v2522_v39, %v6301_v7 }
 0x3c4   : > { %5484 = vmatprep.subr.bf16.mxu1 %v5483_v23  ;;  %v2539_v32 = vrot.slane %v2522_v39, %v6306_v9 }
 0x3c6   : > { %4846 = vmatpush1.bf16.msra.mxu0 %v4845_v36 }
 0x3c7   : > { %5486 = vmatpush1.bf16.msra.mxu1 %v5485_v47  ;;  %4848 = vmatprep.subr.bf16.mxu0 %v4847_v25 }
 0x3c8   : > { %5488 = vmatprep.subr.bf16.mxu1 %v5487_v53 }
 0x3ca   : > { %4850 = vmatpush1.bf16.msra.mxu0 %v4849_v51 }
 0x3cb   : > { %5490 = vmatpush1.bf16.msra.mxu1 %v5489_v59  ;;  %4852 = vmatprep.subr.bf16.mxu0 %v4851_v60 }
 0x3cc   : > { %5492 = vmatprep.subr.bf16.mxu1 %v5491_v29 }
 0x3ce   : > { %4854 = vmatpush1.bf16.msra.mxu0 %v4853_v15 }
 0x3cf   : > { %5494 = vmatpush1.bf16.msra.mxu1 %v5493_v11  ;;  %4856 = vmatprep.subr.bf16.mxu0 %v4855_v12 }
 0x3d0   : > { %5496 = vmatprep.subr.bf16.mxu1 %v5495_v14 }
 0x3d2   : > { %4858 = vmatpush1.bf16.msra.mxu0 %v4857_v30 }
 0x3d3   : > { %5498 = vmatpush1.bf16.msra.mxu1 %v5497_v45  ;;  %4860 = vmatprep.subr.bf16.mxu0 %v4859_v50 }
 0x3d4   : > { %5500 = vmatprep.subr.bf16.mxu1 %v5499_v46 }
 0x3d6   : > { %4862 = vmatpush1.bf16.msra.mxu0 %v4861_v1 }
 0x3d7   : > { %5502 = vmatpush1.bf16.msra.mxu1 %v5501_v37 }
 0x3d9   : > { %3248 = vmatmul.mubr.f32.vlgmr.msra.gmra.mrb[10].mxu0 %v1240_v38 }
 0x3da   : > { %3958 = vmatmul.mubr.f32.vlgmr.msra.gmra.mrb[10].mxu1 %v1240_v38 }
 0x4ac   : > { %v3249_v6 = vpop.f32.mrb[10].mxu0 }
 0x4ad   : > { %v5503_v23 = vadd.f32 %v3249_v6, %v2527_v40  ;;  %v3959_v8 = vpop.f32.mrb[10].mxu1  ;;  %v3251_v3 = vpop.f32.mrb[11].mxu0 }
 0x4ae   : > { %v5505_v20 = vadd.f32 %v3959_v8, %v2535_v16  ;;  %v5504_v41 = vadd.f32 %v3251_v3, %v2531_v52  ;;  %v3961_v43 = vpop.f32.mrb[11].mxu1 }
 0x4af   : > { %v3964_v44 = vmax.f32 %v5503_v23, 0.0  ;;  %v5506_v5 = vadd.f32 %v3961_v43, %v2539_v32 }
 0x4b0   : > { %v3966_v36 = vmax.f32 %v5505_v20, 0.0  ;;  %v3965_v13 = vmax.f32 %v5504_v41, 0.0 }
 0x4b1   : > { %3968 = vst [vmem:[%s317_s17] sm:$0xff] %v3964_v44  ;;  %v3967_v7 = vmax.f32 %v5506_v5, 0.0 }
 0x4b2   : > { %3970 = vst [vmem:[%s317_s17 + $0x10] sm:$0xff] %v3966_v36  ;;  %3969 = vst [vmem:[%s317_s17 + $0x8] sm:$0xff] %v3965_v13 }
 0x4b3   : > { %3971 = vst [vmem:[%s317_s17 + $0x18] sm:$0xff] %v3967_v7 }
 0x4b4   : > { %5792 = shalt.err (!%p5789_p2)
}
 0x4b5   : > { %s5793_s6 = scalar_lea.hbm %s7568_s23, 512  ;;  %s5797_s25 = scalar_lea.hbm %s7616_s5, 2560 }
 0x4b6   : > { %p5794_p10 = scmp.ne.s32.totalorder %s7568_s23, %s5793_s6  ;;  %p5798_p5 = scmp.lt.u32.totalorder %s7568_s23, %s7616_s5 }
 0x4b7   : > { %p5799_p12 = scmp.lt.u32.totalorder %s5797_s25, %s5793_s6  ;;  %p5801_p3 = scmp.lt.u32.totalorder %s5793_s6, %s7568_s23 }
 0x4b8   : > { %p5795_p4 = pnand %p5794_p10, %p7660_p8 }
 0x4b9   : > { %p5800_p6 = por %p5799_p12, %p5798_p5 }
 0x4ba   : > { %p5796_p0 = pneg %p5795_p4 }
 0x4bb   : > { %p5802_p9 = por %p5801_p3, %p5800_p6 }
 0x4bd   : > { %p5803_p7 = pnand %p5802_p9, %p5796_p0 }
 0x4bf   : > { %5806 = shalt.err (!%p5803_p7)
}
 0x4c0   : > { %5561 = dma.vmem_to_hbm [thread:$0]  (%p7660_p8), %s7570_s18, 512, %s7568_s23, %s3973_s22  }
 0x4c1 PF: > { %s7661_s7 = sld [smem:[#allocation16_spill]]  ;;  %s7662_s11 = sld [smem:[#allocation19_spill]] }
 0x4c2   : > { %p5591_p13 = scmp.ge.s32.totalorder %s5853_s21, 2 }
 0x4c7   : > { %s3999_s16 = sand.u32 1, %s7661_s7   ;;  %p7663_p11 = scmp.ne.s32.totalorder %s7662_s11, 0 }
 0x4c8   : > { %s4000_s29 = scalar_lea.sflag [#allocation4], %s3999_s16 }
 0x4c9   : > { %p5581_p1 = pnand %p5591_p13, %p7663_p11 }
 0x4cb   : > { %5836 = dma.done.wait (!%p5581_p1), %s4000_s29, 512  }
 0x4cc   : > { %5838 = vsyncadd (!%p5581_p1), %s4000_s29, 4294966784  ;;  %s7664_s21 = sld [smem:[#allocation17_spill]]  ;;  %s7665_s24 = sld [smem:[#allocation18_spill]] }
 0x4cd   : > { %s7666_s18 = smov %s5845_s19  ;;  %s7667_s19 = smov %s5849_s20 }
 0x4d2   : > { %p20_p2 = scmp.ge.s32.totalorder %s7664_s21, 7   ;;  %s7668_s20 = smov %s7665_s24 }
 0x4d4   :  { %22 = sbr.rel (!%p20_p2) target bundleno = 10 (0xa), region = 109 }
 0x4db   :  { %4005 = vsyncpa [#allocation3], 1 }
 0x4dc   :  { %4007 = vsyncpa [#allocation3 + $0x1], 1 }
 0x4dd   :  { %4008 = vsyncpa [#allocation6], 1 }
 0x4de   :  { %4009 = vsyncpa [#allocation9], 1 }
 0x4df   :  { %4011 = vsyncpa [#allocation9 + $0x1], 1 }
 0x4e0   :  { %4012 = vsyncpa [#allocation4], 1 }
 0x4e1   :  { %4014 = vsyncpa [#allocation4 + $0x1], 1 }

</bundles_post_ra>
